<compile_context>
chip_gen: v5e
topology: v5e:2x2
jax: 0.10.0
libtpu: 0.0.40
codegen_flags: <defaults>
</compile_context>

<pallas_src>
import math

import jax
import jax.numpy as jnp
from jax.experimental import pallas as pl
from jax.experimental.pallas import tpu as pltpu


# ---------------------------------------------------------------------------
# Fused Pallas kernel: full LSTM stack + Linear head
# ---------------------------------------------------------------------------
def make_lstm_stack_fc_kernel(T, B_eff, H, B_out, n_layers):
    """Builds the fused kernel.

    Ref layout (positional):
      x_ref                     : (T*B_eff, D)   time-major flattened input
      for each layer l:
        wih_l : (D_l, 8H)  [fwd i|f|o|g | bwd i|f|o|g] input->gates weights
        whh_l : (2H, 8H)   block-diagonal recurrent weights
                           rows 0:H -> cols 0:4H (fwd), rows H:2H -> 4H:8H (bwd)
        b_l   : (1, 8H)    (b_ih + b_hh) per direction, gate order [i|f|o|g]
      fcw_ref : (4H, O)  fcb_ref : (1, O)
      out_ref : (B_out, O) logits
      seq_buf_* : (T*B_eff, 2H) VMEM scratch (intermediate layer sequences)
    """

    def seq_layer(in_ref, wih_ref, whh_ref, b_ref, out_ref):
        # Hoisted input projection for BOTH directions: one big MXU matmul.
        gx = (
            jnp.dot(in_ref[...], wih_ref[...],
                    preferred_element_type=jnp.float32)
            + b_ref[...]
        )                                               # (T*B_eff, 8H)
        whh = whh_ref[...]                              # (2H, 8H)

        h = jnp.zeros((B_eff, 2 * H), jnp.float32)      # [h_fwd | h_bwd]
        c_f = jnp.zeros((B_eff, H), jnp.float32)
        c_b = jnp.zeros((B_eff, H), jnp.float32)

        for t in range(T):                              # fully unrolled
            # fwd step t consumes x_t; bwd step t consumes x_{T-1-t}.
            g_f = gx[t * B_eff:(t + 1) * B_eff, 0:4 * H]
            g_b = gx[(T - 1 - t) * B_eff:(T - t) * B_eff, 4 * H:8 * H]
            if t > 0:                                   # h == 0 at t == 0
                rec = jnp.dot(h, whh, preferred_element_type=jnp.float32)
                g_f = g_f + rec[:, 0:4 * H]
                g_b = g_b + rec[:, 4 * H:8 * H]

            s_f = jax.nn.sigmoid(g_f[:, 0:3 * H])       # [i|f|o] contiguous
            s_b = jax.nn.sigmoid(g_b[:, 0:3 * H])
            gc_f = jnp.tanh(g_f[:, 3 * H:4 * H])        # g (cell) gate
            gc_b = jnp.tanh(g_b[:, 3 * H:4 * H])

            c_f = s_f[:, H:2 * H] * c_f + s_f[:, 0:H] * gc_f
            c_b = s_b[:, H:2 * H] * c_b + s_b[:, 0:H] * gc_b
            h_f = s_f[:, 2 * H:3 * H] * jnp.tanh(c_f)
            h_b = s_b[:, 2 * H:3 * H] * jnp.tanh(c_b)

            out_ref[t * B_eff:(t + 1) * B_eff, 0:H] = h_f
            out_ref[(T - 1 - t) * B_eff:(T - t) * B_eff, H:2 * H] = h_b

            h = jnp.concatenate([h_f, h_b], axis=1)     # (B_eff, 2H)

    def last_layer_fc(in_ref, wih_ref, whh_ref, b_ref, fcw_ref, fcb_ref,
                      out_ref):
        x = in_ref[...]                                 # (T*B_eff, Din)

        # Forward direction: hoisted input projection, full recurrence,
        # keep only h_{T-1}.
        gx_f = (
            jnp.dot(x, wih_ref[:, 0:4 * H], preferred_element_type=jnp.float32)
            + b_ref[:, 0:4 * H]
        )                                               # (T*B_eff, 4H)
        whh_f = whh_ref[0:H, 0:4 * H]                   # (H, 4H)

        h_f = jnp.zeros((B_eff, H), jnp.float32)
        c_f = jnp.zeros((B_eff, H), jnp.float32)
        for t in range(T):                              # fully unrolled
            g = gx_f[t * B_eff:(t + 1) * B_eff, :]
            if t > 0:                                   # h == 0 at t == 0
                g = g + jnp.dot(h_f, whh_f,
                                preferred_element_type=jnp.float32)
            s = jax.nn.sigmoid(g[:, 0:3 * H])
            gc = jnp.tanh(g[:, 3 * H:4 * H])
            c_f = s[:, H:2 * H] * c_f + s[:, 0:H] * gc
            h_f = s[:, 2 * H:3 * H] * jnp.tanh(c_f)

        # Backward direction: the output at the LAST timestep only depends on
        # a single backward step over x_{T-1} (zero initial state, so the
        # recurrent matmul contributes nothing and is skipped).
        x_last = x[(T - 1) * B_eff:T * B_eff, :]
        g_b = (
            jnp.dot(x_last, wih_ref[:, 4 * H:8 * H],
                    preferred_element_type=jnp.float32)
            + b_ref[:, 4 * H:8 * H]
        )
        s_b = jax.nn.sigmoid(g_b[:, 0:3 * H])
        gc_b = jnp.tanh(g_b[:, 3 * H:4 * H])
        c_b = s_b[:, 0:H] * gc_b
        h_b = s_b[:, 2 * H:3 * H] * jnp.tanh(c_b)

        last = jnp.concatenate([h_f, h_b], axis=1)      # (B_eff, 2H)
        # question rows | hypothesis rows -> (B_out, 4H)
        combined = jnp.concatenate(
            [last[0:B_out, :], last[B_out:2 * B_out, :]], axis=1)
        # TODO(synk): Dropout(0.5) treated as eval-mode identity (no RNG mask).
        out_ref[...] = (
            jnp.dot(combined, fcw_ref[...], preferred_element_type=jnp.float32)
            + fcb_ref[...]
        )

    n_bufs = min(2, max(n_layers - 1, 0))

    def kernel(*refs):
        x_ref = refs[0]
        w_refs = refs[1:1 + 3 * n_layers]
        fcw_ref = refs[1 + 3 * n_layers]
        fcb_ref = refs[2 + 3 * n_layers]
        out_ref = refs[3 + 3 * n_layers]
        seq_bufs = refs[4 + 3 * n_layers:]              # ping-pong VMEM scratch

        cur = x_ref
        for layer in range(n_layers - 1):
            dst = seq_bufs[layer % n_bufs]
            wih, whh, b = w_refs[3 * layer:3 * layer + 3]
            seq_layer(cur, wih, whh, b, dst)
            cur = dst

        wih, whh, b = w_refs[3 * (n_layers - 1):3 * n_layers]
        last_layer_fc(cur, wih, whh, b, fcw_ref, fcb_ref, out_ref)

    return kernel, n_bufs


# ---------------------------------------------------------------------------
# Wrapper
# ---------------------------------------------------------------------------
_VMEM = pl.BlockSpec(memory_space=pltpu.MemorySpace.VMEM)


def lstm_model_forward(question, hypothesis, params):
    """Equivalent of LSTMModel.forward (eval mode)."""
    B, T, D = question.shape
    H = params["hidden_dim"]
    O = params["output_dim"]
    layers = params["lstm"]
    n_layers = len(layers)
    B_eff = 2 * B

    # Stack question + hypothesis into one batch, go time-major and flatten.
    x = jnp.concatenate([question, hypothesis], axis=0)        # (2B, T, D)
    x = jnp.transpose(x, (1, 0, 2)).reshape(T * B_eff, D)      # (T*2B, D)

    flat_w = []
    for lp in layers:
        flat_w += [lp["wih"], lp["whh"], lp["b"]]

    kernel, n_bufs = make_lstm_stack_fc_kernel(T, B_eff, H, B, n_layers)
    scratch = [pltpu.VMEM((T * B_eff, 2 * H), jnp.float32)] * n_bufs

    return pl.pallas_call(
        kernel,
        out_shape=jax.ShapeDtypeStruct((B, O), jnp.float32),
        in_specs=[_VMEM] * (3 + 3 * n_layers),
        out_specs=_VMEM,
        scratch_shapes=scratch,
    )(x, *flat_w, params["fc_w_t"], params["fc_b"])


# ---------------------------------------------------------------------------
# Deterministic parameter construction (PyTorch-style uniform init),
# pre-fused / pre-permuted for the kernel above.
# ---------------------------------------------------------------------------
def init_params(key, input_dim, hidden_dim, output_dim, n_layers):
    H = hidden_dim

    def uniform(k, shape, scale):
        return jax.random.uniform(k, shape, jnp.float32, -scale, scale)

    def reorder(w):
        # PyTorch gate blocks [i|f|g|o] (rows) -> kernel order [i|f|o|g]
        return jnp.concatenate(
            [w[0:H], w[H:2 * H], w[3 * H:4 * H], w[2 * H:3 * H]], axis=0)

    scale = 1.0 / math.sqrt(H)
    layers = []
    for layer in range(n_layers):
        in_dim = input_dim if layer == 0 else 2 * H
        per_dir = []
        for _ in range(2):  # fwd, bwd
            key, k1, k2, k3, k4 = jax.random.split(key, 5)
            w_ih = reorder(uniform(k1, (4 * H, in_dim), scale))
            w_hh = reorder(uniform(k2, (4 * H, H), scale))
            b = reorder(uniform(k3, (4 * H,), scale)
                        + uniform(k4, (4 * H,), scale))
            per_dir.append((w_ih, w_hh, b))
        (wih_f, whh_f, b_f), (wih_b, whh_b, b_b) = per_dir

        wih = jnp.concatenate([wih_f.T, wih_b.T], axis=1)          # (in, 8H)
        whh = jnp.zeros((2 * H, 8 * H), jnp.float32)               # block-diag
        whh = whh.at[0:H, 0:4 * H].set(whh_f.T)
        whh = whh.at[H:2 * H, 4 * H:8 * H].set(whh_b.T)
        b = jnp.concatenate([b_f, b_b]).reshape(1, 8 * H)
        layers.append({"wih": wih, "whh": whh, "b": b})

    fc_scale = 1.0 / math.sqrt(4 * H)
    key, kw, kb = jax.random.split(key, 3)
    fc_w = uniform(kw, (output_dim, 4 * H), fc_scale)
    fc_b = uniform(kb, (output_dim,), fc_scale)
    return {
        "lstm": layers,
        "fc_w_t": jnp.transpose(fc_w),        # (4H, O)
        "fc_b": fc_b.reshape(1, -1),          # (1, O)
        "hidden_dim": H,
        "output_dim": output_dim,
    }


# ---------------------------------------------------------------------------
if __name__ == "__main__":
    batch, seq_len = 2, 8
    input_dim, hidden_dim, output_dim, n_layers = 16, 32, 3, 2

    key = jax.random.PRNGKey(0)
    key, kq, kh, kp = jax.random.split(key, 4)
    question = jax.random.normal(kq, (batch, seq_len, input_dim), jnp.float32)
    hypothesis = jax.random.normal(kh, (batch, seq_len, input_dim), jnp.float32)
    params = init_params(kp, input_dim, hidden_dim, output_dim, n_layers)

    fwd = jax.jit(lambda q, h: lstm_model_forward(q, h, params))
    out = fwd(question, hypothesis)
    jax.block_until_ready(out)
    assert out.shape == (batch, output_dim), out.shape
    print("KERNEL_OK")
</pallas_src>

<mosaic_0001>
module attributes {stable_mosaic.version = 11 : i64} {
  func.func @kernel(%arg0: memref<32x16xf32, #tpu.memory_space<vmem>>, %arg1: memref<16x256xf32, #tpu.memory_space<vmem>>, %arg2: memref<64x256xf32, #tpu.memory_space<vmem>>, %arg3: memref<1x256xf32, #tpu.memory_space<vmem>>, %arg4: memref<64x256xf32, #tpu.memory_space<vmem>>, %arg5: memref<64x256xf32, #tpu.memory_space<vmem>>, %arg6: memref<1x256xf32, #tpu.memory_space<vmem>>, %arg7: memref<128x3xf32, #tpu.memory_space<vmem>>, %arg8: memref<1x3xf32, #tpu.memory_space<vmem>>, %arg9: memref<2x3xf32, #tpu.memory_space<vmem>>, %arg10: memref<32x64xf32, #tpu.memory_space<vmem>>) attributes {dimension_semantics = [], scalar_prefetch = 0 : i64, scratch_operands = 1 : i64, tpu.core_type = #tpu.core_type<tc>} {
    %c0 = arith.constant 0 : index
    %c0_0 = arith.constant 0 : index
    %0 = vector.load %arg0[%c0, %c0_0] : memref<32x16xf32, #tpu.memory_space<vmem>>, vector<32x16xf32>
    %c0_1 = arith.constant 0 : index
    %c0_2 = arith.constant 0 : index
    %1 = vector.load %arg1[%c0_1, %c0_2] : memref<16x256xf32, #tpu.memory_space<vmem>>, vector<16x256xf32>
    %cst = arith.constant dense<0.000000e+00> : vector<32x256xf32>
    %2 = tpu.matmul %0, %1, %cst {dimension_numbers = #tpu.dot_dimension_numbers<[1], [0], [0], [1], [0, 0, 1, 1], [], []>} : vector<32x16xf32>, vector<16x256xf32>, vector<32x256xf32> -> vector<32x256xf32>
    %c0_3 = arith.constant 0 : index
    %c0_4 = arith.constant 0 : index
    %3 = vector.load %arg3[%c0_3, %c0_4] : memref<1x256xf32, #tpu.memory_space<vmem>>, vector<1x256xf32>
    %4 = vector.broadcast %3 : vector<1x256xf32> to vector<32x256xf32>
    %5 = arith.addf %2, %4 : vector<32x256xf32>
    %c0_5 = arith.constant 0 : index
    %c0_6 = arith.constant 0 : index
    %6 = vector.load %arg2[%c0_5, %c0_6] : memref<64x256xf32, #tpu.memory_space<vmem>>, vector<64x256xf32>
    %cst_7 = arith.constant 0.000000e+00 : f32
    %7 = vector.broadcast %cst_7 : f32 to vector<4x32xf32>
    %cst_8 = arith.constant 0.000000e+00 : f32
    %8 = vector.broadcast %cst_8 : f32 to vector<4x32xf32>
    %9 = vector.extract_strided_slice %5 {offsets = [0, 0], sizes = [4, 128], strides = [1, 1]} : vector<32x256xf32> to vector<4x128xf32>
    %10 = vector.extract_strided_slice %5 {offsets = [28, 128], sizes = [4, 128], strides = [1, 1]} : vector<32x256xf32> to vector<4x128xf32>
    %11 = vector.extract_strided_slice %9 {offsets = [0, 0], sizes = [4, 96], strides = [1, 1]} : vector<4x128xf32> to vector<4x96xf32>
    %12 = arith.negf %11 : vector<4x96xf32>
    %13 = math.exp %12 : vector<4x96xf32>
    %cst_9 = arith.constant 1.000000e+00 : f32
    %14 = vector.broadcast %cst_9 : f32 to vector<4x96xf32>
    %15 = arith.addf %14, %13 : vector<4x96xf32>
    %16 = arith.divf %14, %15 : vector<4x96xf32>
    %17 = vector.extract_strided_slice %10 {offsets = [0, 0], sizes = [4, 96], strides = [1, 1]} : vector<4x128xf32> to vector<4x96xf32>
    %18 = arith.negf %17 : vector<4x96xf32>
    %19 = math.exp %18 : vector<4x96xf32>
    %cst_10 = arith.constant 1.000000e+00 : f32
    %20 = vector.broadcast %cst_10 : f32 to vector<4x96xf32>
    %21 = arith.addf %20, %19 : vector<4x96xf32>
    %22 = arith.divf %20, %21 : vector<4x96xf32>
    %23 = vector.extract_strided_slice %9 {offsets = [0, 96], sizes = [4, 32], strides = [1, 1]} : vector<4x128xf32> to vector<4x32xf32>
    %24 = math.tanh %23 : vector<4x32xf32>
    %25 = vector.extract_strided_slice %10 {offsets = [0, 96], sizes = [4, 32], strides = [1, 1]} : vector<4x128xf32> to vector<4x32xf32>
    %26 = math.tanh %25 : vector<4x32xf32>
    %27 = vector.extract_strided_slice %16 {offsets = [0, 32], sizes = [4, 32], strides = [1, 1]} : vector<4x96xf32> to vector<4x32xf32>
    %28 = arith.mulf %27, %7 : vector<4x32xf32>
    %29 = vector.extract_strided_slice %16 {offsets = [0, 0], sizes = [4, 32], strides = [1, 1]} : vector<4x96xf32> to vector<4x32xf32>
    %30 = arith.mulf %29, %24 : vector<4x32xf32>
    %31 = arith.addf %28, %30 : vector<4x32xf32>
    %32 = vector.extract_strided_slice %22 {offsets = [0, 32], sizes = [4, 32], strides = [1, 1]} : vector<4x96xf32> to vector<4x32xf32>
    %33 = arith.mulf %32, %8 : vector<4x32xf32>
    %34 = vector.extract_strided_slice %22 {offsets = [0, 0], sizes = [4, 32], strides = [1, 1]} : vector<4x96xf32> to vector<4x32xf32>
    %35 = arith.mulf %34, %26 : vector<4x32xf32>
    %36 = arith.addf %33, %35 : vector<4x32xf32>
    %37 = vector.extract_strided_slice %16 {offsets = [0, 64], sizes = [4, 32], strides = [1, 1]} : vector<4x96xf32> to vector<4x32xf32>
    %38 = math.tanh %31 : vector<4x32xf32>
    %39 = arith.mulf %37, %38 : vector<4x32xf32>
    %40 = vector.extract_strided_slice %22 {offsets = [0, 64], sizes = [4, 32], strides = [1, 1]} : vector<4x96xf32> to vector<4x32xf32>
    %41 = math.tanh %36 : vector<4x32xf32>
    %42 = arith.mulf %40, %41 : vector<4x32xf32>
    %c0_11 = arith.constant 0 : index
    %c0_12 = arith.constant 0 : index
    %43 = vector.load %arg10[%c0_11, %c0_12] : memref<32x64xf32, #tpu.memory_space<vmem>>, vector<4x32xf32>
    tpu.vector_store %arg10[%c0_11, %c0_12], %39 {strides = array<i32>} : memref<32x64xf32, #tpu.memory_space<vmem>>, vector<4x32xf32>,
    %c28 = arith.constant 28 : index
    %c32 = arith.constant 32 : index
    %44 = vector.load %arg10[%c28, %c32] : memref<32x64xf32, #tpu.memory_space<vmem>>, vector<4x32xf32>
    tpu.vector_store %arg10[%c28, %c32], %42 {strides = array<i32>} : memref<32x64xf32, #tpu.memory_space<vmem>>, vector<4x32xf32>,
    %45 = tpu.concatenate %39, %42 in 1 : vector<4x32xf32>, vector<4x32xf32> -> vector<4x64xf32>
    %46 = vector.extract_strided_slice %5 {offsets = [4, 0], sizes = [4, 128], strides = [1, 1]} : vector<32x256xf32> to vector<4x128xf32>
    %47 = vector.extract_strided_slice %5 {offsets = [24, 128], sizes = [4, 128], strides = [1, 1]} : vector<32x256xf32> to vector<4x128xf32>
    %cst_13 = arith.constant dense<0.000000e+00> : vector<4x256xf32>
    %48 = tpu.matmul %45, %6, %cst_13 {dimension_numbers = #tpu.dot_dimension_numbers<[1], [0], [0], [1], [0, 0, 1, 1], [], []>} : vector<4x64xf32>, vector<64x256xf32>, vector<4x256xf32> -> vector<4x256xf32>
    %49 = vector.extract_strided_slice %48 {offsets = [0, 0], sizes = [4, 128], strides = [1, 1]} : vector<4x256xf32> to vector<4x128xf32>
    %50 = arith.addf %46, %49 : vector<4x128xf32>
    %51 = vector.extract_strided_slice %48 {offsets = [0, 128], sizes = [4, 128], strides = [1, 1]} : vector<4x256xf32> to vector<4x128xf32>
    %52 = arith.addf %47, %51 : vector<4x128xf32>
    %53 = vector.extract_strided_slice %50 {offsets = [0, 0], sizes = [4, 96], strides = [1, 1]} : vector<4x128xf32> to vector<4x96xf32>
    %54 = arith.negf %53 : vector<4x96xf32>
    %55 = math.exp %54 : vector<4x96xf32>
    %cst_14 = arith.constant 1.000000e+00 : f32
    %56 = vector.broadcast %cst_14 : f32 to vector<4x96xf32>
    %57 = arith.addf %56, %55 : vector<4x96xf32>
    %58 = arith.divf %56, %57 : vector<4x96xf32>
    %59 = vector.extract_strided_slice %52 {offsets = [0, 0], sizes = [4, 96], strides = [1, 1]} : vector<4x128xf32> to vector<4x96xf32>
    %60 = arith.negf %59 : vector<4x96xf32>
    %61 = math.exp %60 : vector<4x96xf32>
    %cst_15 = arith.constant 1.000000e+00 : f32
    %62 = vector.broadcast %cst_15 : f32 to vector<4x96xf32>
    %63 = arith.addf %62, %61 : vector<4x96xf32>
    %64 = arith.divf %62, %63 : vector<4x96xf32>
    %65 = vector.extract_strided_slice %50 {offsets = [0, 96], sizes = [4, 32], strides = [1, 1]} : vector<4x128xf32> to vector<4x32xf32>
    %66 = math.tanh %65 : vector<4x32xf32>
    %67 = vector.extract_strided_slice %52 {offsets = [0, 96], sizes = [4, 32], strides = [1, 1]} : vector<4x128xf32> to vector<4x32xf32>
    %68 = math.tanh %67 : vector<4x32xf32>
    %69 = vector.extract_strided_slice %58 {offsets = [0, 32], sizes = [4, 32], strides = [1, 1]} : vector<4x96xf32> to vector<4x32xf32>
    %70 = arith.mulf %69, %31 : vector<4x32xf32>
    %71 = vector.extract_strided_slice %58 {offsets = [0, 0], sizes = [4, 32], strides = [1, 1]} : vector<4x96xf32> to vector<4x32xf32>
    %72 = arith.mulf %71, %66 : vector<4x32xf32>
    %73 = arith.addf %70, %72 : vector<4x32xf32>
    %74 = vector.extract_strided_slice %64 {offsets = [0, 32], sizes = [4, 32], strides = [1, 1]} : vector<4x96xf32> to vector<4x32xf32>
    %75 = arith.mulf %74, %36 : vector<4x32xf32>
    %76 = vector.extract_strided_slice %64 {offsets = [0, 0], sizes = [4, 32], strides = [1, 1]} : vector<4x96xf32> to vector<4x32xf32>
    %77 = arith.mulf %76, %68 : vector<4x32xf32>
    %78 = arith.addf %75, %77 : vector<4x32xf32>
    %79 = vector.extract_strided_slice %58 {offsets = [0, 64], sizes = [4, 32], strides = [1, 1]} : vector<4x96xf32> to vector<4x32xf32>
    %80 = math.tanh %73 : vector<4x32xf32>
    %81 = arith.mulf %79, %80 : vector<4x32xf32>
    %82 = vector.extract_strided_slice %64 {offsets = [0, 64], sizes = [4, 32], strides = [1, 1]} : vector<4x96xf32> to vector<4x32xf32>
    %83 = math.tanh %78 : vector<4x32xf32>
    %84 = arith.mulf %82, %83 : vector<4x32xf32>
    %c4 = arith.constant 4 : index
    %c0_16 = arith.constant 0 : index
    %85 = vector.load %arg10[%c4, %c0_16] : memref<32x64xf32, #tpu.memory_space<vmem>>, vector<4x32xf32>
    tpu.vector_store %arg10[%c4, %c0_16], %81 {strides = array<i32>} : memref<32x64xf32, #tpu.memory_space<vmem>>, vector<4x32xf32>,
    %c24 = arith.constant 24 : index
    %c32_17 = arith.constant 32 : index
    %86 = vector.load %arg10[%c24, %c32_17] : memref<32x64xf32, #tpu.memory_space<vmem>>, vector<4x32xf32>
    tpu.vector_store %arg10[%c24, %c32_17], %84 {strides = array<i32>} : memref<32x64xf32, #tpu.memory_space<vmem>>, vector<4x32xf32>,
    %87 = tpu.concatenate %81, %84 in 1 : vector<4x32xf32>, vector<4x32xf32> -> vector<4x64xf32>
    %88 = vector.extract_strided_slice %5 {offsets = [8, 0], sizes = [4, 128], strides = [1, 1]} : vector<32x256xf32> to vector<4x128xf32>
    %89 = vector.extract_strided_slice %5 {offsets = [20, 128], sizes = [4, 128], strides = [1, 1]} : vector<32x256xf32> to vector<4x128xf32>
    %cst_18 = arith.constant dense<0.000000e+00> : vector<4x256xf32>
    %90 = tpu.matmul %87, %6, %cst_18 {dimension_numbers = #tpu.dot_dimension_numbers<[1], [0], [0], [1], [0, 0, 1, 1], [], []>} : vector<4x64xf32>, vector<64x256xf32>, vector<4x256xf32> -> vector<4x256xf32>
    %91 = vector.extract_strided_slice %90 {offsets = [0, 0], sizes = [4, 128], strides = [1, 1]} : vector<4x256xf32> to vector<4x128xf32>
    %92 = arith.addf %88, %91 : vector<4x128xf32>
    %93 = vector.extract_strided_slice %90 {offsets = [0, 128], sizes = [4, 128], strides = [1, 1]} : vector<4x256xf32> to vector<4x128xf32>
    %94 = arith.addf %89, %93 : vector<4x128xf32>
    %95 = vector.extract_strided_slice %92 {offsets = [0, 0], sizes = [4, 96], strides = [1, 1]} : vector<4x128xf32> to vector<4x96xf32>
    %96 = arith.negf %95 : vector<4x96xf32>
    %97 = math.exp %96 : vector<4x96xf32>
    %cst_19 = arith.constant 1.000000e+00 : f32
    %98 = vector.broadcast %cst_19 : f32 to vector<4x96xf32>
    %99 = arith.addf %98, %97 : vector<4x96xf32>
    %100 = arith.divf %98, %99 : vector<4x96xf32>
    %101 = vector.extract_strided_slice %94 {offsets = [0, 0], sizes = [4, 96], strides = [1, 1]} : vector<4x128xf32> to vector<4x96xf32>
    %102 = arith.negf %101 : vector<4x96xf32>
    %103 = math.exp %102 : vector<4x96xf32>
    %cst_20 = arith.constant 1.000000e+00 : f32
    %104 = vector.broadcast %cst_20 : f32 to vector<4x96xf32>
    %105 = arith.addf %104, %103 : vector<4x96xf32>
    %106 = arith.divf %104, %105 : vector<4x96xf32>
    %107 = vector.extract_strided_slice %92 {offsets = [0, 96], sizes = [4, 32], strides = [1, 1]} : vector<4x128xf32> to vector<4x32xf32>
    %108 = math.tanh %107 : vector<4x32xf32>
    %109 = vector.extract_strided_slice %94 {offsets = [0, 96], sizes = [4, 32], strides = [1, 1]} : vector<4x128xf32> to vector<4x32xf32>
    %110 = math.tanh %109 : vector<4x32xf32>
    %111 = vector.extract_strided_slice %100 {offsets = [0, 32], sizes = [4, 32], strides = [1, 1]} : vector<4x96xf32> to vector<4x32xf32>
    %112 = arith.mulf %111, %73 : vector<4x32xf32>
    %113 = vector.extract_strided_slice %100 {offsets = [0, 0], sizes = [4, 32], strides = [1, 1]} : vector<4x96xf32> to vector<4x32xf32>
    %114 = arith.mulf %113, %108 : vector<4x32xf32>
    %115 = arith.addf %112, %114 : vector<4x32xf32>
    %116 = vector.extract_strided_slice %106 {offsets = [0, 32], sizes = [4, 32], strides = [1, 1]} : vector<4x96xf32> to vector<4x32xf32>
    %117 = arith.mulf %116, %78 : vector<4x32xf32>
    %118 = vector.extract_strided_slice %106 {offsets = [0, 0], sizes = [4, 32], strides = [1, 1]} : vector<4x96xf32> to vector<4x32xf32>
    %119 = arith.mulf %118, %110 : vector<4x32xf32>
    %120 = arith.addf %117, %119 : vector<4x32xf32>
    %121 = vector.extract_strided_slice %100 {offsets = [0, 64], sizes = [4, 32], strides = [1, 1]} : vector<4x96xf32> to vector<4x32xf32>
    %122 = math.tanh %115 : vector<4x32xf32>
    %123 = arith.mulf %121, %122 : vector<4x32xf32>
    %124 = vector.extract_strided_slice %106 {offsets = [0, 64], sizes = [4, 32], strides = [1, 1]} : vector<4x96xf32> to vector<4x32xf32>
    %125 = math.tanh %120 : vector<4x32xf32>
    %126 = arith.mulf %124, %125 : vector<4x32xf32>
    %c8 = arith.constant 8 : index
    %c0_21 = arith.constant 0 : index
    %127 = vector.load %arg10[%c8, %c0_21] : memref<32x64xf32, #tpu.memory_space<vmem>>, vector<4x32xf32>
    tpu.vector_store %arg10[%c8, %c0_21], %123 {strides = array<i32>} : memref<32x64xf32, #tpu.memory_space<vmem>>, vector<4x32xf32>,
    %c20 = arith.constant 20 : index
    %c32_22 = arith.constant 32 : index
    %128 = vector.load %arg10[%c20, %c32_22] : memref<32x64xf32, #tpu.memory_space<vmem>>, vector<4x32xf32>
    tpu.vector_store %arg10[%c20, %c32_22], %126 {strides = array<i32>} : memref<32x64xf32, #tpu.memory_space<vmem>>, vector<4x32xf32>,
    %129 = tpu.concatenate %123, %126 in 1 : vector<4x32xf32>, vector<4x32xf32> -> vector<4x64xf32>
    %130 = vector.extract_strided_slice %5 {offsets = [12, 0], sizes = [4, 128], strides = [1, 1]} : vector<32x256xf32> to vector<4x128xf32>
    %131 = vector.extract_strided_slice %5 {offsets = [16, 128], sizes = [4, 128], strides = [1, 1]} : vector<32x256xf32> to vector<4x128xf32>
    %cst_23 = arith.constant dense<0.000000e+00> : vector<4x256xf32>
    %132 = tpu.matmul %129, %6, %cst_23 {dimension_numbers = #tpu.dot_dimension_numbers<[1], [0], [0], [1], [0, 0, 1, 1], [], []>} : vector<4x64xf32>, vector<64x256xf32>, vector<4x256xf32> -> vector<4x256xf32>
    %133 = vector.extract_strided_slice %132 {offsets = [0, 0], sizes = [4, 128], strides = [1, 1]} : vector<4x256xf32> to vector<4x128xf32>
    %134 = arith.addf %130, %133 : vector<4x128xf32>
    %135 = vector.extract_strided_slice %132 {offsets = [0, 128], sizes = [4, 128], strides = [1, 1]} : vector<4x256xf32> to vector<4x128xf32>
    %136 = arith.addf %131, %135 : vector<4x128xf32>
    %137 = vector.extract_strided_slice %134 {offsets = [0, 0], sizes = [4, 96], strides = [1, 1]} : vector<4x128xf32> to vector<4x96xf32>
    %138 = arith.negf %137 : vector<4x96xf32>
    %139 = math.exp %138 : vector<4x96xf32>
    %cst_24 = arith.constant 1.000000e+00 : f32
    %140 = vector.broadcast %cst_24 : f32 to vector<4x96xf32>
    %141 = arith.addf %140, %139 : vector<4x96xf32>
    %142 = arith.divf %140, %141 : vector<4x96xf32>
    %143 = vector.extract_strided_slice %136 {offsets = [0, 0], sizes = [4, 96], strides = [1, 1]} : vector<4x128xf32> to vector<4x96xf32>
    %144 = arith.negf %143 : vector<4x96xf32>
    %145 = math.exp %144 : vector<4x96xf32>
    %cst_25 = arith.constant 1.000000e+00 : f32
    %146 = vector.broadcast %cst_25 : f32 to vector<4x96xf32>
    %147 = arith.addf %146, %145 : vector<4x96xf32>
    %148 = arith.divf %146, %147 : vector<4x96xf32>
    %149 = vector.extract_strided_slice %134 {offsets = [0, 96], sizes = [4, 32], strides = [1, 1]} : vector<4x128xf32> to vector<4x32xf32>
    %150 = math.tanh %149 : vector<4x32xf32>
    %151 = vector.extract_strided_slice %136 {offsets = [0, 96], sizes = [4, 32], strides = [1, 1]} : vector<4x128xf32> to vector<4x32xf32>
    %152 = math.tanh %151 : vector<4x32xf32>
    %153 = vector.extract_strided_slice %142 {offsets = [0, 32], sizes = [4, 32], strides = [1, 1]} : vector<4x96xf32> to vector<4x32xf32>
    %154 = arith.mulf %153, %115 : vector<4x32xf32>
    %155 = vector.extract_strided_slice %142 {offsets = [0, 0], sizes = [4, 32], strides = [1, 1]} : vector<4x96xf32> to vector<4x32xf32>
    %156 = arith.mulf %155, %150 : vector<4x32xf32>
    %157 = arith.addf %154, %156 : vector<4x32xf32>
    %158 = vector.extract_strided_slice %148 {offsets = [0, 32], sizes = [4, 32], strides = [1, 1]} : vector<4x96xf32> to vector<4x32xf32>
    %159 = arith.mulf %158, %120 : vector<4x32xf32>
    %160 = vector.extract_strided_slice %148 {offsets = [0, 0], sizes = [4, 32], strides = [1, 1]} : vector<4x96xf32> to vector<4x32xf32>
    %161 = arith.mulf %160, %152 : vector<4x32xf32>
    %162 = arith.addf %159, %161 : vector<4x32xf32>
    %163 = vector.extract_strided_slice %142 {offsets = [0, 64], sizes = [4, 32], strides = [1, 1]} : vector<4x96xf32> to vector<4x32xf32>
    %164 = math.tanh %157 : vector<4x32xf32>
    %165 = arith.mulf %163, %164 : vector<4x32xf32>
    %166 = vector.extract_strided_slice %148 {offsets = [0, 64], sizes = [4, 32], strides = [1, 1]} : vector<4x96xf32> to vector<4x32xf32>
    %167 = math.tanh %162 : vector<4x32xf32>
    %168 = arith.mulf %166, %167 : vector<4x32xf32>
    %c12 = arith.constant 12 : index
    %c0_26 = arith.constant 0 : index
    %169 = vector.load %arg10[%c12, %c0_26] : memref<32x64xf32, #tpu.memory_space<vmem>>, vector<4x32xf32>
    tpu.vector_store %arg10[%c12, %c0_26], %165 {strides = array<i32>} : memref<32x64xf32, #tpu.memory_space<vmem>>, vector<4x32xf32>,
    %c16 = arith.constant 16 : index
    %c32_27 = arith.constant 32 : index
    %170 = vector.load %arg10[%c16, %c32_27] : memref<32x64xf32, #tpu.memory_space<vmem>>, vector<4x32xf32>
    tpu.vector_store %arg10[%c16, %c32_27], %168 {strides = array<i32>} : memref<32x64xf32, #tpu.memory_space<vmem>>, vector<4x32xf32>,
    %171 = tpu.concatenate %165, %168 in 1 : vector<4x32xf32>, vector<4x32xf32> -> vector<4x64xf32>
    %172 = vector.extract_strided_slice %5 {offsets = [16, 0], sizes = [4, 128], strides = [1, 1]} : vector<32x256xf32> to vector<4x128xf32>
    %173 = vector.extract_strided_slice %5 {offsets = [12, 128], sizes = [4, 128], strides = [1, 1]} : vector<32x256xf32> to vector<4x128xf32>
    %cst_28 = arith.constant dense<0.000000e+00> : vector<4x256xf32>
    %174 = tpu.matmul %171, %6, %cst_28 {dimension_numbers = #tpu.dot_dimension_numbers<[1], [0], [0], [1], [0, 0, 1, 1], [], []>} : vector<4x64xf32>, vector<64x256xf32>, vector<4x256xf32> -> vector<4x256xf32>
    %175 = vector.extract_strided_slice %174 {offsets = [0, 0], sizes = [4, 128], strides = [1, 1]} : vector<4x256xf32> to vector<4x128xf32>
    %176 = arith.addf %172, %175 : vector<4x128xf32>
    %177 = vector.extract_strided_slice %174 {offsets = [0, 128], sizes = [4, 128], strides = [1, 1]} : vector<4x256xf32> to vector<4x128xf32>
    %178 = arith.addf %173, %177 : vector<4x128xf32>
    %179 = vector.extract_strided_slice %176 {offsets = [0, 0], sizes = [4, 96], strides = [1, 1]} : vector<4x128xf32> to vector<4x96xf32>
    %180 = arith.negf %179 : vector<4x96xf32>
    %181 = math.exp %180 : vector<4x96xf32>
    %cst_29 = arith.constant 1.000000e+00 : f32
    %182 = vector.broadcast %cst_29 : f32 to vector<4x96xf32>
    %183 = arith.addf %182, %181 : vector<4x96xf32>
    %184 = arith.divf %182, %183 : vector<4x96xf32>
    %185 = vector.extract_strided_slice %178 {offsets = [0, 0], sizes = [4, 96], strides = [1, 1]} : vector<4x128xf32> to vector<4x96xf32>
    %186 = arith.negf %185 : vector<4x96xf32>
    %187 = math.exp %186 : vector<4x96xf32>
    %cst_30 = arith.constant 1.000000e+00 : f32
    %188 = vector.broadcast %cst_30 : f32 to vector<4x96xf32>
    %189 = arith.addf %188, %187 : vector<4x96xf32>
    %190 = arith.divf %188, %189 : vector<4x96xf32>
    %191 = vector.extract_strided_slice %176 {offsets = [0, 96], sizes = [4, 32], strides = [1, 1]} : vector<4x128xf32> to vector<4x32xf32>
    %192 = math.tanh %191 : vector<4x32xf32>
    %193 = vector.extract_strided_slice %178 {offsets = [0, 96], sizes = [4, 32], strides = [1, 1]} : vector<4x128xf32> to vector<4x32xf32>
    %194 = math.tanh %193 : vector<4x32xf32>
    %195 = vector.extract_strided_slice %184 {offsets = [0, 32], sizes = [4, 32], strides = [1, 1]} : vector<4x96xf32> to vector<4x32xf32>
    %196 = arith.mulf %195, %157 : vector<4x32xf32>
    %197 = vector.extract_strided_slice %184 {offsets = [0, 0], sizes = [4, 32], strides = [1, 1]} : vector<4x96xf32> to vector<4x32xf32>
    %198 = arith.mulf %197, %192 : vector<4x32xf32>
    %199 = arith.addf %196, %198 : vector<4x32xf32>
    %200 = vector.extract_strided_slice %190 {offsets = [0, 32], sizes = [4, 32], strides = [1, 1]} : vector<4x96xf32> to vector<4x32xf32>
    %201 = arith.mulf %200, %162 : vector<4x32xf32>
    %202 = vector.extract_strided_slice %190 {offsets = [0, 0], sizes = [4, 32], strides = [1, 1]} : vector<4x96xf32> to vector<4x32xf32>
    %203 = arith.mulf %202, %194 : vector<4x32xf32>
    %204 = arith.addf %201, %203 : vector<4x32xf32>
    %205 = vector.extract_strided_slice %184 {offsets = [0, 64], sizes = [4, 32], strides = [1, 1]} : vector<4x96xf32> to vector<4x32xf32>
    %206 = math.tanh %199 : vector<4x32xf32>
    %207 = arith.mulf %205, %206 : vector<4x32xf32>
    %208 = vector.extract_strided_slice %190 {offsets = [0, 64], sizes = [4, 32], strides = [1, 1]} : vector<4x96xf32> to vector<4x32xf32>
    %209 = math.tanh %204 : vector<4x32xf32>
    %210 = arith.mulf %208, %209 : vector<4x32xf32>
    %c16_31 = arith.constant 16 : index
    %c0_32 = arith.constant 0 : index
    %211 = vector.load %arg10[%c16_31, %c0_32] : memref<32x64xf32, #tpu.memory_space<vmem>>, vector<4x32xf32>
    tpu.vector_store %arg10[%c16_31, %c0_32], %207 {strides = array<i32>} : memref<32x64xf32, #tpu.memory_space<vmem>>, vector<4x32xf32>,
    %c12_33 = arith.constant 12 : index
    %c32_34 = arith.constant 32 : index
    %212 = vector.load %arg10[%c12_33, %c32_34] : memref<32x64xf32, #tpu.memory_space<vmem>>, vector<4x32xf32>
    tpu.vector_store %arg10[%c12_33, %c32_34], %210 {strides = array<i32>} : memref<32x64xf32, #tpu.memory_space<vmem>>, vector<4x32xf32>,
    %213 = tpu.concatenate %207, %210 in 1 : vector<4x32xf32>, vector<4x32xf32> -> vector<4x64xf32>
    %214 = vector.extract_strided_slice %5 {offsets = [20, 0], sizes = [4, 128], strides = [1, 1]} : vector<32x256xf32> to vector<4x128xf32>
    %215 = vector.extract_strided_slice %5 {offsets = [8, 128], sizes = [4, 128], strides = [1, 1]} : vector<32x256xf32> to vector<4x128xf32>
    %cst_35 = arith.constant dense<0.000000e+00> : vector<4x256xf32>
    %216 = tpu.matmul %213, %6, %cst_35 {dimension_numbers = #tpu.dot_dimension_numbers<[1], [0], [0], [1], [0, 0, 1, 1], [], []>} : vector<4x64xf32>, vector<64x256xf32>, vector<4x256xf32> -> vector<4x256xf32>
    %217 = vector.extract_strided_slice %216 {offsets = [0, 0], sizes = [4, 128], strides = [1, 1]} : vector<4x256xf32> to vector<4x128xf32>
    %218 = arith.addf %214, %217 : vector<4x128xf32>
    %219 = vector.extract_strided_slice %216 {offsets = [0, 128], sizes = [4, 128], strides = [1, 1]} : vector<4x256xf32> to vector<4x128xf32>
    %220 = arith.addf %215, %219 : vector<4x128xf32>
    %221 = vector.extract_strided_slice %218 {offsets = [0, 0], sizes = [4, 96], strides = [1, 1]} : vector<4x128xf32> to vector<4x96xf32>
    %222 = arith.negf %221 : vector<4x96xf32>
    %223 = math.exp %222 : vector<4x96xf32>
    %cst_36 = arith.constant 1.000000e+00 : f32
    %224 = vector.broadcast %cst_36 : f32 to vector<4x96xf32>
    %225 = arith.addf %224, %223 : vector<4x96xf32>
    %226 = arith.divf %224, %225 : vector<4x96xf32>
    %227 = vector.extract_strided_slice %220 {offsets = [0, 0], sizes = [4, 96], strides = [1, 1]} : vector<4x128xf32> to vector<4x96xf32>
    %228 = arith.negf %227 : vector<4x96xf32>
    %229 = math.exp %228 : vector<4x96xf32>
    %cst_37 = arith.constant 1.000000e+00 : f32
    %230 = vector.broadcast %cst_37 : f32 to vector<4x96xf32>
    %231 = arith.addf %230, %229 : vector<4x96xf32>
    %232 = arith.divf %230, %231 : vector<4x96xf32>
    %233 = vector.extract_strided_slice %218 {offsets = [0, 96], sizes = [4, 32], strides = [1, 1]} : vector<4x128xf32> to vector<4x32xf32>
    %234 = math.tanh %233 : vector<4x32xf32>
    %235 = vector.extract_strided_slice %220 {offsets = [0, 96], sizes = [4, 32], strides = [1, 1]} : vector<4x128xf32> to vector<4x32xf32>
    %236 = math.tanh %235 : vector<4x32xf32>
    %237 = vector.extract_strided_slice %226 {offsets = [0, 32], sizes = [4, 32], strides = [1, 1]} : vector<4x96xf32> to vector<4x32xf32>
    %238 = arith.mulf %237, %199 : vector<4x32xf32>
    %239 = vector.extract_strided_slice %226 {offsets = [0, 0], sizes = [4, 32], strides = [1, 1]} : vector<4x96xf32> to vector<4x32xf32>
    %240 = arith.mulf %239, %234 : vector<4x32xf32>
    %241 = arith.addf %238, %240 : vector<4x32xf32>
    %242 = vector.extract_strided_slice %232 {offsets = [0, 32], sizes = [4, 32], strides = [1, 1]} : vector<4x96xf32> to vector<4x32xf32>
    %243 = arith.mulf %242, %204 : vector<4x32xf32>
    %244 = vector.extract_strided_slice %232 {offsets = [0, 0], sizes = [4, 32], strides = [1, 1]} : vector<4x96xf32> to vector<4x32xf32>
    %245 = arith.mulf %244, %236 : vector<4x32xf32>
    %246 = arith.addf %243, %245 : vector<4x32xf32>
    %247 = vector.extract_strided_slice %226 {offsets = [0, 64], sizes = [4, 32], strides = [1, 1]} : vector<4x96xf32> to vector<4x32xf32>
    %248 = math.tanh %241 : vector<4x32xf32>
    %249 = arith.mulf %247, %248 : vector<4x32xf32>
    %250 = vector.extract_strided_slice %232 {offsets = [0, 64], sizes = [4, 32], strides = [1, 1]} : vector<4x96xf32> to vector<4x32xf32>
    %251 = math.tanh %246 : vector<4x32xf32>
    %252 = arith.mulf %250, %251 : vector<4x32xf32>
    %c20_38 = arith.constant 20 : index
    %c0_39 = arith.constant 0 : index
    %253 = vector.load %arg10[%c20_38, %c0_39] : memref<32x64xf32, #tpu.memory_space<vmem>>, vector<4x32xf32>
    tpu.vector_store %arg10[%c20_38, %c0_39], %249 {strides = array<i32>} : memref<32x64xf32, #tpu.memory_space<vmem>>, vector<4x32xf32>,
    %c8_40 = arith.constant 8 : index
    %c32_41 = arith.constant 32 : index
    %254 = vector.load %arg10[%c8_40, %c32_41] : memref<32x64xf32, #tpu.memory_space<vmem>>, vector<4x32xf32>
    tpu.vector_store %arg10[%c8_40, %c32_41], %252 {strides = array<i32>} : memref<32x64xf32, #tpu.memory_space<vmem>>, vector<4x32xf32>,
    %255 = tpu.concatenate %249, %252 in 1 : vector<4x32xf32>, vector<4x32xf32> -> vector<4x64xf32>
    %256 = vector.extract_strided_slice %5 {offsets = [24, 0], sizes = [4, 128], strides = [1, 1]} : vector<32x256xf32> to vector<4x128xf32>
    %257 = vector.extract_strided_slice %5 {offsets = [4, 128], sizes = [4, 128], strides = [1, 1]} : vector<32x256xf32> to vector<4x128xf32>
    %cst_42 = arith.constant dense<0.000000e+00> : vector<4x256xf32>
    %258 = tpu.matmul %255, %6, %cst_42 {dimension_numbers = #tpu.dot_dimension_numbers<[1], [0], [0], [1], [0, 0, 1, 1], [], []>} : vector<4x64xf32>, vector<64x256xf32>, vector<4x256xf32> -> vector<4x256xf32>
    %259 = vector.extract_strided_slice %258 {offsets = [0, 0], sizes = [4, 128], strides = [1, 1]} : vector<4x256xf32> to vector<4x128xf32>
    %260 = arith.addf %256, %259 : vector<4x128xf32>
    %261 = vector.extract_strided_slice %258 {offsets = [0, 128], sizes = [4, 128], strides = [1, 1]} : vector<4x256xf32> to vector<4x128xf32>
    %262 = arith.addf %257, %261 : vector<4x128xf32>
    %263 = vector.extract_strided_slice %260 {offsets = [0, 0], sizes = [4, 96], strides = [1, 1]} : vector<4x128xf32> to vector<4x96xf32>
    %264 = arith.negf %263 : vector<4x96xf32>
    %265 = math.exp %264 : vector<4x96xf32>
    %cst_43 = arith.constant 1.000000e+00 : f32
    %266 = vector.broadcast %cst_43 : f32 to vector<4x96xf32>
    %267 = arith.addf %266, %265 : vector<4x96xf32>
    %268 = arith.divf %266, %267 : vector<4x96xf32>
    %269 = vector.extract_strided_slice %262 {offsets = [0, 0], sizes = [4, 96], strides = [1, 1]} : vector<4x128xf32> to vector<4x96xf32>
    %270 = arith.negf %269 : vector<4x96xf32>
    %271 = math.exp %270 : vector<4x96xf32>
    %cst_44 = arith.constant 1.000000e+00 : f32
    %272 = vector.broadcast %cst_44 : f32 to vector<4x96xf32>
    %273 = arith.addf %272, %271 : vector<4x96xf32>
    %274 = arith.divf %272, %273 : vector<4x96xf32>
    %275 = vector.extract_strided_slice %260 {offsets = [0, 96], sizes = [4, 32], strides = [1, 1]} : vector<4x128xf32> to vector<4x32xf32>
    %276 = math.tanh %275 : vector<4x32xf32>
    %277 = vector.extract_strided_slice %262 {offsets = [0, 96], sizes = [4, 32], strides = [1, 1]} : vector<4x128xf32> to vector<4x32xf32>
    %278 = math.tanh %277 : vector<4x32xf32>
    %279 = vector.extract_strided_slice %268 {offsets = [0, 32], sizes = [4, 32], strides = [1, 1]} : vector<4x96xf32> to vector<4x32xf32>
    %280 = arith.mulf %279, %241 : vector<4x32xf32>
    %281 = vector.extract_strided_slice %268 {offsets = [0, 0], sizes = [4, 32], strides = [1, 1]} : vector<4x96xf32> to vector<4x32xf32>
    %282 = arith.mulf %281, %276 : vector<4x32xf32>
    %283 = arith.addf %280, %282 : vector<4x32xf32>
    %284 = vector.extract_strided_slice %274 {offsets = [0, 32], sizes = [4, 32], strides = [1, 1]} : vector<4x96xf32> to vector<4x32xf32>
    %285 = arith.mulf %284, %246 : vector<4x32xf32>
    %286 = vector.extract_strided_slice %274 {offsets = [0, 0], sizes = [4, 32], strides = [1, 1]} : vector<4x96xf32> to vector<4x32xf32>
    %287 = arith.mulf %286, %278 : vector<4x32xf32>
    %288 = arith.addf %285, %287 : vector<4x32xf32>
    %289 = vector.extract_strided_slice %268 {offsets = [0, 64], sizes = [4, 32], strides = [1, 1]} : vector<4x96xf32> to vector<4x32xf32>
    %290 = math.tanh %283 : vector<4x32xf32>
    %291 = arith.mulf %289, %290 : vector<4x32xf32>
    %292 = vector.extract_strided_slice %274 {offsets = [0, 64], sizes = [4, 32], strides = [1, 1]} : vector<4x96xf32> to vector<4x32xf32>
    %293 = math.tanh %288 : vector<4x32xf32>
    %294 = arith.mulf %292, %293 : vector<4x32xf32>
    %c24_45 = arith.constant 24 : index
    %c0_46 = arith.constant 0 : index
    %295 = vector.load %arg10[%c24_45, %c0_46] : memref<32x64xf32, #tpu.memory_space<vmem>>, vector<4x32xf32>
    tpu.vector_store %arg10[%c24_45, %c0_46], %291 {strides = array<i32>} : memref<32x64xf32, #tpu.memory_space<vmem>>, vector<4x32xf32>,
    %c4_47 = arith.constant 4 : index
    %c32_48 = arith.constant 32 : index
    %296 = vector.load %arg10[%c4_47, %c32_48] : memref<32x64xf32, #tpu.memory_space<vmem>>, vector<4x32xf32>
    tpu.vector_store %arg10[%c4_47, %c32_48], %294 {strides = array<i32>} : memref<32x64xf32, #tpu.memory_space<vmem>>, vector<4x32xf32>,
    %297 = tpu.concatenate %291, %294 in 1 : vector<4x32xf32>, vector<4x32xf32> -> vector<4x64xf32>
    %298 = vector.extract_strided_slice %5 {offsets = [28, 0], sizes = [4, 128], strides = [1, 1]} : vector<32x256xf32> to vector<4x128xf32>
    %299 = vector.extract_strided_slice %5 {offsets = [0, 128], sizes = [4, 128], strides = [1, 1]} : vector<32x256xf32> to vector<4x128xf32>
    %cst_49 = arith.constant dense<0.000000e+00> : vector<4x256xf32>
    %300 = tpu.matmul %297, %6, %cst_49 {dimension_numbers = #tpu.dot_dimension_numbers<[1], [0], [0], [1], [0, 0, 1, 1], [], []>} : vector<4x64xf32>, vector<64x256xf32>, vector<4x256xf32> -> vector<4x256xf32>
    %301 = vector.extract_strided_slice %300 {offsets = [0, 0], sizes = [4, 128], strides = [1, 1]} : vector<4x256xf32> to vector<4x128xf32>
    %302 = arith.addf %298, %301 : vector<4x128xf32>
    %303 = vector.extract_strided_slice %300 {offsets = [0, 128], sizes = [4, 128], strides = [1, 1]} : vector<4x256xf32> to vector<4x128xf32>
    %304 = arith.addf %299, %303 : vector<4x128xf32>
    %305 = vector.extract_strided_slice %302 {offsets = [0, 0], sizes = [4, 96], strides = [1, 1]} : vector<4x128xf32> to vector<4x96xf32>
    %306 = arith.negf %305 : vector<4x96xf32>
    %307 = math.exp %306 : vector<4x96xf32>
    %cst_50 = arith.constant 1.000000e+00 : f32
    %308 = vector.broadcast %cst_50 : f32 to vector<4x96xf32>
    %309 = arith.addf %308, %307 : vector<4x96xf32>
    %310 = arith.divf %308, %309 : vector<4x96xf32>
    %311 = vector.extract_strided_slice %304 {offsets = [0, 0], sizes = [4, 96], strides = [1, 1]} : vector<4x128xf32> to vector<4x96xf32>
    %312 = arith.negf %311 : vector<4x96xf32>
    %313 = math.exp %312 : vector<4x96xf32>
    %cst_51 = arith.constant 1.000000e+00 : f32
    %314 = vector.broadcast %cst_51 : f32 to vector<4x96xf32>
    %315 = arith.addf %314, %313 : vector<4x96xf32>
    %316 = arith.divf %314, %315 : vector<4x96xf32>
    %317 = vector.extract_strided_slice %302 {offsets = [0, 96], sizes = [4, 32], strides = [1, 1]} : vector<4x128xf32> to vector<4x32xf32>
    %318 = math.tanh %317 : vector<4x32xf32>
    %319 = vector.extract_strided_slice %304 {offsets = [0, 96], sizes = [4, 32], strides = [1, 1]} : vector<4x128xf32> to vector<4x32xf32>
    %320 = math.tanh %319 : vector<4x32xf32>
    %321 = vector.extract_strided_slice %310 {offsets = [0, 32], sizes = [4, 32], strides = [1, 1]} : vector<4x96xf32> to vector<4x32xf32>
    %322 = arith.mulf %321, %283 : vector<4x32xf32>
    %323 = vector.extract_strided_slice %310 {offsets = [0, 0], sizes = [4, 32], strides = [1, 1]} : vector<4x96xf32> to vector<4x32xf32>
    %324 = arith.mulf %323, %318 : vector<4x32xf32>
    %325 = arith.addf %322, %324 : vector<4x32xf32>
    %326 = vector.extract_strided_slice %316 {offsets = [0, 32], sizes = [4, 32], strides = [1, 1]} : vector<4x96xf32> to vector<4x32xf32>
    %327 = arith.mulf %326, %288 : vector<4x32xf32>
    %328 = vector.extract_strided_slice %316 {offsets = [0, 0], sizes = [4, 32], strides = [1, 1]} : vector<4x96xf32> to vector<4x32xf32>
    %329 = arith.mulf %328, %320 : vector<4x32xf32>
    %330 = arith.addf %327, %329 : vector<4x32xf32>
    %331 = vector.extract_strided_slice %310 {offsets = [0, 64], sizes = [4, 32], strides = [1, 1]} : vector<4x96xf32> to vector<4x32xf32>
    %332 = math.tanh %325 : vector<4x32xf32>
    %333 = arith.mulf %331, %332 : vector<4x32xf32>
    %334 = vector.extract_strided_slice %316 {offsets = [0, 64], sizes = [4, 32], strides = [1, 1]} : vector<4x96xf32> to vector<4x32xf32>
    %335 = math.tanh %330 : vector<4x32xf32>
    %336 = arith.mulf %334, %335 : vector<4x32xf32>
    %c28_52 = arith.constant 28 : index
    %c0_53 = arith.constant 0 : index
    %337 = vector.load %arg10[%c28_52, %c0_53] : memref<32x64xf32, #tpu.memory_space<vmem>>, vector<4x32xf32>
    tpu.vector_store %arg10[%c28_52, %c0_53], %333 {strides = array<i32>} : memref<32x64xf32, #tpu.memory_space<vmem>>, vector<4x32xf32>,
    %c0_54 = arith.constant 0 : index
    %c32_55 = arith.constant 32 : index
    %338 = vector.load %arg10[%c0_54, %c32_55] : memref<32x64xf32, #tpu.memory_space<vmem>>, vector<4x32xf32>
    tpu.vector_store %arg10[%c0_54, %c32_55], %336 {strides = array<i32>} : memref<32x64xf32, #tpu.memory_space<vmem>>, vector<4x32xf32>,
    %c0_56 = arith.constant 0 : index
    %c0_57 = arith.constant 0 : index
    %339 = vector.load %arg10[%c0_56, %c0_57] : memref<32x64xf32, #tpu.memory_space<vmem>>, vector<32x64xf32>
    %c0_58 = arith.constant 0 : index
    %c0_59 = arith.constant 0 : index
    %340 = vector.load %arg4[%c0_58, %c0_59] : memref<64x256xf32, #tpu.memory_space<vmem>>, vector<64x128xf32>
    %cst_60 = arith.constant dense<0.000000e+00> : vector<32x128xf32>
    %341 = tpu.matmul %339, %340, %cst_60 {dimension_numbers = #tpu.dot_dimension_numbers<[1], [0], [0], [1], [0, 0, 1, 1], [], []>} : vector<32x64xf32>, vector<64x128xf32>, vector<32x128xf32> -> vector<32x128xf32>
    %c0_61 = arith.constant 0 : index
    %c0_62 = arith.constant 0 : index
    %342 = vector.load %arg6[%c0_61, %c0_62] : memref<1x256xf32, #tpu.memory_space<vmem>>, vector<1x128xf32>
    %343 = vector.broadcast %342 : vector<1x128xf32> to vector<32x128xf32>
    %344 = arith.addf %341, %343 : vector<32x128xf32>
    %c0_63 = arith.constant 0 : index
    %c0_64 = arith.constant 0 : index
    %345 = vector.load %arg5[%c0_63, %c0_64] : memref<64x256xf32, #tpu.memory_space<vmem>>, vector<32x128xf32>
    %cst_65 = arith.constant 0.000000e+00 : f32
    %346 = vector.broadcast %cst_65 : f32 to vector<4x32xf32>
    %347 = vector.extract_strided_slice %344 {offsets = [0, 0], sizes = [4, 128], strides = [1, 1]} : vector<32x128xf32> to vector<4x128xf32>
    %348 = vector.extract_strided_slice %347 {offsets = [0, 0], sizes = [4, 96], strides = [1, 1]} : vector<4x128xf32> to vector<4x96xf32>
    %349 = arith.negf %348 : vector<4x96xf32>
    %350 = math.exp %349 : vector<4x96xf32>
    %cst_66 = arith.constant 1.000000e+00 : f32
    %351 = vector.broadcast %cst_66 : f32 to vector<4x96xf32>
    %352 = arith.addf %351, %350 : vector<4x96xf32>
    %353 = arith.divf %351, %352 : vector<4x96xf32>
    %354 = vector.extract_strided_slice %347 {offsets = [0, 96], sizes = [4, 32], strides = [1, 1]} : vector<4x128xf32> to vector<4x32xf32>
    %355 = math.tanh %354 : vector<4x32xf32>
    %356 = vector.extract_strided_slice %353 {offsets = [0, 32], sizes = [4, 32], strides = [1, 1]} : vector<4x96xf32> to vector<4x32xf32>
    %357 = arith.mulf %356, %346 : vector<4x32xf32>
    %358 = vector.extract_strided_slice %353 {offsets = [0, 0], sizes = [4, 32], strides = [1, 1]} : vector<4x96xf32> to vector<4x32xf32>
    %359 = arith.mulf %358, %355 : vector<4x32xf32>
    %360 = arith.addf %357, %359 : vector<4x32xf32>
    %361 = vector.extract_strided_slice %353 {offsets = [0, 64], sizes = [4, 32], strides = [1, 1]} : vector<4x96xf32> to vector<4x32xf32>
    %362 = math.tanh %360 : vector<4x32xf32>
    %363 = arith.mulf %361, %362 : vector<4x32xf32>
    %364 = vector.extract_strided_slice %344 {offsets = [4, 0], sizes = [4, 128], strides = [1, 1]} : vector<32x128xf32> to vector<4x128xf32>
    %cst_67 = arith.constant dense<0.000000e+00> : vector<4x128xf32>
    %365 = tpu.matmul %363, %345, %cst_67 {dimension_numbers = #tpu.dot_dimension_numbers<[1], [0], [0], [1], [0, 0, 1, 1], [], []>} : vector<4x32xf32>, vector<32x128xf32>, vector<4x128xf32> -> vector<4x128xf32>
    %366 = arith.addf %364, %365 : vector<4x128xf32>
    %367 = vector.extract_strided_slice %366 {offsets = [0, 0], sizes = [4, 96], strides = [1, 1]} : vector<4x128xf32> to vector<4x96xf32>
    %368 = arith.negf %367 : vector<4x96xf32>
    %369 = math.exp %368 : vector<4x96xf32>
    %cst_68 = arith.constant 1.000000e+00 : f32
    %370 = vector.broadcast %cst_68 : f32 to vector<4x96xf32>
    %371 = arith.addf %370, %369 : vector<4x96xf32>
    %372 = arith.divf %370, %371 : vector<4x96xf32>
    %373 = vector.extract_strided_slice %366 {offsets = [0, 96], sizes = [4, 32], strides = [1, 1]} : vector<4x128xf32> to vector<4x32xf32>
    %374 = math.tanh %373 : vector<4x32xf32>
    %375 = vector.extract_strided_slice %372 {offsets = [0, 32], sizes = [4, 32], strides = [1, 1]} : vector<4x96xf32> to vector<4x32xf32>
    %376 = arith.mulf %375, %360 : vector<4x32xf32>
    %377 = vector.extract_strided_slice %372 {offsets = [0, 0], sizes = [4, 32], strides = [1, 1]} : vector<4x96xf32> to vector<4x32xf32>
    %378 = arith.mulf %377, %374 : vector<4x32xf32>
    %379 = arith.addf %376, %378 : vector<4x32xf32>
    %380 = vector.extract_strided_slice %372 {offsets = [0, 64], sizes = [4, 32], strides = [1, 1]} : vector<4x96xf32> to vector<4x32xf32>
    %381 = math.tanh %379 : vector<4x32xf32>
    %382 = arith.mulf %380, %381 : vector<4x32xf32>
    %383 = vector.extract_strided_slice %344 {offsets = [8, 0], sizes = [4, 128], strides = [1, 1]} : vector<32x128xf32> to vector<4x128xf32>
    %cst_69 = arith.constant dense<0.000000e+00> : vector<4x128xf32>
    %384 = tpu.matmul %382, %345, %cst_69 {dimension_numbers = #tpu.dot_dimension_numbers<[1], [0], [0], [1], [0, 0, 1, 1], [], []>} : vector<4x32xf32>, vector<32x128xf32>, vector<4x128xf32> -> vector<4x128xf32>
    %385 = arith.addf %383, %384 : vector<4x128xf32>
    %386 = vector.extract_strided_slice %385 {offsets = [0, 0], sizes = [4, 96], strides = [1, 1]} : vector<4x128xf32> to vector<4x96xf32>
    %387 = arith.negf %386 : vector<4x96xf32>
    %388 = math.exp %387 : vector<4x96xf32>
    %cst_70 = arith.constant 1.000000e+00 : f32
    %389 = vector.broadcast %cst_70 : f32 to vector<4x96xf32>
    %390 = arith.addf %389, %388 : vector<4x96xf32>
    %391 = arith.divf %389, %390 : vector<4x96xf32>
    %392 = vector.extract_strided_slice %385 {offsets = [0, 96], sizes = [4, 32], strides = [1, 1]} : vector<4x128xf32> to vector<4x32xf32>
    %393 = math.tanh %392 : vector<4x32xf32>
    %394 = vector.extract_strided_slice %391 {offsets = [0, 32], sizes = [4, 32], strides = [1, 1]} : vector<4x96xf32> to vector<4x32xf32>
    %395 = arith.mulf %394, %379 : vector<4x32xf32>
    %396 = vector.extract_strided_slice %391 {offsets = [0, 0], sizes = [4, 32], strides = [1, 1]} : vector<4x96xf32> to vector<4x32xf32>
    %397 = arith.mulf %396, %393 : vector<4x32xf32>
    %398 = arith.addf %395, %397 : vector<4x32xf32>
    %399 = vector.extract_strided_slice %391 {offsets = [0, 64], sizes = [4, 32], strides = [1, 1]} : vector<4x96xf32> to vector<4x32xf32>
    %400 = math.tanh %398 : vector<4x32xf32>
    %401 = arith.mulf %399, %400 : vector<4x32xf32>
    %402 = vector.extract_strided_slice %344 {offsets = [12, 0], sizes = [4, 128], strides = [1, 1]} : vector<32x128xf32> to vector<4x128xf32>
    %cst_71 = arith.constant dense<0.000000e+00> : vector<4x128xf32>
    %403 = tpu.matmul %401, %345, %cst_71 {dimension_numbers = #tpu.dot_dimension_numbers<[1], [0], [0], [1], [0, 0, 1, 1], [], []>} : vector<4x32xf32>, vector<32x128xf32>, vector<4x128xf32> -> vector<4x128xf32>
    %404 = arith.addf %402, %403 : vector<4x128xf32>
    %405 = vector.extract_strided_slice %404 {offsets = [0, 0], sizes = [4, 96], strides = [1, 1]} : vector<4x128xf32> to vector<4x96xf32>
    %406 = arith.negf %405 : vector<4x96xf32>
    %407 = math.exp %406 : vector<4x96xf32>
    %cst_72 = arith.constant 1.000000e+00 : f32
    %408 = vector.broadcast %cst_72 : f32 to vector<4x96xf32>
    %409 = arith.addf %408, %407 : vector<4x96xf32>
    %410 = arith.divf %408, %409 : vector<4x96xf32>
    %411 = vector.extract_strided_slice %404 {offsets = [0, 96], sizes = [4, 32], strides = [1, 1]} : vector<4x128xf32> to vector<4x32xf32>
    %412 = math.tanh %411 : vector<4x32xf32>
    %413 = vector.extract_strided_slice %410 {offsets = [0, 32], sizes = [4, 32], strides = [1, 1]} : vector<4x96xf32> to vector<4x32xf32>
    %414 = arith.mulf %413, %398 : vector<4x32xf32>
    %415 = vector.extract_strided_slice %410 {offsets = [0, 0], sizes = [4, 32], strides = [1, 1]} : vector<4x96xf32> to vector<4x32xf32>
    %416 = arith.mulf %415, %412 : vector<4x32xf32>
    %417 = arith.addf %414, %416 : vector<4x32xf32>
    %418 = vector.extract_strided_slice %410 {offsets = [0, 64], sizes = [4, 32], strides = [1, 1]} : vector<4x96xf32> to vector<4x32xf32>
    %419 = math.tanh %417 : vector<4x32xf32>
    %420 = arith.mulf %418, %419 : vector<4x32xf32>
    %421 = vector.extract_strided_slice %344 {offsets = [16, 0], sizes = [4, 128], strides = [1, 1]} : vector<32x128xf32> to vector<4x128xf32>
    %cst_73 = arith.constant dense<0.000000e+00> : vector<4x128xf32>
    %422 = tpu.matmul %420, %345, %cst_73 {dimension_numbers = #tpu.dot_dimension_numbers<[1], [0], [0], [1], [0, 0, 1, 1], [], []>} : vector<4x32xf32>, vector<32x128xf32>, vector<4x128xf32> -> vector<4x128xf32>
    %423 = arith.addf %421, %422 : vector<4x128xf32>
    %424 = vector.extract_strided_slice %423 {offsets = [0, 0], sizes = [4, 96], strides = [1, 1]} : vector<4x128xf32> to vector<4x96xf32>
    %425 = arith.negf %424 : vector<4x96xf32>
    %426 = math.exp %425 : vector<4x96xf32>
    %cst_74 = arith.constant 1.000000e+00 : f32
    %427 = vector.broadcast %cst_74 : f32 to vector<4x96xf32>
    %428 = arith.addf %427, %426 : vector<4x96xf32>
    %429 = arith.divf %427, %428 : vector<4x96xf32>
    %430 = vector.extract_strided_slice %423 {offsets = [0, 96], sizes = [4, 32], strides = [1, 1]} : vector<4x128xf32> to vector<4x32xf32>
    %431 = math.tanh %430 : vector<4x32xf32>
    %432 = vector.extract_strided_slice %429 {offsets = [0, 32], sizes = [4, 32], strides = [1, 1]} : vector<4x96xf32> to vector<4x32xf32>
    %433 = arith.mulf %432, %417 : vector<4x32xf32>
    %434 = vector.extract_strided_slice %429 {offsets = [0, 0], sizes = [4, 32], strides = [1, 1]} : vector<4x96xf32> to vector<4x32xf32>
    %435 = arith.mulf %434, %431 : vector<4x32xf32>
    %436 = arith.addf %433, %435 : vector<4x32xf32>
    %437 = vector.extract_strided_slice %429 {offsets = [0, 64], sizes = [4, 32], strides = [1, 1]} : vector<4x96xf32> to vector<4x32xf32>
    %438 = math.tanh %436 : vector<4x32xf32>
    %439 = arith.mulf %437, %438 : vector<4x32xf32>
    %440 = vector.extract_strided_slice %344 {offsets = [20, 0], sizes = [4, 128], strides = [1, 1]} : vector<32x128xf32> to vector<4x128xf32>
    %cst_75 = arith.constant dense<0.000000e+00> : vector<4x128xf32>
    %441 = tpu.matmul %439, %345, %cst_75 {dimension_numbers = #tpu.dot_dimension_numbers<[1], [0], [0], [1], [0, 0, 1, 1], [], []>} : vector<4x32xf32>, vector<32x128xf32>, vector<4x128xf32> -> vector<4x128xf32>
    %442 = arith.addf %440, %441 : vector<4x128xf32>
    %443 = vector.extract_strided_slice %442 {offsets = [0, 0], sizes = [4, 96], strides = [1, 1]} : vector<4x128xf32> to vector<4x96xf32>
    %444 = arith.negf %443 : vector<4x96xf32>
    %445 = math.exp %444 : vector<4x96xf32>
    %cst_76 = arith.constant 1.000000e+00 : f32
    %446 = vector.broadcast %cst_76 : f32 to vector<4x96xf32>
    %447 = arith.addf %446, %445 : vector<4x96xf32>
    %448 = arith.divf %446, %447 : vector<4x96xf32>
    %449 = vector.extract_strided_slice %442 {offsets = [0, 96], sizes = [4, 32], strides = [1, 1]} : vector<4x128xf32> to vector<4x32xf32>
    %450 = math.tanh %449 : vector<4x32xf32>
    %451 = vector.extract_strided_slice %448 {offsets = [0, 32], sizes = [4, 32], strides = [1, 1]} : vector<4x96xf32> to vector<4x32xf32>
    %452 = arith.mulf %451, %436 : vector<4x32xf32>
    %453 = vector.extract_strided_slice %448 {offsets = [0, 0], sizes = [4, 32], strides = [1, 1]} : vector<4x96xf32> to vector<4x32xf32>
    %454 = arith.mulf %453, %450 : vector<4x32xf32>
    %455 = arith.addf %452, %454 : vector<4x32xf32>
    %456 = vector.extract_strided_slice %448 {offsets = [0, 64], sizes = [4, 32], strides = [1, 1]} : vector<4x96xf32> to vector<4x32xf32>
    %457 = math.tanh %455 : vector<4x32xf32>
    %458 = arith.mulf %456, %457 : vector<4x32xf32>
    %459 = vector.extract_strided_slice %344 {offsets = [24, 0], sizes = [4, 128], strides = [1, 1]} : vector<32x128xf32> to vector<4x128xf32>
    %cst_77 = arith.constant dense<0.000000e+00> : vector<4x128xf32>
    %460 = tpu.matmul %458, %345, %cst_77 {dimension_numbers = #tpu.dot_dimension_numbers<[1], [0], [0], [1], [0, 0, 1, 1], [], []>} : vector<4x32xf32>, vector<32x128xf32>, vector<4x128xf32> -> vector<4x128xf32>
    %461 = arith.addf %459, %460 : vector<4x128xf32>
    %462 = vector.extract_strided_slice %461 {offsets = [0, 0], sizes = [4, 96], strides = [1, 1]} : vector<4x128xf32> to vector<4x96xf32>
    %463 = arith.negf %462 : vector<4x96xf32>
    %464 = math.exp %463 : vector<4x96xf32>
    %cst_78 = arith.constant 1.000000e+00 : f32
    %465 = vector.broadcast %cst_78 : f32 to vector<4x96xf32>
    %466 = arith.addf %465, %464 : vector<4x96xf32>
    %467 = arith.divf %465, %466 : vector<4x96xf32>
    %468 = vector.extract_strided_slice %461 {offsets = [0, 96], sizes = [4, 32], strides = [1, 1]} : vector<4x128xf32> to vector<4x32xf32>
    %469 = math.tanh %468 : vector<4x32xf32>
    %470 = vector.extract_strided_slice %467 {offsets = [0, 32], sizes = [4, 32], strides = [1, 1]} : vector<4x96xf32> to vector<4x32xf32>
    %471 = arith.mulf %470, %455 : vector<4x32xf32>
    %472 = vector.extract_strided_slice %467 {offsets = [0, 0], sizes = [4, 32], strides = [1, 1]} : vector<4x96xf32> to vector<4x32xf32>
    %473 = arith.mulf %472, %469 : vector<4x32xf32>
    %474 = arith.addf %471, %473 : vector<4x32xf32>
    %475 = vector.extract_strided_slice %467 {offsets = [0, 64], sizes = [4, 32], strides = [1, 1]} : vector<4x96xf32> to vector<4x32xf32>
    %476 = math.tanh %474 : vector<4x32xf32>
    %477 = arith.mulf %475, %476 : vector<4x32xf32>
    %478 = vector.extract_strided_slice %344 {offsets = [28, 0], sizes = [4, 128], strides = [1, 1]} : vector<32x128xf32> to vector<4x128xf32>
    %cst_79 = arith.constant dense<0.000000e+00> : vector<4x128xf32>
    %479 = tpu.matmul %477, %345, %cst_79 {dimension_numbers = #tpu.dot_dimension_numbers<[1], [0], [0], [1], [0, 0, 1, 1], [], []>} : vector<4x32xf32>, vector<32x128xf32>, vector<4x128xf32> -> vector<4x128xf32>
    %480 = arith.addf %478, %479 : vector<4x128xf32>
    %481 = vector.extract_strided_slice %480 {offsets = [0, 0], sizes = [4, 96], strides = [1, 1]} : vector<4x128xf32> to vector<4x96xf32>
    %482 = arith.negf %481 : vector<4x96xf32>
    %483 = math.exp %482 : vector<4x96xf32>
    %cst_80 = arith.constant 1.000000e+00 : f32
    %484 = vector.broadcast %cst_80 : f32 to vector<4x96xf32>
    %485 = arith.addf %484, %483 : vector<4x96xf32>
    %486 = arith.divf %484, %485 : vector<4x96xf32>
    %487 = vector.extract_strided_slice %480 {offsets = [0, 96], sizes = [4, 32], strides = [1, 1]} : vector<4x128xf32> to vector<4x32xf32>
    %488 = math.tanh %487 : vector<4x32xf32>
    %489 = vector.extract_strided_slice %486 {offsets = [0, 32], sizes = [4, 32], strides = [1, 1]} : vector<4x96xf32> to vector<4x32xf32>
    %490 = arith.mulf %489, %474 : vector<4x32xf32>
    %491 = vector.extract_strided_slice %486 {offsets = [0, 0], sizes = [4, 32], strides = [1, 1]} : vector<4x96xf32> to vector<4x32xf32>
    %492 = arith.mulf %491, %488 : vector<4x32xf32>
    %493 = arith.addf %490, %492 : vector<4x32xf32>
    %494 = vector.extract_strided_slice %486 {offsets = [0, 64], sizes = [4, 32], strides = [1, 1]} : vector<4x96xf32> to vector<4x32xf32>
    %495 = math.tanh %493 : vector<4x32xf32>
    %496 = arith.mulf %494, %495 : vector<4x32xf32>
    %497 = vector.extract_strided_slice %339 {offsets = [28, 0], sizes = [4, 64], strides = [1, 1]} : vector<32x64xf32> to vector<4x64xf32>
    %c0_81 = arith.constant 0 : index
    %c128 = arith.constant 128 : index
    %498 = vector.load %arg4[%c0_81, %c128] : memref<64x256xf32, #tpu.memory_space<vmem>>, vector<64x128xf32>
    %cst_82 = arith.constant dense<0.000000e+00> : vector<4x128xf32>
    %499 = tpu.matmul %497, %498, %cst_82 {dimension_numbers = #tpu.dot_dimension_numbers<[1], [0], [0], [1], [0, 0, 1, 1], [], []>} : vector<4x64xf32>, vector<64x128xf32>, vector<4x128xf32> -> vector<4x128xf32>
    %c0_83 = arith.constant 0 : index
    %c128_84 = arith.constant 128 : index
    %500 = vector.load %arg6[%c0_83, %c128_84] : memref<1x256xf32, #tpu.memory_space<vmem>>, vector<1x128xf32>
    %501 = vector.broadcast %500 : vector<1x128xf32> to vector<4x128xf32>
    %502 = arith.addf %499, %501 : vector<4x128xf32>
    %503 = vector.extract_strided_slice %502 {offsets = [0, 0], sizes = [4, 96], strides = [1, 1]} : vector<4x128xf32> to vector<4x96xf32>
    %504 = arith.negf %503 : vector<4x96xf32>
    %505 = math.exp %504 : vector<4x96xf32>
    %cst_85 = arith.constant 1.000000e+00 : f32
    %506 = vector.broadcast %cst_85 : f32 to vector<4x96xf32>
    %507 = arith.addf %506, %505 : vector<4x96xf32>
    %508 = arith.divf %506, %507 : vector<4x96xf32>
    %509 = vector.extract_strided_slice %502 {offsets = [0, 96], sizes = [4, 32], strides = [1, 1]} : vector<4x128xf32> to vector<4x32xf32>
    %510 = math.tanh %509 : vector<4x32xf32>
    %511 = vector.extract_strided_slice %508 {offsets = [0, 0], sizes = [4, 32], strides = [1, 1]} : vector<4x96xf32> to vector<4x32xf32>
    %512 = arith.mulf %511, %510 : vector<4x32xf32>
    %513 = vector.extract_strided_slice %508 {offsets = [0, 64], sizes = [4, 32], strides = [1, 1]} : vector<4x96xf32> to vector<4x32xf32>
    %514 = math.tanh %512 : vector<4x32xf32>
    %515 = arith.mulf %513, %514 : vector<4x32xf32>
    %516 = tpu.concatenate %496, %515 in 1 : vector<4x32xf32>, vector<4x32xf32> -> vector<4x64xf32>
    %517 = vector.extract_strided_slice %516 {offsets = [0, 0], sizes = [2, 64], strides = [1, 1]} : vector<4x64xf32> to vector<2x64xf32>
    %518 = vector.extract_strided_slice %516 {offsets = [2, 0], sizes = [2, 64], strides = [1, 1]} : vector<4x64xf32> to vector<2x64xf32>
    %519 = tpu.concatenate %517, %518 in 1 : vector<2x64xf32>, vector<2x64xf32> -> vector<2x128xf32>
    %c0_86 = arith.constant 0 : index
    %c0_87 = arith.constant 0 : index
    %520 = vector.load %arg7[%c0_86, %c0_87] : memref<128x3xf32, #tpu.memory_space<vmem>>, vector<128x3xf32>
    %cst_88 = arith.constant dense<0.000000e+00> : vector<2x3xf32>
    %521 = tpu.matmul %519, %520, %cst_88 {dimension_numbers = #tpu.dot_dimension_numbers<[1], [0], [0], [1], [0, 0, 1, 1], [], []>} : vector<2x128xf32>, vector<128x3xf32>, vector<2x3xf32> -> vector<2x3xf32>
    %c0_89 = arith.constant 0 : index
    %c0_90 = arith.constant 0 : index
    %522 = vector.load %arg8[%c0_89, %c0_90] : memref<1x3xf32, #tpu.memory_space<vmem>>, vector<1x3xf32>
    %523 = vector.broadcast %522 : vector<1x3xf32> to vector<2x3xf32>
    %524 = arith.addf %521, %523 : vector<2x3xf32>
    %c0_91 = arith.constant 0 : index
    %c0_92 = arith.constant 0 : index
    %525 = vector.load %arg9[%c0_91, %c0_92] : memref<2x3xf32, #tpu.memory_space<vmem>>, vector<2x3xf32>
    tpu.vector_store %arg9[%c0_91, %c0_92], %524 {strides = array<i32>} : memref<2x3xf32, #tpu.memory_space<vmem>>, vector<2x3xf32>,
    return
  }
}

</mosaic_0001>

<bundles_post_ra>
// kernel: _lambda_.1
= control target key start
LH: loop header
LB: loop body
LE: loop exit
PB: predicated region body
PF: predicated region fallthrough
CT: control target
= control target key end

     0   :  { %14 = vsyncpa [#allocation4], 0  ;;  %s3075_s0 = inlined_call_operand.vmem [shape: f32[32,16], index: 0, kind: input, shape index: {}]   ;;  %s3076_s1 = inlined_call_operand.hbm [shape: f32[16,256], index: 1, kind: input, shape index: {}]   ;;  %s3077_s2 = inlined_call_operand.hbm [shape: f32[64,256], index: 2, kind: input, shape index: {}]   ;;  %s3078_s3 = inlined_call_operand.vmem [shape: f32[1,256], index: 3, kind: input, shape index: {}]   ;;  %s3079_s4 = inlined_call_operand.hbm [shape: f32[64,256], index: 4, kind: input, shape index: {}]   ;;  %s3080_s5 = inlined_call_operand.hbm [shape: f32[64,256], index: 5, kind: input, shape index: {}]   ;;  %s3081_s6 = inlined_call_operand.vmem [shape: f32[1,256], index: 6, kind: input, shape index: {}]   ;;  %s3082_s7 = inlined_call_operand.vmem [shape: f32[128,3], index: 7, kind: input, shape index: {}]   ;;  %s3083_s8 = inlined_call_operand.vmem [shape: f32[1,3], index: 8, kind: input, shape index: {}]   ;;  %s3084_s9 = inlined_call_operand.hbm [shape: f32[2,3], index: 9, kind: output, shape index: {}]  }
   0x1   :  { %15 = vsyncpa [#allocation7], 0 }
   0x2   :  { %16 = vsyncpa [#allocation10], 0 }
   0x3   :  { %17 = vsyncpa [#allocation5], 0  ;;  %s37_s11 = sshll.u32 %s3077_s2, 4  ;;  %s2414_s12 = smov [#allocation6]   ;;  %s38_s11 = int_to_ptr.hbm [resolvable:$true] %s37_s11 }
   0x4   :  { %s39_s13 = sshll.u32 %s2414_s12, 4  ;;  %s24_s16 = sshll.u32 %s3076_s1, 4  ;;  %s40_s13 = int_to_ptr.vmem [resolvable:$true] %s39_s13  ;;  %s25_s16 = int_to_ptr.hbm [resolvable:$true] %s24_s16 }
   0x5   :  { %s2415_s17 = smov 256   ;;  %s2416_s18 = smov 16  }
   0x6   :  { %45 = dma.hbm_to_vmem [thread:$0]  %s38_s11, 2048, %s40_s13, [#allocation7], %s2415_s17, %s2415_s17, %s2416_s18  }
   0x7   :  { %s2417_s19 = smov [#allocation3]   ;;  %s52_s23 = sshll.u32 %s3079_s4, 4  ;;  %s53_s23 = int_to_ptr.hbm [resolvable:$true] %s52_s23 }
   0x8   :  { %s26_s20 = sshll.u32 %s2417_s19, 4  ;;  %s65_s25 = sshll.u32 %s3080_s5, 4  ;;  %s27_s20 = int_to_ptr.vmem [resolvable:$true] %s26_s20  ;;  %s66_s25 = int_to_ptr.hbm [resolvable:$true] %s65_s25 }
   0x9   :  { %32 = dma.hbm_to_vmem [thread:$0]  %s25_s16, 512, %s27_s20, [#allocation4], %s2415_s17, %s2415_s17, %s2416_s18  }
   0xa   :  { %s2418_s26 = smov [#allocation8]   ;;  %s2419_s1 = smov [#allocation9]  }
   0xb   :  { %s54_s27 = sshll.u32 %s2418_s26, 4  ;;  %s67_s28 = sshll.u32 %s2419_s1, 4  ;;  %s55_s27 = int_to_ptr.vmem [resolvable:$true] %s54_s27  ;;  %s68_s28 = int_to_ptr.vmem [resolvable:$true] %s67_s28 }
   0xc   :  { %60 = dma.hbm_to_vmem [thread:$0]  %s53_s23, 2048, %s55_s27, [#allocation7], %s2415_s17, %s2415_s17, %s2416_s18  }
   0xd   :  { %73 = dma.hbm_to_vmem [thread:$0]  %s66_s25, 2048, %s68_s28, [#allocation10], %s2415_s17, %s2415_s17, %s2416_s18  }
   0xe   :  { %2406 = dma.done.wait [#allocation4], 512  }
   0xf   :  { %2407 = vsyncadd [#allocation4], 4294966784 }
  0x10   :  { %2408 = dma.done.wait [#allocation7], 4096  }
  0x11   :  { %2409 = vsyncadd [#allocation7], 4294963200 }
  0x12   :  { %2410 = dma.done.wait [#allocation10], 2048  }
  0x13   :  { %2411 = vsyncadd [#allocation10], 4294965248  ;;  %v103_v0 = vld [vmem:[#allocation3 + $0x18] sm:$0xff]  ;;  %v101_v1 = vld [vmem:[#allocation3 + $0x8] sm:$0xff]  ;;  %vm110_vm0 = vcmask 130048   ;;  %s2422_s16 = smov 64  }
  0x14   :  { %166 = vmatpush.msra.mxu1 %v103_v0  ;;  %v96_v2 = vld [vmem:[%s3075_s0] sm:$0xff]  ;;  %v102_v3 = vld [vmem:[#allocation3 + $0x10] sm:$0xff]  ;;  %v97_v6 = vld [vmem:[%s3075_s0 + $0x8] sm:$0xff]  ;;  %vm275_vm9 = vcmask 257024   ;;  %vm287_vm10 = vcmask 261120   ;;  %vm289_vm11 = vcmask 523264  }
  0x15   :  { %137 = vmatpush.msra.mxu0 %v102_v3  ;;  %v100_v4 = vld [vmem:[#allocation3] sm:$0xff]  ;;  %2071 = vmatpush.msra.mxu3 %v102_v3  ;;  %v98_v5 = vld [vmem:[%s3075_s0 + $0x10] sm:$0xff]  ;;  %v99_v7 = vld [vmem:[%s3075_s0 + $0x18] sm:$0xff]  ;;  %s2420_s0 = smov 32   ;;  %s2423_s26 = smov [#allocation11]  }
  0x16   :  { %167 = vmatpush.msra.mxu1 %v101_v1  ;;  %v104_v8 = vld [vmem:[%s3078_s3] sm:$0x3]  ;;  %v2538_v61 = vld [vmem:[#allocation6 + $0x78] sm:$0xff]  ;;  %v2540_v62 = vld [vmem:[#allocation6 + $0x70] sm:$0xff]  ;;  %s2421_s3 = smov 96   ;;  %s1998_s27 = sshll.u32 %s2423_s26, 4  ;;  %s1999_s27 = int_to_ptr.vmem [resolvable:$true] %s1998_s27 }
  0x17   :  { %2016 = vmatmul.msk.f32.vlgmr.msra.gmra.mxu1 %vm110_vm0, %v96_v2  ;;  %138 = vmatpush.msra.mxu0 %v100_v4  ;;  %v107_v9 = vperm.slane %v104_v8, 1  ;;  %v2517_v18 = vperm.slane %v104_v8, 0  ;;  %v2542_v63 = vld [vmem:[#allocation6 + $0x68] sm:$0xff]  ;;  %v2546_v0 = vld [vmem:[#allocation6 + $0x60] sm:$0xff]  ;;  %v2548_v1 = vld [vmem:[#allocation6 + $0x58] sm:$0xff] }
  0x18   :  { %2012 = vmatmul.msk.f32.vlgmr.msra.gmra.mxu0 %vm110_vm0, %v96_v2  ;;  %2072 = vmatpush.msra.mxu3 %v100_v4  ;;  %v2550_v2 = vld [vmem:[#allocation6 + $0x50] sm:$0xff]  ;;  %v2556_v3 = vld [vmem:[#allocation6 + $0x48] sm:$0xff]  ;;  %v2558_v4 = vld [vmem:[#allocation6 + $0x40] sm:$0xff] }
  0x19   :  { %2014 = vmatmul.msk.f32.vlgmr.msra.gmra.mxu3 %vm110_vm0, %v98_v5  ;;  %301 = vmatpush.msrb.mxu1 %v2540_v62 }
  0x1a   :  { %321 = vmatpush.msrb.mxu3 %v2538_v61  ;;  %447 = vmatpush.msra.mxu2 %v2540_v62 }
  0x1b   :  { %590 = vmatpush.msrb.mxu0 %v2540_v62  ;;  %302 = vmatpush.msrb.mxu1 %v2546_v0 }
  0x1c   :  { %322 = vmatpush.msrb.mxu3 %v2542_v63  ;;  %448 = vmatpush.msra.mxu2 %v2546_v0 }
  0x1d   :  { %591 = vmatpush.msrb.mxu0 %v2546_v0  ;;  %303 = vmatpush.msrb.mxu1 %v2550_v2 }
  0x1e   :  { %323 = vmatpush.msrb.mxu3 %v2548_v1  ;;  %449 = vmatpush.msra.mxu2 %v2550_v2 }
  0x1f   :  { %2017 = vmatmul.msk.f32.gmra.mxu1 %vm110_vm0, %v97_v6  ;;  %592 = vmatpush.msrb.mxu0 %v2550_v2 }
  0x20   :  { %2013 = vmatmul.msk.f32.gmra.mxu0 %vm110_vm0, %v97_v6  ;;  %324 = vmatpush.msrb.mxu3 %v2556_v3 }
  0x21   :  { %2015 = vmatmul.msk.f32.gmra.mxu3 %vm110_vm0, %v99_v7  ;;  %304 = vmatpush.msrb.mxu1 %v2558_v4 }
  0x22   :  { %450 = vmatpush.msra.mxu2 %v2558_v4  ;;  %593 = vmatpush.msrb.mxu0 %v2558_v4 }
  0x27   :  { %2018 = vmatmul.msk.f32.gmra.mxu1 %vm110_vm0, %v98_v5  ;;  %v2564_v5 = vld [vmem:[#allocation6 + $0x38] sm:$0xff] }
  0x28   :  { %325 = vmatpush.msrb.mxu3 %v2564_v5 }
  0x2f   :  { %2019 = vmatmul.msk.f32.gmra.mxu1 %vm110_vm0, %v99_v7 }
  0x94   :  { %v169_v10 = vpop.f32.mrf.mxu1 }
  0x95   :  { %v2509_v11 = vadd.f32 %v169_v10, %v107_v9  ;;  %v140_v19 = vpop.f32.mrf.mxu0 }
  0x96   :  { %v2521_v20 = vadd.f32 %v140_v19, %v2517_v18  ;;  %v2586_v19 = vld [vmem:[#allocation6 + $0x18] sm:$0xff] }
  0x98   :  { %v2020_v24 = vmul.f32 -1.442695, %v2521_v20 }
  0x9c   :  { %v172_v12 = vpop.f32.mrf.mxu1 }
  0x9d   :  { %v2511_v13 = vadd.f32 %v172_v12, %v107_v9  ;;  %v2578_v12 = vld [vmem:[#allocation6 + $0x30] sm:$0xff] }
  0x9e   :  { %305 = vmatpush.msrb.mxu1 %v2578_v12  ;;  %451 = vmatpush.msra.mxu2 %v2578_v12 }
  0x9f   :  { %594 = vmatpush.msrb.mxu0 %v2578_v12 }
  0xa4   :  { %v175_v14 = vpop.f32.mrf.mxu1 }
  0xa5   :  { %v2513_v15 = vadd.f32 %v175_v14, %v107_v9  ;;  %v2580_v14 = vld [vmem:[#allocation6 + $0x28] sm:$0xff] }
  0xa6   :  { %326 = vmatpush.msrb.mxu3 %v2580_v14 }
  0xa8   :  { %327 = vmatpush.msrb.mxu3 %v2586_v19 }
  0xac   :  { %v178_v16 = vpop.f32.mrf.mxu1 }
  0xad   :  { %v2515_v17 = vadd.f32 %v178_v16, %v107_v9  ;;  %v2582_v16 = vld [vmem:[#allocation6 + $0x20] sm:$0xff] }
  0xae   :  { %306 = vmatpush.msrb.mxu1 %v2582_v16  ;;  %452 = vmatpush.msra.mxu2 %v2582_v16 }
  0xaf   :  { %2086 = vtanh.f32 %v2515_v17  ;;  %v2021_v23 = vmul.f32 -1.442695, %v2515_v17  ;;  %595 = vmatpush.msrb.mxu0 %v2582_v16 }
  0xb0   :  { %2088 = vtanh.f32 %v2521_v20 }
  0xb1   :  { %2090 = vpow2.f32 %v2021_v23  ;;  %v2600_v23 = vld [vmem:[#allocation6] sm:$0xff] }
  0xb2   :  { %2092 = vpow2.f32 %v2020_v24 }
  0xb5   :  { %v2087_v21 = vpop.eup %2086 }
  0xb6   :  { %250 = vrot.lane.b32.xlu0 %v2087_v21, %s2420_s0  ;;  %v2089_v22 = vpop.eup %2088  ;;  %v2588_v21 = vld [vmem:[#allocation6 + $0x10] sm:$0xff] }
  0xb7   :  { %v2091_v25 = vpop.eup %2090  ;;  %307 = vmatpush.msrb.mxu1 %v2588_v21  ;;  %453 = vmatpush.msra.mxu2 %v2588_v21 }
  0xb8   :  { %v219_v26 = vadd.f32 1.0, %v2091_v25  ;;  %v2093_v27 = vpop.eup %2092  ;;  %596 = vmatpush.msrb.mxu0 %v2588_v21 }
  0xb9   :  { %v200_v28 = vadd.f32 1.0, %v2093_v27  ;;  %308 = vmatpush.msrb.mxu1 %v2600_v23  ;;  %454 = vmatpush.msra.mxu2 %v2600_v23  ;;  %v2659_v27 = vpop.f32.mrf.mxu3 }
  0xba   :  { %2094 = vrcp.f32 %v219_v26  ;;  %v231_v37 = vand.u32 2147483648, %v219_v26  ;;  %vm225_vm2 = vweird.f32 %v219_v26  ;;  %v229_v38 = vand.u32 2147483647, %v219_v26  ;;  %597 = vmatpush.msrb.mxu0 %v2600_v23 }
  0xbb   :  { %2096 = vrcp.f32 %v200_v28  ;;  %vm206_vm5 = vweird.f32 %v200_v28  ;;  %v212_v44 = vand.u32 2147483648, %v200_v28  ;;  %v210_v47 = vand.u32 2147483647, %v200_v28  ;;  %610 = vmatpush.msra.mxu1 %v2538_v61  ;;  %734 = vmatpush.msrb.mxu2 %v2540_v62 }
  0xbc   :  { %v232_v41 = vor.u32 1.1754944e-38, %v231_v37  ;;  %vm230_vm4 = vcmp.eq.f32.partialorder %v229_v38, 8.507059e+37  ;;  %877 = vmatpush.msra.mxu0 %v2540_v62 }
  0xbd   :  { %v213_v48 = vor.u32 1.1754944e-38, %v212_v44  ;;  %vm211_vm8 = vcmp.eq.f32.partialorder %v210_v47, 8.507059e+37  ;;  %611 = vmatpush.msra.mxu1 %v2542_v63  ;;  %735 = vmatpush.msrb.mxu2 %v2546_v0 }
  0xbe   :  { %239 = vrot.lane.b32.xlu0 %v2089_v22, %s2420_s0  ;;  %v2590_v22 = vld [vmem:[#allocation6 + $0x8] sm:$0xff]  ;;  %878 = vmatpush.msra.mxu0 %v2546_v0 }
  0xbf   :  { %328 = vmatpush.msrb.mxu3 %v2590_v22  ;;  %612 = vmatpush.msra.mxu1 %v2548_v1 }
  0xc0   :  { %v2095_v29 = vpop.eup %2094  ;;  %736 = vmatpush.msrb.mxu2 %v2550_v2  ;;  %879 = vmatpush.msra.mxu0 %v2550_v2 }
  0xc1   :  { %v221_v30 = vmul.f32 %v2095_v29, %v219_v26  ;;  %v2097_v32 = vpop.eup %2096  ;;  %vm226_vm1 = vweird.f32 %v2095_v29  ;;  %467 = vmatpush.msra.mxu3 %v2538_v61  ;;  %613 = vmatpush.msra.mxu1 %v2556_v3 }
  0xc2   :  { %v202_v34 = vmul.f32 %v2097_v32, %v200_v28  ;;  %vm227_vm3 = vmor %vm225_vm2, %vm226_vm1  ;;  %vm207_vm6 = vweird.f32 %v2097_v32  ;;  %737 = vmatpush.msrb.mxu2 %v2558_v4  ;;  %880 = vmatpush.msra.mxu0 %v2558_v4  ;;  %v2661_v28 = vpop.f32.mrf.mxu3 }
  0xc3   :  { %v222_v31 = vsub.f32 1.0, %v221_v30  ;;  %vm208_vm7 = vmor %vm206_vm5, %vm207_vm6  ;;  %468 = vmatpush.msra.mxu3 %v2542_v63  ;;  %614 = vmatpush.msra.mxu1 %v2564_v5 }
  0xc4   :  { %v203_v36 = vsub.f32 1.0, %v202_v34  ;;  %738 = vmatpush.msrb.mxu2 %v2578_v12  ;;  %881 = vmatpush.msra.mxu0 %v2578_v12 }
  0xc5   :  { %v223_v33 = vmul.f32 %v2095_v29, %v222_v31  ;;  %469 = vmatpush.msra.mxu3 %v2548_v1  ;;  %615 = vmatpush.msra.mxu1 %v2580_v14 }
  0xc6   :  { %v204_v40 = vmul.f32 %v2097_v32, %v203_v36  ;;  %739 = vmatpush.msrb.mxu2 %v2582_v16  ;;  %882 = vmatpush.msra.mxu0 %v2582_v16 }
  0xc7   :  { %v224_v35 = vadd.f32 %v2095_v29, %v223_v33  ;;  %470 = vmatpush.msra.mxu3 %v2556_v3  ;;  %616 = vmatpush.msra.mxu1 %v2586_v19 }
  0xc8   :  { %v205_v46 = vadd.f32 %v2097_v32, %v204_v40  ;;  %740 = vmatpush.msrb.mxu2 %v2588_v21  ;;  %883 = vmatpush.msra.mxu0 %v2588_v21 }
  0xc9   :  { %v228_v39 = vsel %vm227_vm3, %v2095_v29, %v224_v35  ;;  %471 = vmatpush.msra.mxu3 %v2564_v5  ;;  %617 = vmatpush.msra.mxu1 %v2590_v22 }
  0xca   :  { %v233_v43 = vsel %vm230_vm4, %v232_v41, %v228_v39  ;;  %v209_v49 = vsel %vm208_vm7, %v2097_v32, %v205_v46  ;;  %741 = vmatpush.msrb.mxu2 %v2600_v23  ;;  %884 = vmatpush.msra.mxu0 %v2600_v23  ;;  %vm422_vm4 = vcmask 261124  }
  0xcb   :  { %v214_v51 = vsel %vm211_vm8, %v213_v48, %v209_v49  ;;  %v248_v53 = vmul.f32 0.0, %v233_v43  ;;  %472 = vmatpush.msra.mxu3 %v2580_v14 }
  0xcc   :  { %v237_v56 = vmul.f32 0.0, %v214_v51 }
  0xcd   :  { %473 = vmatpush.msra.mxu3 %v2586_v19 }
  0xcf   :  { %474 = vmatpush.msra.mxu3 %v2590_v22 }
 0x128   :  { %v251_v42 = vpop.permute.xlu0 %250 }
 0x129   :  { %v253_v45 = vmul.f32 %v251_v42, %v233_v43 }
 0x12b   :  { %255 = vrot.lane.b32.xlu1 %v253_v45, %s2420_s0 }
 0x130   :  { %v240_v50 = vpop.permute.xlu0 %239 }
 0x131   :  { %v242_v52 = vmul.f32 %v240_v50, %v214_v51 }
 0x133   :  { %244 = vrot.lane.b32.xlu1 %v242_v52, %s2420_s0 }
 0x19d   :  { %v256_v54 = vpop.permute.xlu1 %255 }
 0x19e   :  { %v2530_v55 = vadd.f32 %v256_v54, %v248_v53 }
 0x1a0   :  { %2098 = vtanh.f32 %v2530_v55 }
 0x1a5   :  { %v245_v57 = vpop.permute.xlu1 %244 }
 0x1a6   :  { %v2099_v58 = vpop.eup %2098  ;;  %v2533_v59 = vadd.f32 %v245_v57, %v237_v56 }
 0x1a7   :  { %267 = vrot.lane.b32.xlu2 %v2099_v58, %s2420_s0 }
 0x1a8   :  { %2100 = vtanh.f32 %v2533_v59 }
 0x1ae   :  { %v2101_v60 = vpop.eup %2100 }
 0x1af   :  { %261 = vrot.lane.b32.xlu2 %v2101_v60, %s2420_s0 }
 0x201   :  { %v268_v6 = vpop.permute.xlu2 %267 }
 0x202   :  { %v2573_v7 = vmul.f32 %v268_v6, %v233_v43 }
 0x204   :  { %v283_v8 = vrot.slane %v2573_v7, 4 }
 0x206   :  { %284 = vrot.lane.b32.xlu1 %v283_v8, %s2421_s3 }
 0x209   :  { %v262_v9 = vpop.permute.xlu2 %261 }
 0x20a   :  { %v264_v10 = vmul.f32 %v262_v9, %v214_v51 }
 0x20c   :  { %272 = vrot.lane.b32.xlu0 %v264_v10, %s2422_s16 }
 0x278   :  { %v285_v24 = vpop.permute.xlu1 %284 }
 0x27e   :  { %v273_v25 = vpop.permute.xlu0 %272 }
 0x27f   :  { %276 = vst.msk [vmem:[#allocation2] sm:$0xf] %vm275_vm9, %v273_v25  ;;  %v288_v26 = vsel %vm287_vm10, %v273_v25, %v285_v24  ;;  %v379_v25 = vrot.slane %v2533_v59, 4 }
 0x280   :  { %2022 = vmatmul.msk.f32.vlgmr.msrb.gmra.mxu1 %vm289_vm11, %v288_v26  ;;  %2023 = vmatmul.msk.f32.vlgmr.msrb.gmra.mxu3 %vm289_vm11, %v288_v26 }
 0x281   :  { %754 = vmatpush.msrb.mxu3 %v2538_v61  ;;  %897 = vmatpush.msrb.mxu1 %v2538_v61 }
 0x283   :  { %755 = vmatpush.msrb.mxu3 %v2542_v63  ;;  %898 = vmatpush.msrb.mxu1 %v2542_v63 }
 0x285   :  { %756 = vmatpush.msrb.mxu3 %v2548_v1  ;;  %899 = vmatpush.msrb.mxu1 %v2548_v1 }
 0x287   :  { %757 = vmatpush.msrb.mxu3 %v2556_v3  ;;  %900 = vmatpush.msrb.mxu1 %v2556_v3 }
 0x289   :  { %758 = vmatpush.msrb.mxu3 %v2564_v5  ;;  %901 = vmatpush.msrb.mxu1 %v2564_v5 }
 0x28b   :  { %759 = vmatpush.msrb.mxu3 %v2580_v14  ;;  %902 = vmatpush.msrb.mxu1 %v2580_v14 }
 0x28d   :  { %760 = vmatpush.msrb.mxu3 %v2586_v19  ;;  %903 = vmatpush.msrb.mxu1 %v2586_v19 }
 0x28f   :  { %761 = vmatpush.msrb.mxu3 %v2590_v22  ;;  %904 = vmatpush.msrb.mxu1 %v2590_v22 }
 0x2fd   :  { %v310_v29 = vpop.f32.mrf.mxu1 }
 0x2fe   :  { %v334_v30 = vrot.slane %v310_v29, 4 }
 0x300   :  { %v336_v31 = vadd.f32 %v334_v30, %v2521_v20  ;;  %v393_v30 = vrot.slane %v2530_v55, 4 }
 0x302   :  { %2102 = vtanh.f32 %v336_v31  ;;  %v2024_v39 = vmul.f32 -1.442695, %v336_v31 }
 0x303   :  { %v330_v32 = vpop.f32.mrf.mxu3 }
 0x304   :  { %v337_v33 = vadd.f32 %v330_v32, %v2515_v17 }
 0x306   :  { %2104 = vtanh.f32 %v337_v33  ;;  %v2025_v36 = vmul.f32 -1.442695, %v337_v33 }
 0x308   :  { %v2103_v34 = vpop.eup %2102  ;;  %2106 = vpow2.f32 %v2025_v36 }
 0x309   :  { %383 = vrot.lane.b32.xlu0 %v2103_v34, %s2420_s0 }
 0x30c   :  { %v2105_v35 = vpop.eup %2104 }
 0x30d   :  { %397 = vrot.lane.b32.xlu2 %v2105_v35, %s2420_s0 }
 0x30e   :  { %v2107_v37 = vpop.eup %2106 }
 0x30f   :  { %v360_v38 = vadd.f32 1.0, %v2107_v37 }
 0x311   :  { %2108 = vrcp.f32 %v360_v38  ;;  %v372_v45 = vand.u32 2147483648, %v360_v38  ;;  %vm366_vm13 = vweird.f32 %v360_v38  ;;  %v370_v46 = vand.u32 2147483647, %v360_v38 }
 0x312   :  { %2110 = vpow2.f32 %v2024_v39 }
 0x313   :  { %v373_v49 = vor.u32 1.1754944e-38, %v372_v45  ;;  %vm371_vm15 = vcmp.eq.f32.partialorder %v370_v46, 8.507059e+37 }
 0x317   :  { %v2109_v40 = vpop.eup %2108 }
 0x318   :  { %v362_v20 = vmul.f32 %v2109_v40, %v360_v38  ;;  %v2111_v41 = vpop.eup %2110  ;;  %vm367_vm12 = vweird.f32 %v2109_v40 }
 0x319   :  { %v341_v43 = vadd.f32 1.0, %v2111_v41  ;;  %vm368_vm14 = vmor %vm366_vm13, %vm367_vm12 }
 0x31a   :  { %v363_v42 = vsub.f32 1.0, %v362_v20 }
 0x31b   :  { %2112 = vrcp.f32 %v341_v43  ;;  %v353_v58 = vand.u32 2147483648, %v341_v43  ;;  %vm347_vm1 = vweird.f32 %v341_v43  ;;  %v351_v60 = vand.u32 2147483647, %v341_v43 }
 0x31c   :  { %v364_v17 = vmul.f32 %v2109_v40, %v363_v42 }
 0x31d   :  { %v354_v8 = vor.u32 1.1754944e-38, %v353_v58  ;;  %vm352_vm3 = vcmp.eq.f32.partialorder %v351_v60, 8.507059e+37 }
 0x31e   :  { %v365_v44 = vadd.f32 %v2109_v40, %v364_v17 }
 0x320   :  { %v369_v47 = vsel %vm368_vm14, %v2109_v40, %v365_v44 }
 0x321   :  { %v2113_v48 = vpop.eup %2112  ;;  %v374_v51 = vsel %vm371_vm15, %v373_v49, %v369_v47 }
 0x322   :  { %v343_v53 = vmul.f32 %v2113_v48, %v341_v43  ;;  %vm348_vm0 = vweird.f32 %v2113_v48  ;;  %v395_v32 = vmul.f32 %v393_v30, %v374_v51  ;;  %v143_v43 = vpop.f32.mrf.mxu0 }
 0x323   :  { %vm349_vm2 = vmor %vm347_vm1, %vm348_vm0  ;;  %v2705_v17 = vadd.f32 %v143_v43, %v2517_v18 }
 0x324   :  { %v344_v54 = vsub.f32 1.0, %v343_v53 }
 0x326   :  { %v345_v56 = vmul.f32 %v2113_v48, %v344_v54 }
 0x328   :  { %v346_v57 = vadd.f32 %v2113_v48, %v345_v56 }
 0x32a   :  { %v350_v6 = vsel %vm349_vm2, %v2113_v48, %v346_v57 }
 0x32b   :  { %v355_v10 = vsel %vm352_vm3, %v354_v8, %v350_v6 }
 0x32c   :  { %v381_v26 = vmul.f32 %v379_v25, %v355_v10 }
 0x367   :  { %v398_v50 = vpop.permute.xlu2 %397 }
 0x368   :  { %v400_v52 = vmul.f32 %v398_v50, %v374_v51 }
 0x36a   :  { %402 = vrot.lane.b32.xlu1 %v400_v52, %s2420_s0 }
 0x37b   :  { %v384_v9 = vpop.permute.xlu0 %383 }
 0x37c   :  { %v386_v24 = vmul.f32 %v384_v9, %v355_v10 }
 0x37e   :  { %388 = vrot.lane.b32.xlu2 %v386_v24, %s2420_s0 }
 0x3d8   :  { %v389_v29 = vpop.permute.xlu2 %388 }
 0x3d9   :  { %v2671_v31 = vadd.f32 %v389_v29, %v381_v26 }
 0x3db   :  { %2114 = vtanh.f32 %v2671_v31 }
 0x3dc   :  { %v403_v33 = vpop.permute.xlu1 %402 }
 0x3dd   :  { %v2674_v34 = vadd.f32 %v403_v33, %v395_v32 }
 0x3df   :  { %2116 = vtanh.f32 %v2674_v34 }
 0x3e1   :  { %v2115_v35 = vpop.eup %2114 }
 0x3e2   :  { %408 = vrot.lane.b32.xlu1 %v2115_v35, %s2420_s0 }
 0x3e5   :  { %v2117_v36 = vpop.eup %2116 }
 0x3e6   :  { %414 = vrot.lane.b32.xlu0 %v2117_v36, %s2420_s0 }
 0x454   :  { %v409_v59 = vpop.permute.xlu1 %408 }
 0x455   :  { %v411_v37 = vmul.f32 %v409_v59, %v355_v10 }
 0x457   :  { %419 = vrot.lane.b32.xlu2 %v411_v37, %s2422_s16 }
 0x458   :  { %v415_v55 = vpop.permute.xlu0 %414 }
 0x459   :  { %v2680_v38 = vmul.f32 %v415_v55, %v374_v51 }
 0x45b   :  { %v430_v39 = vrot.slane %v2680_v38, 4 }
 0x45d   :  { %431 = vrot.lane.b32.xlu0 %v430_v39, %s2421_s3 }
 0x4b1   :  { %v420_v40 = vpop.permute.xlu2 %419 }
 0x4b2   :  { %423 = vst.msk [vmem:[#allocation2] sm:$0xf0] %vm422_vm4, %v420_v40 }
 0x4cf   :  { %v432_v20 = vpop.permute.xlu0 %431 }
 0x4d0   :  { %v434_v41 = vsel %vm287_vm10, %v420_v40, %v432_v20 }
 0x4d1   :  { %v436_v42 = vrot.slane %v434_v41, 4 }
 0x4d3   :  { %2026 = vmatmul.msk.f32.vlgmr.msra.gmra.mxu2 %vm289_vm11, %v436_v42  ;;  %2027 = vmatmul.msk.f32.vlgmr.msra.gmra.mxu3 %vm289_vm11, %v436_v42 }
 0x4d4   :  { %1021 = vmatpush.msra.mxu2 %v2540_v62  ;;  %1041 = vmatpush.msra.mxu3 %v2538_v61 }
 0x4d6   :  { %1022 = vmatpush.msra.mxu2 %v2546_v0  ;;  %1042 = vmatpush.msra.mxu3 %v2542_v63 }
 0x4d8   :  { %1023 = vmatpush.msra.mxu2 %v2550_v2  ;;  %1043 = vmatpush.msra.mxu3 %v2548_v1 }
 0x4da   :  { %1024 = vmatpush.msra.mxu2 %v2558_v4  ;;  %1044 = vmatpush.msra.mxu3 %v2556_v3 }
 0x4dc   :  { %1025 = vmatpush.msra.mxu2 %v2578_v12  ;;  %1045 = vmatpush.msra.mxu3 %v2564_v5 }
 0x4de   :  { %1026 = vmatpush.msra.mxu2 %v2582_v16  ;;  %1046 = vmatpush.msra.mxu3 %v2580_v14 }
 0x4e0   :  { %1027 = vmatpush.msra.mxu2 %v2588_v21  ;;  %1047 = vmatpush.msra.mxu3 %v2586_v19 }
 0x4e2   :  { %1028 = vmatpush.msra.mxu2 %v2600_v23  ;;  %1048 = vmatpush.msra.mxu3 %v2590_v22 }
 0x556   :  { %v456_v44 = vpop.f32.mrf.mxu2  ;;  %v476_v45 = vpop.f32.mrf.mxu3 }
 0x557   :  { %v479_v46 = vadd.f32 %v456_v44, %v2705_v17  ;;  %v481_v47 = vrot.slane %v476_v45, 4  ;;  %v525_v44 = vrot.slane %v2671_v31, 4 }
 0x559   :  { %2118 = vtanh.f32 %v479_v46  ;;  %v483_v48 = vadd.f32 %v481_v47, %v2513_v15  ;;  %v2028_v51 = vmul.f32 -1.442695, %v479_v46 }
 0x55b   :  { %2120 = vtanh.f32 %v483_v48  ;;  %v2029_v57 = vmul.f32 -1.442695, %v483_v48 }
 0x55c   :  { %2122 = vpow2.f32 %v2028_v51 }
 0x55f   :  { %v2119_v49 = vpop.eup %2118 }
 0x560   :  { %529 = vrot.lane.b32.xlu2 %v2119_v49, %s2420_s0  ;;  %v539_v49 = vrot.slane %v2674_v34, 4 }
 0x561   :  { %v2121_v50 = vpop.eup %2120 }
 0x562   :  { %543 = vrot.lane.b32.xlu1 %v2121_v50, %s2420_s0  ;;  %v2123_v52 = vpop.eup %2122 }
 0x563   :  { %v487_v53 = vadd.f32 1.0, %v2123_v52 }
 0x565   :  { %2124 = vrcp.f32 %v487_v53  ;;  %v499_v9 = vand.u32 2147483648, %v487_v53  ;;  %vm493_vm6 = vweird.f32 %v487_v53  ;;  %v497_v24 = vand.u32 2147483647, %v487_v53 }
 0x566   :  { %2126 = vpow2.f32 %v2029_v57 }
 0x567   :  { %v500_v26 = vor.u32 1.1754944e-38, %v499_v9  ;;  %vm498_vm8 = vcmp.eq.f32.partialorder %v497_v24, 8.507059e+37 }
 0x56b   :  { %v2125_v54 = vpop.eup %2124 }
 0x56c   :  { %v489_v56 = vmul.f32 %v2125_v54, %v487_v53  ;;  %v2127_v6 = vpop.eup %2126  ;;  %vm494_vm5 = vweird.f32 %v2125_v54 }
 0x56d   :  { %v506_v10 = vadd.f32 1.0, %v2127_v6  ;;  %vm495_vm7 = vmor %vm493_vm6, %vm494_vm5 }
 0x56e   :  { %v490_v58 = vsub.f32 1.0, %v489_v56 }
 0x56f   :  { %2128 = vrcp.f32 %v506_v10  ;;  %v518_v55 = vand.u32 2147483648, %v506_v10  ;;  %vm512_vm13 = vweird.f32 %v506_v10  ;;  %v516_v39 = vand.u32 2147483647, %v506_v10 }
 0x570   :  { %v491_v60 = vmul.f32 %v2125_v54, %v490_v58 }
 0x571   :  { %v519_v20 = vor.u32 1.1754944e-38, %v518_v55  ;;  %vm517_vm15 = vcmp.eq.f32.partialorder %v516_v39, 8.507059e+37 }
 0x572   :  { %v492_v8 = vadd.f32 %v2125_v54, %v491_v60 }
 0x574   :  { %v496_v25 = vsel %vm495_vm7, %v2125_v54, %v492_v8 }
 0x575   :  { %v501_v30 = vsel %vm498_vm8, %v500_v26, %v496_v25  ;;  %v2129_v33 = vpop.eup %2128 }
 0x576   :  { %v508_v35 = vmul.f32 %v2129_v33, %v506_v10  ;;  %vm513_vm12 = vweird.f32 %v2129_v33  ;;  %v527_v45 = vmul.f32 %v525_v44, %v501_v30 }
 0x577   :  { %vm514_vm14 = vmor %vm512_vm13, %vm513_vm12 }
 0x578   :  { %v509_v36 = vsub.f32 1.0, %v508_v35 }
 0x57a   :  { %v510_v59 = vmul.f32 %v2129_v33, %v509_v36 }
 0x57c   :  { %v511_v37 = vadd.f32 %v2129_v33, %v510_v59 }
 0x57e   :  { %v515_v40 = vsel %vm514_vm14, %v2129_v33, %v511_v37 }
 0x57f   :  { %v520_v42 = vsel %vm517_vm15, %v519_v20, %v515_v40 }
 0x580   :  { %v541_v50 = vmul.f32 %v539_v49, %v520_v42 }
 0x5ba   :  { %v530_v29 = vpop.permute.xlu2 %529 }
 0x5bb   :  { %v532_v32 = vmul.f32 %v530_v29, %v501_v30 }
 0x5bd   :  { %534 = vrot.lane.b32.xlu1 %v532_v32, %s2420_s0 }
 0x5d4   :  { %v544_v41 = vpop.permute.xlu1 %543 }
 0x5d5   :  { %v546_v43 = vmul.f32 %v544_v41, %v520_v42 }
 0x5d7   :  { %548 = vrot.lane.b32.xlu0 %v546_v43, %s2420_s0 }
 0x62f   :  { %v535_v46 = vpop.permute.xlu1 %534 }
 0x630   :  { %v2714_v47 = vadd.f32 %v535_v46, %v527_v45 }
 0x632   :  { %2130 = vtanh.f32 %v2714_v47 }
 0x638   :  { %v2131_v48 = vpop.eup %2130 }
 0x639   :  { %554 = vrot.lane.b32.xlu0 %v2131_v48, %s2420_s0  ;;  %v668_v48 = vrot.slane %v2714_v47, 4 }
 0x649   :  { %v549_v51 = vpop.permute.xlu0 %548 }
 0x64a   :  { %v2719_v52 = vadd.f32 %v549_v51, %v541_v50 }
 0x64c   :  { %2132 = vtanh.f32 %v2719_v52 }
 0x652   :  { %v2133_v53 = vpop.eup %2132 }
 0x653   :  { %560 = vrot.lane.b32.xlu2 %v2133_v53, %s2420_s0 }
 0x6ab   :  { %v555_v31 = vpop.permute.xlu0 %554 }
 0x6ac   :  { %v557_v54 = vmul.f32 %v555_v31, %v501_v30 }
 0x6ad   :  { %v561_v56 = vpop.permute.xlu2 %560 }
 0x6ae   :  { %565 = vrot.lane.b32.xlu1 %v557_v54, %s2422_s16  ;;  %v2724_v57 = vmul.f32 %v561_v56, %v520_v42  ;;  %v682_v42 = vrot.slane %v2719_v52, 4 }
 0x6b0   :  { %v574_v58 = vrot.slane %v2724_v57, 4 }
 0x6b2   :  { %575 = vrot.lane.b32.xlu2 %v574_v58, %s2421_s3 }
 0x70c   :  { %v576_v34 = vpop.permute.xlu2 %575 }
 0x720   :  { %v566_v60 = vpop.permute.xlu1 %565 }
 0x721   :  { %568 = vst.msk [vmem:[#allocation2 + $0x8] sm:$0xf] %vm275_vm9, %v566_v60  ;;  %v578_v6 = vsel %vm287_vm10, %v566_v60, %v576_v34 }
 0x722   :  { %2030 = vmatmul.msk.f32.vlgmr.msrb.gmra.mxu0 %vm289_vm11, %v578_v6  ;;  %2031 = vmatmul.msk.f32.vlgmr.msra.gmra.mxu1 %vm289_vm11, %v578_v6 }
 0x723   :  { %1164 = vmatpush.msrb.mxu0 %v2540_v62  ;;  %1184 = vmatpush.msra.mxu1 %v2538_v61 }
 0x725   :  { %1165 = vmatpush.msrb.mxu0 %v2546_v0  ;;  %1185 = vmatpush.msra.mxu1 %v2542_v63 }
 0x727   :  { %1166 = vmatpush.msrb.mxu0 %v2550_v2  ;;  %1186 = vmatpush.msra.mxu1 %v2548_v1 }
 0x729   :  { %1167 = vmatpush.msrb.mxu0 %v2558_v4  ;;  %1187 = vmatpush.msra.mxu1 %v2556_v3 }
 0x72b   :  { %1168 = vmatpush.msrb.mxu0 %v2578_v12  ;;  %1188 = vmatpush.msra.mxu1 %v2564_v5 }
 0x72d   :  { %1169 = vmatpush.msrb.mxu0 %v2582_v16  ;;  %1189 = vmatpush.msra.mxu1 %v2580_v14 }
 0x72f   :  { %1170 = vmatpush.msrb.mxu0 %v2588_v21  ;;  %1190 = vmatpush.msra.mxu1 %v2586_v19 }
 0x731   :  { %1171 = vmatpush.msrb.mxu0 %v2600_v23  ;;  %1191 = vmatpush.msra.mxu1 %v2590_v22 }
 0x79f   :  { %v599_v61 = vpop.f32.mrf.mxu0  ;;  %v619_v62 = vpop.f32.mrf.mxu1 }
 0x7a0   :  { %v623_v63 = vrot.slane %v599_v61, 4  ;;  %v626_v0 = vadd.f32 %v619_v62, %v2513_v15  ;;  %v2775_v61 = vadd.f32 %v2659_v27, %v2517_v18 }
 0x7a2   :  { %v625_v1 = vadd.f32 %v623_v63, %v2705_v17  ;;  %2134 = vtanh.f32 %v626_v0  ;;  %v2033_v4 = vmul.f32 -1.442695, %v626_v0 }
 0x7a4   :  { %2136 = vtanh.f32 %v625_v1  ;;  %v2032_v5 = vmul.f32 -1.442695, %v625_v1 }
 0x7a5   :  { %2138 = vpow2.f32 %v2033_v4 }
 0x7a6   :  { %2140 = vpow2.f32 %v2032_v5 }
 0x7a8   :  { %v2135_v2 = vpop.eup %2134 }
 0x7a9   :  { %686 = vrot.lane.b32.xlu0 %v2135_v2, %s2420_s0 }
 0x7aa   :  { %v2137_v3 = vpop.eup %2136 }
 0x7ab   :  { %672 = vrot.lane.b32.xlu1 %v2137_v3, %s2420_s0  ;;  %v2139_v12 = vpop.eup %2138 }
 0x7ac   :  { %v2141_v14 = vpop.eup %2140  ;;  %v649_v16 = vadd.f32 1.0, %v2139_v12 }
 0x7ad   :  { %v630_v19 = vadd.f32 1.0, %v2141_v14 }
 0x7ae   :  { %2142 = vrcp.f32 %v649_v16  ;;  %v661_v25 = vand.u32 2147483648, %v649_v16  ;;  %vm655_vm1 = vweird.f32 %v649_v16  ;;  %v659_v26 = vand.u32 2147483647, %v649_v16 }
 0x7af   :  { %2144 = vrcp.f32 %v630_v19  ;;  %v642_v30 = vand.u32 2147483648, %v630_v19  ;;  %vm636_vm5 = vweird.f32 %v630_v19  ;;  %v640_v33 = vand.u32 2147483647, %v630_v19 }
 0x7b0   :  { %v662_v35 = vor.u32 1.1754944e-38, %v661_v25  ;;  %vm660_vm7 = vcmp.eq.f32.partialorder %v659_v26, 8.507059e+37 }
 0x7b1   :  { %v643_v55 = vor.u32 1.1754944e-38, %v642_v30  ;;  %vm641_vm8 = vcmp.eq.f32.partialorder %v640_v33, 8.507059e+37 }
 0x7b4   :  { %v2143_v15 = vpop.eup %2142 }
 0x7b5   :  { %v2145_v21 = vpop.eup %2144  ;;  %v651_v22 = vmul.f32 %v2143_v15, %v649_v16  ;;  %vm656_vm0 = vweird.f32 %v2143_v15 }
 0x7b6   :  { %v632_v23 = vmul.f32 %v2145_v21, %v630_v19  ;;  %vm637_vm2 = vweird.f32 %v2145_v21  ;;  %vm657_vm3 = vmor %vm655_vm1, %vm656_vm0 }
 0x7b7   :  { %v652_v17 = vsub.f32 1.0, %v651_v22  ;;  %vm638_vm6 = vmor %vm636_vm5, %vm637_vm2 }
 0x7b8   :  { %v633_v8 = vsub.f32 1.0, %v632_v23 }
 0x7b9   :  { %v653_v9 = vmul.f32 %v2143_v15, %v652_v17 }
 0x7ba   :  { %v634_v10 = vmul.f32 %v2145_v21, %v633_v8 }
 0x7bb   :  { %v654_v24 = vadd.f32 %v2143_v15, %v653_v9 }
 0x7bc   :  { %v635_v29 = vadd.f32 %v2145_v21, %v634_v10 }
 0x7bd   :  { %v658_v32 = vsel %vm657_vm3, %v2143_v15, %v654_v24 }
 0x7be   :  { %v639_v36 = vsel %vm638_vm6, %v2145_v21, %v635_v29  ;;  %v663_v37 = vsel %vm660_vm7, %v662_v35, %v658_v32 }
 0x7bf   :  { %v644_v20 = vsel %vm641_vm8, %v643_v55, %v639_v36  ;;  %v684_v43 = vmul.f32 %v682_v42, %v663_v37 }
 0x7c0   :  { %v670_v49 = vmul.f32 %v668_v48, %v644_v20 }
 0x81b   :  { %v687_v59 = vpop.permute.xlu0 %686 }
 0x81c   :  { %v689_v39 = vmul.f32 %v687_v59, %v663_v37 }
 0x81d   :  { %v673_v40 = vpop.permute.xlu1 %672 }
 0x81e   :  { %v675_v41 = vmul.f32 %v673_v40, %v644_v20  ;;  %691 = vrot.lane.b32.xlu2 %v689_v39, %s2420_s0 }
 0x820   :  { %677 = vrot.lane.b32.xlu0 %v675_v41, %s2420_s0 }
 0x878   :  { %v692_v44 = vpop.permute.xlu2 %691 }
 0x879   :  { %v2755_v45 = vadd.f32 %v692_v44, %v684_v43 }
 0x87b   :  { %2146 = vtanh.f32 %v2755_v45  ;;  %v826_v44 = vrot.slane %v2755_v45, 4 }
 0x881   :  { %v2147_v46 = vpop.eup %2146 }
 0x882   :  { %703 = vrot.lane.b32.xlu1 %v2147_v46, %s2420_s0 }
 0x892   :  { %v678_v50 = vpop.permute.xlu0 %677 }
 0x893   :  { %v2760_v51 = vadd.f32 %v678_v50, %v670_v49 }
 0x895   :  { %2148 = vtanh.f32 %v2760_v51  ;;  %v812_v42 = vrot.slane %v2760_v51, 4 }
 0x89b   :  { %v2149_v53 = vpop.eup %2148 }
 0x89c   :  { %697 = vrot.lane.b32.xlu2 %v2149_v53, %s2420_s0 }
 0x8f4   :  { %v704_v52 = vpop.permute.xlu1 %703 }
 0x8f5   :  { %v2764_v31 = vmul.f32 %v704_v52, %v663_v37 }
 0x8f6   :  { %v698_v54 = vpop.permute.xlu2 %697 }
 0x8f7   :  { %v717_v56 = vrot.slane %v2764_v31, 4  ;;  %v700_v58 = vmul.f32 %v698_v54, %v644_v20 }
 0x8f9   :  { %718 = vrot.lane.b32.xlu1 %v717_v56, %s2421_s3  ;;  %708 = vrot.lane.b32.xlu0 %v700_v58, %s2422_s16 }
 0x96b   :  { %v719_v47 = vpop.permute.xlu1 %718  ;;  %v709_v34 = vpop.permute.xlu0 %708 }
 0x96c   :  { %711 = vst.msk [vmem:[#allocation2 + $0x8] sm:$0xf0] %vm422_vm4, %v709_v34  ;;  %v721_v60 = vsel %vm287_vm10, %v709_v34, %v719_v47 }
 0x96d   :  { %v723_v6 = vrot.slane %v721_v60, 4 }
 0x96f   :  { %2034 = vmatmul.msk.f32.vlgmr.msrb.gmra.mxu2 %vm289_vm11, %v723_v6  ;;  %2035 = vmatmul.msk.f32.vlgmr.msrb.gmra.mxu3 %vm289_vm11, %v723_v6 }
 0x9f2   :  { %v743_v62 = vpop.f32.mrf.mxu2  ;;  %v763_v63 = vpop.f32.mrf.mxu3 }
 0x9f3   :  { %v766_v0 = vadd.f32 %v743_v62, %v2775_v61  ;;  %v768_v1 = vrot.slane %v763_v63, 4 }
 0x9f5   :  { %2150 = vtanh.f32 %v766_v0  ;;  %v770_v2 = vadd.f32 %v768_v1, %v2511_v13  ;;  %v2036_v14 = vmul.f32 -1.442695, %v766_v0 }
 0x9f7   :  { %2152 = vtanh.f32 %v770_v2  ;;  %v2037_v5 = vmul.f32 -1.442695, %v770_v2 }
 0x9f9   :  { %2154 = vpow2.f32 %v2037_v5 }
 0x9fb   :  { %v2151_v3 = vpop.eup %2150 }
 0x9fc   :  { %816 = vrot.lane.b32.xlu0 %v2151_v3, %s2420_s0 }
 0x9fd   :  { %v2153_v4 = vpop.eup %2152 }
 0x9fe   :  { %830 = vrot.lane.b32.xlu2 %v2153_v4, %s2420_s0 }
 0x9ff   :  { %v2155_v12 = vpop.eup %2154 }
 0xa00   :  { %v793_v27 = vadd.f32 1.0, %v2155_v12 }
 0xa02   :  { %2156 = vrcp.f32 %v793_v27  ;;  %v805_v8 = vand.u32 2147483648, %v793_v27  ;;  %vm799_vm13 = vweird.f32 %v793_v27  ;;  %v803_v9 = vand.u32 2147483647, %v793_v27 }
 0xa03   :  { %2158 = vpow2.f32 %v2036_v14 }
 0xa04   :  { %v806_v24 = vor.u32 1.1754944e-38, %v805_v8  ;;  %vm804_vm15 = vcmp.eq.f32.partialorder %v803_v9, 8.507059e+37 }
 0xa08   :  { %v2157_v16 = vpop.eup %2156 }
 0xa09   :  { %v795_v19 = vmul.f32 %v2157_v16, %v793_v27  ;;  %v2159_v21 = vpop.eup %2158  ;;  %vm800_vm12 = vweird.f32 %v2157_v16 }
 0xa0a   :  { %v774_v22 = vadd.f32 1.0, %v2159_v21  ;;  %vm801_vm14 = vmor %vm799_vm13, %vm800_vm12 }
 0xa0b   :  { %v796_v15 = vsub.f32 1.0, %v795_v19 }
 0xa0c   :  { %2160 = vrcp.f32 %v774_v22  ;;  %v786_v59 = vand.u32 2147483648, %v774_v22  ;;  %vm780_vm1 = vweird.f32 %v774_v22  ;;  %v784_v37 = vand.u32 2147483647, %v774_v22 }
 0xa0d   :  { %v797_v23 = vmul.f32 %v2157_v16, %v796_v15 }
 0xa0e   :  { %v787_v39 = vor.u32 1.1754944e-38, %v786_v59  ;;  %vm785_vm3 = vcmp.eq.f32.partialorder %v784_v37, 8.507059e+37 }
 0xa0f   :  { %v798_v17 = vadd.f32 %v2157_v16, %v797_v23 }
 0xa11   :  { %v802_v10 = vsel %vm801_vm14, %v2157_v16, %v798_v17 }
 0xa12   :  { %v2161_v25 = vpop.eup %2160  ;;  %v807_v29 = vsel %vm804_vm15, %v806_v24, %v802_v10 }
 0xa13   :  { %v776_v32 = vmul.f32 %v2161_v25, %v774_v22  ;;  %vm781_vm0 = vweird.f32 %v2161_v25  ;;  %v828_v49 = vmul.f32 %v826_v44, %v807_v29 }
 0xa14   :  { %vm782_vm2 = vmor %vm780_vm1, %vm781_vm0 }
 0xa15   :  { %v777_v33 = vsub.f32 1.0, %v776_v32 }
 0xa17   :  { %v778_v35 = vmul.f32 %v2161_v25, %v777_v33 }
 0xa19   :  { %v779_v36 = vadd.f32 %v2161_v25, %v778_v35 }
 0xa1b   :  { %v783_v55 = vsel %vm782_vm2, %v2161_v25, %v779_v36 }
 0xa1c   :  { %v788_v20 = vsel %vm785_vm3, %v787_v39, %v783_v55 }
 0xa1d   :  { %v814_v43 = vmul.f32 %v812_v42, %v788_v20 }
 0xa58   :  { %v831_v26 = vpop.permute.xlu2 %830 }
 0xa59   :  { %v833_v30 = vmul.f32 %v831_v26, %v807_v29 }
 0xa5b   :  { %835 = vrot.lane.b32.xlu1 %v833_v30, %s2420_s0 }
 0xa6e   :  { %v817_v40 = vpop.permute.xlu0 %816 }
 0xa6f   :  { %v819_v41 = vmul.f32 %v817_v40, %v788_v20 }
 0xa71   :  { %821 = vrot.lane.b32.xlu2 %v819_v41, %s2420_s0 }
 0xacb   :  { %v822_v46 = vpop.permute.xlu2 %821 }
 0xacc   :  { %v2785_v48 = vadd.f32 %v822_v46, %v814_v43 }
 0xacd   :  { %v836_v50 = vpop.permute.xlu1 %835 }
 0xace   :  { %2162 = vtanh.f32 %v2785_v48  ;;  %v2788_v53 = vadd.f32 %v836_v50, %v828_v49 }
 0xad0   :  { %2164 = vtanh.f32 %v2788_v53  ;;  %v969_v46 = vrot.slane %v2788_v53, 4 }
 0xad4   :  { %v2163_v52 = vpop.eup %2162 }
 0xad5   :  { %841 = vrot.lane.b32.xlu1 %v2163_v52, %s2420_s0 }
 0xad6   :  { %v2165_v54 = vpop.eup %2164 }
 0xad7   :  { %847 = vrot.lane.b32.xlu0 %v2165_v54, %s2420_s0 }
 0xb47   :  { %v842_v51 = vpop.permute.xlu1 %841 }
 0xb48   :  { %v844_v56 = vmul.f32 %v842_v51, %v788_v20  ;;  %v955_v20 = vrot.slane %v2785_v48, 4 }
 0xb49   :  { %v848_v45 = vpop.permute.xlu0 %847 }
 0xb4a   :  { %852 = vrot.lane.b32.xlu2 %v844_v56, %s2422_s16  ;;  %v2794_v58 = vmul.f32 %v848_v45, %v807_v29 }
 0xb4c   :  { %v861_v47 = vrot.slane %v2794_v58, 4 }
 0xb4e   :  { %862 = vrot.lane.b32.xlu0 %v861_v47, %s2421_s3 }
 0xba4   :  { %v2798_v34 = vpop.permute.xlu2 %852 }
 0xbc0   :  { %v863_v60 = vpop.permute.xlu0 %862 }
 0xbc1   :  { %v865_v6 = vsel %vm287_vm10, %v2798_v34, %v863_v60 }
 0xbc2   :  { %2038 = vmatmul.msk.f32.vlgmr.msra.gmra.mxu0 %vm289_vm11, %v865_v6  ;;  %2039 = vmatmul.msk.f32.vlgmr.msrb.gmra.mxu1 %vm289_vm11, %v865_v6 }
 0xc3f   :  { %v886_v62 = vpop.f32.mrf.mxu0  ;;  %v906_v63 = vpop.f32.mrf.mxu1 }
 0xc40   :  { %v910_v0 = vrot.slane %v886_v62, 4  ;;  %v913_v1 = vadd.f32 %v906_v63, %v2511_v13  ;;  %v2833_v63 = vadd.f32 %v2661_v28, %v2517_v18 }
 0xc42   :  { %v912_v2 = vadd.f32 %v910_v0, %v2775_v61  ;;  %2166 = vtanh.f32 %v913_v1  ;;  %v2041_v14 = vmul.f32 -1.442695, %v913_v1 }
 0xc44   :  { %2168 = vtanh.f32 %v912_v2  ;;  %v2040_v5 = vmul.f32 -1.442695, %v912_v2 }
 0xc46   :  { %2170 = vpow2.f32 %v2040_v5 }
 0xc48   :  { %v2167_v3 = vpop.eup %2166 }
 0xc49   :  { %973 = vrot.lane.b32.xlu1 %v2167_v3, %s2420_s0 }
 0xc4a   :  { %v2169_v4 = vpop.eup %2168 }
 0xc4b   :  { %959 = vrot.lane.b32.xlu2 %v2169_v4, %s2420_s0 }
 0xc4c   :  { %v2171_v12 = vpop.eup %2170 }
 0xc4d   :  { %v917_v27 = vadd.f32 1.0, %v2171_v12 }
 0xc4f   :  { %2172 = vrcp.f32 %v917_v27  ;;  %v929_v23 = vand.u32 2147483648, %v917_v27  ;;  %vm923_vm6 = vweird.f32 %v917_v27  ;;  %v927_v17 = vand.u32 2147483647, %v917_v27 }
 0xc50   :  { %2174 = vpow2.f32 %v2041_v14 }
 0xc51   :  { %v930_v9 = vor.u32 1.1754944e-38, %v929_v23  ;;  %vm928_vm8 = vcmp.eq.f32.partialorder %v927_v17, 8.507059e+37 }
 0xc55   :  { %v2173_v16 = vpop.eup %2172 }
 0xc56   :  { %v919_v19 = vmul.f32 %v2173_v16, %v917_v27  ;;  %v2175_v15 = vpop.eup %2174  ;;  %vm924_vm5 = vweird.f32 %v2173_v16 }
 0xc57   :  { %v936_v21 = vadd.f32 1.0, %v2175_v15  ;;  %vm925_vm7 = vmor %vm923_vm6, %vm924_vm5 }
 0xc58   :  { %v920_v13 = vsub.f32 1.0, %v919_v19 }
 0xc59   :  { %2176 = vrcp.f32 %v936_v21  ;;  %v948_v35 = vand.u32 2147483648, %v936_v21  ;;  %vm942_vm13 = vweird.f32 %v936_v21  ;;  %v946_v36 = vand.u32 2147483647, %v936_v21 }
 0xc5a   :  { %v921_v61 = vmul.f32 %v2173_v16, %v920_v13 }
 0xc5b   :  { %v949_v37 = vor.u32 1.1754944e-38, %v948_v35  ;;  %vm947_vm15 = vcmp.eq.f32.partialorder %v946_v36, 8.507059e+37 }
 0xc5c   :  { %v922_v22 = vadd.f32 %v2173_v16, %v921_v61 }
 0xc5e   :  { %v926_v8 = vsel %vm925_vm7, %v2173_v16, %v922_v22 }
 0xc5f   :  { %v2177_v10 = vpop.eup %2176  ;;  %v931_v25 = vsel %vm928_vm8, %v930_v9, %v926_v8 }
 0xc60   :  { %v938_v29 = vmul.f32 %v2177_v10, %v936_v21  ;;  %vm943_vm12 = vweird.f32 %v2177_v10  ;;  %v957_v41 = vmul.f32 %v955_v20, %v931_v25 }
 0xc61   :  { %vm944_vm14 = vmor %vm942_vm13, %vm943_vm12 }
 0xc62   :  { %v939_v30 = vsub.f32 1.0, %v938_v29 }
 0xc64   :  { %v940_v32 = vmul.f32 %v2177_v10, %v939_v30 }
 0xc66   :  { %v941_v33 = vadd.f32 %v2177_v10, %v940_v32 }
 0xc68   :  { %v945_v59 = vsel %vm944_vm14, %v2177_v10, %v941_v33 }
 0xc69   :  { %v950_v39 = vsel %vm947_vm15, %v949_v37, %v945_v59 }
 0xc6a   :  { %v971_v49 = vmul.f32 %v969_v46, %v950_v39 }
 0xca5   :  { %v960_v24 = vpop.permute.xlu2 %959 }
 0xca6   :  { %v962_v26 = vmul.f32 %v960_v24, %v931_v25 }
 0xca8   :  { %964 = vrot.lane.b32.xlu1 %v962_v26, %s2420_s0 }
 0xcbb   :  { %v974_v55 = vpop.permute.xlu1 %973 }
 0xcbc   :  { %v976_v40 = vmul.f32 %v974_v55, %v950_v39 }
 0xcbe   :  { %978 = vrot.lane.b32.xlu0 %v976_v40, %s2420_s0 }
 0xd1a   :  { %v965_v42 = vpop.permute.xlu1 %964 }
 0xd1b   :  { %v2811_v43 = vadd.f32 %v965_v42, %v957_v41 }
 0xd1d   :  { %2178 = vtanh.f32 %v2811_v43 }
 0xd23   :  { %v2179_v44 = vpop.eup %2178 }
 0xd24   :  { %984 = vrot.lane.b32.xlu0 %v2179_v44, %s2420_s0 }
 0xd30   :  { %v979_v50 = vpop.permute.xlu0 %978 }
 0xd31   :  { %v2816_v52 = vadd.f32 %v979_v50, %v971_v49  ;;  %v1099_v49 = vrot.slane %v2811_v43, 4 }
 0xd33   :  { %2180 = vtanh.f32 %v2816_v52  ;;  %v1113_v20 = vrot.slane %v2816_v52, 4 }
 0xd39   :  { %v2181_v54 = vpop.eup %2180 }
 0xd3a   :  { %990 = vrot.lane.b32.xlu2 %v2181_v54, %s2420_s0 }
 0xd94   :  { %v991_v48 = vpop.permute.xlu2 %990 }
 0xd95   :  { %v2820_v51 = vmul.f32 %v991_v48, %v950_v39 }
 0xd96   :  { %v985_v56 = vpop.permute.xlu0 %984 }
 0xd97   :  { %v1004_v45 = vrot.slane %v2820_v51, 4  ;;  %v987_v47 = vmul.f32 %v985_v56, %v931_v25 }
 0xd99   :  { %1005 = vrot.lane.b32.xlu2 %v1004_v45, %s2421_s3  ;;  %995 = vrot.lane.b32.xlu1 %v987_v47, %s2422_s16 }
 0xdf3   :  { %v1006_v53 = vpop.permute.xlu2 %1005 }
 0xe0b   :  { %v2825_v60 = vpop.permute.xlu1 %995 }
 0xe0c   :  { %v1008_v6 = vsel %vm287_vm10, %v2825_v60, %v1006_v53 }
 0xe0d   :  { %v1010_v62 = vrot.slane %v1008_v6, 4 }
 0xe0f   :  { %2042 = vmatmul.msk.f32.vlgmr.msra.gmra.mxu2 %vm289_vm11, %v1010_v62  ;;  %2043 = vmatmul.msk.f32.vlgmr.msra.gmra.mxu3 %vm289_vm11, %v1010_v62 }
 0xe92   :  { %v1030_v0 = vpop.f32.mrf.mxu2  ;;  %v1050_v1 = vpop.f32.mrf.mxu3 }
 0xe93   :  { %v1053_v2 = vadd.f32 %v1030_v0, %v2833_v63  ;;  %v1055_v3 = vrot.slane %v1050_v1, 4 }
 0xe95   :  { %2182 = vtanh.f32 %v1053_v2  ;;  %v1057_v4 = vadd.f32 %v1055_v3, %v2509_v11  ;;  %v2044_v27 = vmul.f32 -1.442695, %v1053_v2 }
 0xe97   :  { %2184 = vtanh.f32 %v1057_v4  ;;  %v2045_v14 = vmul.f32 -1.442695, %v1057_v4 }
 0xe98   :  { %2186 = vpow2.f32 %v2044_v27 }
 0xe99   :  { %2188 = vpow2.f32 %v2045_v14 }
 0xe9b   :  { %v2183_v5 = vpop.eup %2182 }
 0xe9c   :  { %1103 = vrot.lane.b32.xlu1 %v2183_v5, %s2420_s0 }
 0xe9d   :  { %v2185_v12 = vpop.eup %2184 }
 0xe9e   :  { %1117 = vrot.lane.b32.xlu0 %v2185_v12, %s2420_s0  ;;  %v2187_v18 = vpop.eup %2186 }
 0xe9f   :  { %v2189_v28 = vpop.eup %2188  ;;  %v1061_v16 = vadd.f32 1.0, %v2187_v18 }
 0xea0   :  { %v1080_v19 = vadd.f32 1.0, %v2189_v28 }
 0xea1   :  { %2190 = vrcp.f32 %v1061_v16  ;;  %v1073_v10 = vand.u32 2147483648, %v1061_v16  ;;  %vm1067_vm1 = vweird.f32 %v1061_v16  ;;  %v1071_v24 = vand.u32 2147483647, %v1061_v16 }
 0xea2   :  { %2192 = vrcp.f32 %v1080_v19  ;;  %v1092_v29 = vand.u32 2147483648, %v1080_v19  ;;  %vm1086_vm5 = vweird.f32 %v1080_v19  ;;  %v1090_v32 = vand.u32 2147483647, %v1080_v19 }
 0xea3   :  { %v1074_v30 = vor.u32 1.1754944e-38, %v1073_v10  ;;  %vm1072_vm6 = vcmp.eq.f32.partialorder %v1071_v24, 8.507059e+37 }
 0xea4   :  { %v1093_v37 = vor.u32 1.1754944e-38, %v1092_v29  ;;  %vm1091_vm8 = vcmp.eq.f32.partialorder %v1090_v32, 8.507059e+37  ;;  %v1300_v29 = vld [vmem:[#allocation8 + $0x50] sm:$0xff] }
 0xea7   :  { %v2191_v13 = vpop.eup %2190 }
 0xea8   :  { %v2193_v15 = vpop.eup %2192  ;;  %v1063_v61 = vmul.f32 %v2191_v13, %v1061_v16  ;;  %vm1068_vm0 = vweird.f32 %v2191_v13 }
 0xea9   :  { %v1082_v21 = vmul.f32 %v2193_v15, %v1080_v19  ;;  %vm1069_vm2 = vmor %vm1067_vm1, %vm1068_vm0  ;;  %vm1087_vm3 = vweird.f32 %v2193_v15  ;;  %vm281_vm0 = vcmask 523524   ;;  %vm428_vm1 = vcmask 519424  }
 0xeaa   :  { %v1064_v22 = vsub.f32 1.0, %v1063_v61  ;;  %vm1088_vm7 = vmor %vm1086_vm5, %vm1087_vm3 }
 0xeab   :  { %v1083_v23 = vsub.f32 1.0, %v1082_v21 }
 0xeac   :  { %v1065_v17 = vmul.f32 %v2191_v13, %v1064_v22 }
 0xead   :  { %v1084_v8 = vmul.f32 %v2193_v15, %v1083_v23 }
 0xeae   :  { %v1066_v9 = vadd.f32 %v2191_v13, %v1065_v17 }
 0xeaf   :  { %v1085_v25 = vadd.f32 %v2193_v15, %v1084_v8 }
 0xeb0   :  { %v1070_v26 = vsel %vm1069_vm2, %v2191_v13, %v1066_v9 }
 0xeb1   :  { %v1075_v35 = vsel %vm1072_vm6, %v1074_v30, %v1070_v26  ;;  %v1089_v36 = vsel %vm1088_vm7, %v2193_v15, %v1085_v25  ;;  %v1302_v25 = vld [vmem:[#allocation8 + $0x70] sm:$0xff]  ;;  %v1301_v26 = vld [vmem:[#allocation8 + $0x60] sm:$0xff] }
 0xeb2   :  { %v1094_v39 = vsel %vm1091_vm8, %v1093_v37, %v1089_v36  ;;  %v1101_v50 = vmul.f32 %v1099_v49, %v1075_v35  ;;  %1327 = vmatpush.msrb.mxu2 %v1302_v25  ;;  %v1299_v30 = vld [vmem:[#allocation8 + $0x40] sm:$0xff] }
 0xeb3   :  { %v1115_v41 = vmul.f32 %v1113_v20, %v1094_v39  ;;  %v1297_v36 = vld [vmem:[#allocation8 + $0x20] sm:$0xff] }
 0xeb4   :  { %1328 = vmatpush.msrb.mxu2 %v1301_v26  ;;  %v1295_v37 = vld [vmem:[#allocation8] sm:$0xff] }
 0xeb6   :  { %1329 = vmatpush.msrb.mxu2 %v1300_v29 }
 0xeb8   :  { %1330 = vmatpush.msrb.mxu2 %v1299_v30 }
 0xf0e   :  { %v1104_v33 = vpop.permute.xlu1 %1103 }
 0xf0f   :  { %v1106_v59 = vmul.f32 %v1104_v33, %v1075_v35 }
 0xf10   :  { %v1118_v55 = vpop.permute.xlu0 %1117 }
 0xf11   :  { %1108 = vrot.lane.b32.xlu0 %v1106_v59, %s2420_s0  ;;  %v1120_v40 = vmul.f32 %v1118_v55, %v1094_v39  ;;  %v1296_v59 = vld [vmem:[#allocation8 + $0x10] sm:$0xff] }
 0xf13   :  { %1122 = vrot.lane.b32.xlu2 %v1120_v40, %s2420_s0  ;;  %v2868_v40 = vld [vmem:[%s3081_s6] ss:$0 sm:$0xff] }
 0xf6d   :  { %v1123_v42 = vpop.permute.xlu2 %1122 }
 0xf6e   :  { %v1125_v44 = vadd.f32 %v1123_v42, %v1115_v41 }
 0xf70   :  { %2194 = vtanh.f32 %v1125_v44  ;;  %v1256_v17 = vrot.slane %v1125_v44, 4 }
 0xf76   :  { %v2195_v46 = vpop.eup %2194 }
 0xf77   :  { %1134 = vrot.lane.b32.xlu1 %v2195_v46, %s2420_s0 }
 0xf83   :  { %v1109_v54 = vpop.permute.xlu0 %1108 }
 0xf84   :  { %v2844_v48 = vadd.f32 %v1109_v54, %v1101_v50 }
 0xf86   :  { %2196 = vtanh.f32 %v2844_v48 }
 0xf8c   :  { %v2197_v56 = vpop.eup %2196 }
 0xf8d   :  { %1128 = vrot.lane.b32.xlu2 %v2197_v56, %s2420_s0 }
 0xfe7   :  { %v1129_v45 = vpop.permute.xlu2 %1128 }
 0xfe8   :  { %v1131_v52 = vmul.f32 %v1129_v45, %v1075_v35  ;;  %v1298_v35 = vld [vmem:[#allocation8 + $0x30] sm:$0xff] }
 0xfe9   :  { %v1135_v47 = vpop.permute.xlu1 %1134  ;;  %1331 = vmatpush.msrb.mxu2 %v1298_v35 }
 0xfea   :  { %1139 = vrot.lane.b32.xlu0 %v1131_v52, %s2422_s16  ;;  %v1137_v53 = vmul.f32 %v1135_v47, %v1094_v39 }
 0xfeb   :  { %1332 = vmatpush.msrb.mxu2 %v1297_v36 }
 0xfec   :  { %v1148_v6 = vrot.slane %v1137_v53, 4 }
 0xfed   :  { %1333 = vmatpush.msrb.mxu2 %v1296_v59 }
 0xfee   :  { %1149 = vrot.lane.b32.xlu1 %v1148_v6, %s2421_s3 }
 0xfef   :  { %1334 = vmatpush.msrb.mxu2 %v1295_v37 }
0x105c   :  { %v2850_v62 = vpop.permute.xlu0 %1139 }
0x1060   :  { %v1150_v43 = vpop.permute.xlu1 %1149 }
0x1061   :  { %v1152_v0 = vsel %vm287_vm10, %v2850_v62, %v1150_v43 }
0x1062   :  { %2046 = vmatmul.msk.f32.vlgmr.msrb.gmra.mxu0 %vm289_vm11, %v1152_v0  ;;  %2047 = vmatmul.msk.f32.vlgmr.msra.gmra.mxu1 %vm289_vm11, %v1152_v0 }
0x10df   :  { %v1193_v1 = vpop.f32.mrf.mxu1 }
0x10e0   :  { %v1200_v2 = vadd.f32 %v1193_v1, %v2509_v11 }
0x10e2   :  { %2198 = vtanh.f32 %v1200_v2  ;;  %v2049_v4 = vmul.f32 -1.442695, %v1200_v2 }
0x10e4   :  { %2200 = vpow2.f32 %v2049_v4 }
0x10e8   :  { %v2199_v3 = vpop.eup %2198 }
0x10e9   :  { %1260 = vrot.lane.b32.xlu2 %v2199_v3, %s2420_s0 }
0x10ea   :  { %v2201_v5 = vpop.eup %2200 }
0x10eb   :  { %v1223_v12 = vadd.f32 1.0, %v2201_v5 }
0x10ed   :  { %2202 = vrcp.f32 %v1223_v12  ;;  %v1235_v19 = vand.u32 2147483648, %v1223_v12  ;;  %vm1229_vm13 = vweird.f32 %v1223_v12  ;;  %v1233_v11 = vand.u32 2147483647, %v1223_v12 }
0x10ef   :  { %v1236_v15 = vor.u32 1.1754944e-38, %v1235_v19  ;;  %vm1234_vm15 = vcmp.eq.f32.partialorder %v1233_v11, 8.507059e+37 }
0x10f1   :  { %1144 = vrot.lane.b32.xlu2 %v1137_v53, %s2421_s3 }
0x10f3   :  { %v2203_v27 = vpop.eup %2202 }
0x10f4   :  { %v1225_v14 = vmul.f32 %v2203_v27, %v1223_v12  ;;  %vm1230_vm12 = vweird.f32 %v2203_v27 }
0x10f5   :  { %vm1231_vm14 = vmor %vm1229_vm13, %vm1230_vm12 }
0x10f6   :  { %v1226_v18 = vsub.f32 1.0, %v1225_v14  ;;  %v2883_v14 = vld [vmem:[#allocation9 + $0x20] sm:$0xff] }
0x10f8   :  { %v1227_v28 = vmul.f32 %v2203_v27, %v1226_v18  ;;  %v2887_v18 = vld [vmem:[#allocation9 + $0x10] sm:$0xff] }
0x10fa   :  { %v1228_v16 = vadd.f32 %v2203_v27, %v1227_v28  ;;  %v2892_v28 = vld [vmem:[#allocation9] sm:$0xff] }
0x10fc   :  { %v1232_v13 = vsel %vm1231_vm14, %v2203_v27, %v1228_v16  ;;  %v2881_v27 = vld [vmem:[#allocation9 + $0x30] sm:$0xff] }
0x10fd   :  { %v1237_v21 = vsel %vm1234_vm15, %v1236_v15, %v1232_v13  ;;  %1406 = vmatpush.msrb.mxu3 %v2881_v27  ;;  %1476 = vmatpush.msra.mxu0 %v2881_v27 }
0x10fe   :  { %v1258_v8 = vmul.f32 %v1256_v17, %v1237_v21  ;;  %1748 = vmatpush.msrb.mxu1 %v2881_v27 }
0x10ff   :  { %1407 = vmatpush.msrb.mxu3 %v2883_v14  ;;  %1477 = vmatpush.msra.mxu0 %v2883_v14 }
0x1100   :  { %1749 = vmatpush.msrb.mxu1 %v2883_v14 }
0x1101   :  { %1408 = vmatpush.msrb.mxu3 %v2887_v18  ;;  %1478 = vmatpush.msra.mxu0 %v2887_v18 }
0x1102   :  { %1750 = vmatpush.msrb.mxu1 %v2887_v18 }
0x1103   :  { %1409 = vmatpush.msrb.mxu3 %v2892_v28  ;;  %1479 = vmatpush.msra.mxu0 %v2892_v28 }
0x1104   :  { %1751 = vmatpush.msrb.mxu1 %v2892_v28 }
0x1105   :  { %1542 = vmatpush.msrb.mxu0 %v2881_v27  ;;  %1612 = vmatpush.msra.mxu3 %v2881_v27 }
0x1107   :  { %1543 = vmatpush.msrb.mxu0 %v2883_v14  ;;  %1613 = vmatpush.msra.mxu3 %v2883_v14 }
0x1109   :  { %1544 = vmatpush.msrb.mxu0 %v2887_v18  ;;  %1614 = vmatpush.msra.mxu3 %v2887_v18 }
0x110b   :  { %1545 = vmatpush.msrb.mxu0 %v2892_v28  ;;  %1615 = vmatpush.msra.mxu3 %v2892_v28 }
0x1143   :  { %v1261_v61 = vpop.permute.xlu2 %1260 }
0x1144   :  { %v1263_v22 = vmul.f32 %v1261_v61, %v1237_v21 }
0x1146   :  { %1265 = vrot.lane.b32.xlu0 %v1263_v22, %s2420_s0 }
0x114b   :  { %v1145_v23 = vpop.permute.xlu2 %1144 }
0x114c   :  { %1147 = vst.msk [vmem:[#allocation2] sm:$0xf0] %vm281_vm0, %v1145_v23 }
0x11b8   :  { %v1266_v9 = vpop.permute.xlu0 %1265 }
0x11b9   :  { %v1268_v10 = vadd.f32 %v1266_v9, %v1258_v8 }
0x11bb   :  { %2204 = vtanh.f32 %v1268_v10 }
0x11c1   :  { %v2205_v24 = vpop.eup %2204 }
0x11c2   :  { %1277 = vrot.lane.b32.xlu1 %v2205_v24, %s2420_s0 }
0x1234   :  { %v1278_v32 = vpop.permute.xlu1 %1277 }
0x1235   :  { %v1280_v33 = vmul.f32 %v1278_v32, %v1237_v21 }
0x1237   :  { %1287 = vrot.lane.b32.xlu0 %v1280_v33, %s2421_s3 }
0x12a9   :  { %v1288_v55 = vpop.permute.xlu0 %1287 }
0x12aa   :  { %1290 = vst.msk [vmem:[#allocation2] sm:$0xf] %vm428_vm1, %v1288_v55 }
0x12b1   :  { %v1291_v39 = vld [vmem:[#allocation2] sm:$0xff] }
0x12b2   :  { %2050 = vmatmul.msk.f32.vlgmr.msrb.gmra.mxu2 %vm289_vm11, %v1291_v39 }
0x1335   :  { %v1336_v20 = vpop.f32.mrf.mxu2 }
0x1336   :  { %v2871_v41 = vadd.f32 %v2868_v40, %v1336_v20 }
0x1338   :  { %2206 = vtanh.f32 %v2871_v41  ;;  %v2054_v44 = vmul.f32 -1.442695, %v2871_v41 }
0x133a   :  { %2208 = vpow2.f32 %v2054_v44 }
0x133e   :  { %v2207_v42 = vpop.eup %2206 }
0x133f   :  { %1374 = vrot.lane.b32.xlu1 %v2207_v42, %s2420_s0 }
0x1340   :  { %v2209_v46 = vpop.eup %2208 }
0x1341   :  { %v1355_v49 = vadd.f32 1.0, %v2209_v46 }
0x1343   :  { %2210 = vrcp.f32 %v1355_v49  ;;  %v1367_v47 = vand.u32 2147483648, %v1355_v49  ;;  %vm1361_vm3 = vweird.f32 %v1355_v49  ;;  %v1365_v53 = vand.u32 2147483647, %v1355_v49 }
0x1345   :  { %v1368_v43 = vor.u32 1.1754944e-38, %v1367_v47  ;;  %vm1366_vm6 = vcmp.eq.f32.partialorder %v1365_v53, 8.507059e+37 }
0x1349   :  { %v2211_v50 = vpop.eup %2210 }
0x134a   :  { %v1357_v54 = vmul.f32 %v2211_v50, %v1355_v49  ;;  %vm1362_vm2 = vweird.f32 %v2211_v50 }
0x134b   :  { %vm1363_vm5 = vmor %vm1361_vm3, %vm1362_vm2 }
0x134c   :  { %v1358_v56 = vsub.f32 1.0, %v1357_v54 }
0x134e   :  { %v1359_v45 = vmul.f32 %v2211_v50, %v1358_v56 }
0x1350   :  { %v1360_v52 = vadd.f32 %v2211_v50, %v1359_v45 }
0x1352   :  { %v1364_v6 = vsel %vm1363_vm5, %v2211_v50, %v1360_v52  ;;  %v2933_v50 = vpop.f32.mrf.mxu0 }
0x1353   :  { %v1369_v1 = vsel %vm1366_vm6, %v1368_v43, %v1364_v6 }
0x1354   :  { %v1372_v3 = vmul.f32 0.0, %v1369_v1 }
0x13b1   :  { %v1375_v0 = vpop.permute.xlu1 %1374 }
0x13b2   :  { %v1377_v2 = vmul.f32 %v1375_v0, %v1369_v1 }
0x13b4   :  { %1379 = vrot.lane.b32.xlu2 %v1377_v2, %s2420_s0 }
0x140e   :  { %v1380_v4 = vpop.permute.xlu2 %1379 }
0x140f   :  { %v2877_v5 = vadd.f32 %v1380_v4, %v1372_v3 }
0x1411   :  { %2212 = vtanh.f32 %v2877_v5  ;;  %v1439_v59 = vrot.slane %v2877_v5, 4 }
0x1417   :  { %v2213_v12 = vpop.eup %2212 }
0x1418   :  { %1385 = vrot.lane.b32.xlu0 %v2213_v12, %s2420_s0 }
0x148a   :  { %v1386_v16 = vpop.permute.xlu0 %1385 }
0x148b   :  { %v1388_v19 = vmul.f32 %v1386_v16, %v1369_v1 }
0x148d   :  { %1390 = vrot.lane.b32.xlu1 %v1388_v19, %s2422_s16 }
0x14ff   :  { %v1391_v11 = vpop.permute.xlu1 %1390 }
0x1500   :  { %2055 = vmatmul.msk.f32.vlgmr.msrb.gmra.mxu3 %vm287_vm10, %v1391_v11 }
0x1501   :  { %1814 = vmatpush.msrb.mxu3 %v2881_v27 }
0x1503   :  { %1815 = vmatpush.msrb.mxu3 %v2883_v14 }
0x1505   :  { %1816 = vmatpush.msrb.mxu3 %v2887_v18 }
0x1507   :  { %1817 = vmatpush.msrb.mxu3 %v2892_v28 }
0x1583   :  { %v1411_v13 = vpop.f32.mrf.mxu3 }
0x1584   :  { %v1415_v15 = vrot.slane %v1411_v13, 4 }
0x1586   :  { %v1417_v61 = vadd.f32 %v1415_v15, %v2871_v41 }
0x1588   :  { %2214 = vtanh.f32 %v1417_v61  ;;  %v2056_v22 = vmul.f32 -1.442695, %v1417_v61 }
0x158a   :  { %2216 = vpow2.f32 %v2056_v22 }
0x158e   :  { %v2215_v21 = vpop.eup %2214 }
0x158f   :  { %1443 = vrot.lane.b32.xlu2 %v2215_v21, %s2420_s0 }
0x1590   :  { %v2217_v23 = vpop.eup %2216 }
0x1591   :  { %v1421_v17 = vadd.f32 1.0, %v2217_v23 }
0x1593   :  { %2218 = vrcp.f32 %v1421_v17  ;;  %v1433_v26 = vand.u32 2147483648, %v1421_v17  ;;  %vm1427_vm8 = vweird.f32 %v1421_v17  ;;  %v1431_v29 = vand.u32 2147483647, %v1421_v17 }
0x1595   :  { %v1434_v32 = vor.u32 1.1754944e-38, %v1433_v26  ;;  %vm1432_vm13 = vcmp.eq.f32.partialorder %v1431_v29, 8.507059e+37 }
0x1597   :  { %857 = vrot.lane.b32.xlu2 %v2794_v58, %s2421_s3 }
0x1599   :  { %v2219_v8 = vpop.eup %2218 }
0x159a   :  { %v1423_v9 = vmul.f32 %v2219_v8, %v1421_v17  ;;  %vm1428_vm7 = vweird.f32 %v2219_v8 }
0x159b   :  { %vm1429_vm12 = vmor %vm1427_vm8, %vm1428_vm7 }
0x159c   :  { %v1424_v10 = vsub.f32 1.0, %v1423_v9 }
0x159e   :  { %v1425_v24 = vmul.f32 %v2219_v8, %v1424_v10 }
0x15a0   :  { %v1426_v25 = vadd.f32 %v2219_v8, %v1425_v24 }
0x15a2   :  { %v1430_v30 = vsel %vm1429_vm12, %v2219_v8, %v1426_v25 }
0x15a3   :  { %v1435_v58 = vsel %vm1432_vm13, %v1434_v32, %v1430_v30 }
0x15a4   :  { %v1441_v37 = vmul.f32 %v1439_v59, %v1435_v58 }
0x15e9   :  { %v1444_v33 = vpop.permute.xlu2 %1443 }
0x15ea   :  { %v1446_v35 = vmul.f32 %v1444_v33, %v1435_v58 }
0x15ec   :  { %1448 = vrot.lane.b32.xlu0 %v1446_v35, %s2420_s0 }
0x15f1   :  { %v858_v36 = vpop.permute.xlu2 %857 }
0x15f2   :  { %860 = vst.msk [vmem:[#allocation2 + $0x8] sm:$0xf0] %vm281_vm0, %v858_v36 }
0x15f4   :  { %1000 = vrot.lane.b32.xlu0 %v2820_v51, %s2421_s3 }
0x165e   :  { %v1449_v55 = vpop.permute.xlu0 %1448 }
0x165f   :  { %v1451_v39 = vadd.f32 %v1449_v55, %v1441_v37 }
0x1661   :  { %2220 = vtanh.f32 %v1451_v39  ;;  %v1506_v19 = vrot.slane %v1451_v39, 4 }
0x1666   :  { %v1001_v20 = vpop.permute.xlu0 %1000 }
0x1667   :  { %v2221_v41 = vpop.eup %2220  ;;  %1003 = vst.msk [vmem:[#allocation2 + $0x8] sm:$0xf] %vm428_vm1, %v1001_v20 }
0x1668   :  { %1454 = vrot.lane.b32.xlu1 %v2221_v41, %s2420_s0 }
0x166e   :  { %v1292_v42 = vld [vmem:[#allocation2 + $0x8] sm:$0xff] }
0x166f   :  { %2051 = vmatmul.msk.f32.gmra.mxu2 %vm289_vm11, %v1292_v42 }
0x16da   :  { %v1455_v44 = vpop.permute.xlu1 %1454 }
0x16db   :  { %v1457_v46 = vmul.f32 %v1455_v44, %v1435_v58 }
0x16dd   :  { %v1459_v49 = vrot.slane %v1457_v46, 4 }
0x16df   :  { %1460 = vrot.lane.b32.xlu1 %v1459_v49, %s2422_s16 }
0x16f2   :  { %v1339_v54 = vpop.f32.mrf.mxu2 }
0x16f3   :  { %v1340_v56 = vadd.f32 %v2868_v40, %v1339_v54 }
0x1751   :  { %v1461_v51 = vpop.permute.xlu1 %1460 }
0x1752   :  { %2057 = vmatmul.msk.f32.vlgmr.msra.gmra.mxu0 %vm287_vm10, %v1461_v51 }
0x1753   :  { %1678 = vmatpush.msra.mxu0 %v2881_v27 }
0x1755   :  { %1679 = vmatpush.msra.mxu0 %v2883_v14 }
0x1757   :  { %1680 = vmatpush.msra.mxu0 %v2887_v18 }
0x1759   :  { %1681 = vmatpush.msra.mxu0 %v2892_v28 }
0x17cf   :  { %v1481_v45 = vpop.f32.mrf.mxu0 }
0x17d0   :  { %v1484_v52 = vadd.f32 %v1481_v45, %v1340_v56 }
0x17d2   :  { %2222 = vtanh.f32 %v1484_v52  ;;  %v2058_v53 = vmul.f32 -1.442695, %v1484_v52 }
0x17d4   :  { %2224 = vpow2.f32 %v2058_v53 }
0x17d8   :  { %v2223_v47 = vpop.eup %2222 }
0x17d9   :  { %1510 = vrot.lane.b32.xlu2 %v2223_v47, %s2420_s0 }
0x17da   :  { %v2225_v6 = vpop.eup %2224 }
0x17db   :  { %v1488_v43 = vadd.f32 1.0, %v2225_v6 }
0x17dd   :  { %2226 = vrcp.f32 %v1488_v43  ;;  %v1500_v5 = vand.u32 2147483648, %v1488_v43  ;;  %vm1494_vm15 = vweird.f32 %v1488_v43  ;;  %v1498_v12 = vand.u32 2147483647, %v1488_v43 }
0x17df   :  { %v1501_v14 = vor.u32 1.1754944e-38, %v1500_v5  ;;  %vm1499_vm3 = vcmp.eq.f32.partialorder %v1498_v12, 8.507059e+37 }
0x17e3   :  { %v2227_v0 = vpop.eup %2226 }
0x17e4   :  { %v1490_v1 = vmul.f32 %v2227_v0, %v1488_v43  ;;  %vm1495_vm14 = vweird.f32 %v2227_v0 }
0x17e5   :  { %vm1496_vm2 = vmor %vm1494_vm15, %vm1495_vm14 }
0x17e6   :  { %v1491_v2 = vsub.f32 1.0, %v1490_v1 }
0x17e8   :  { %v1492_v3 = vmul.f32 %v2227_v0, %v1491_v2 }
0x17ea   :  { %v1493_v4 = vadd.f32 %v2227_v0, %v1492_v3 }
0x17ec   :  { %v1497_v27 = vsel %vm1496_vm2, %v2227_v0, %v1493_v4 }
0x17ed   :  { %v1502_v28 = vsel %vm1499_vm3, %v1501_v14, %v1497_v27 }
0x17ee   :  { %v1508_v11 = vmul.f32 %v1506_v19, %v1502_v28 }
0x1833   :  { %v1511_v18 = vpop.permute.xlu2 %1510 }
0x1834   :  { %v1513_v16 = vmul.f32 %v1511_v18, %v1502_v28  ;;  %v1197_v18 = vrot.slane %v2933_v50, 4 }
0x1836   :  { %1515 = vrot.lane.b32.xlu0 %v1513_v16, %s2420_s0  ;;  %v1199_v19 = vadd.f32 %v1197_v18, %v2833_v63 }
0x1838   :  { %v2048_v63 = vmul.f32 -1.442695, %v1199_v19 }
0x18a8   :  { %v1516_v13 = vpop.permute.xlu0 %1515 }
0x18a9   :  { %v1518_v15 = vadd.f32 %v1516_v13, %v1508_v11 }
0x18ab   :  { %2228 = vtanh.f32 %v1518_v15  ;;  %v1575_v41 = vrot.slane %v1518_v15, 4 }
0x18b1   :  { %v2229_v61 = vpop.eup %2228 }
0x18b2   :  { %1521 = vrot.lane.b32.xlu1 %v2229_v61, %s2420_s0 }
0x1924   :  { %v1522_v21 = vpop.permute.xlu1 %1521 }
0x1925   :  { %v1524_v22 = vmul.f32 %v1522_v21, %v1502_v28 }
0x1927   :  { %1526 = vrot.lane.b32.xlu2 %v1524_v22, %s2422_s16 }
0x1981   :  { %v1527_v23 = vpop.permute.xlu2 %1526 }
0x1982   :  { %2059 = vmatmul.msk.f32.vlgmr.msrb.gmra.mxu0 %vm287_vm10, %v1527_v23 }
0x19ff   :  { %v1547_v17 = vpop.f32.mrf.mxu0 }
0x1a00   :  { %v1551_v8 = vrot.slane %v1547_v17, 4 }
0x1a02   :  { %v1553_v9 = vadd.f32 %v1551_v8, %v1340_v56 }
0x1a04   :  { %2230 = vtanh.f32 %v1553_v9  ;;  %v2060_v24 = vmul.f32 -1.442695, %v1553_v9 }
0x1a06   :  { %2232 = vpow2.f32 %v2060_v24 }
0x1a0a   :  { %v2231_v10 = vpop.eup %2230 }
0x1a0b   :  { %1579 = vrot.lane.b32.xlu0 %v2231_v10, %s2420_s0 }
0x1a0c   :  { %v2233_v25 = vpop.eup %2232 }
0x1a0d   :  { %v1557_v26 = vadd.f32 1.0, %v2233_v25 }
0x1a0f   :  { %2234 = vrcp.f32 %v1557_v26  ;;  %v1569_v35 = vand.u32 2147483648, %v1557_v26  ;;  %vm1563_vm6 = vweird.f32 %v1557_v26  ;;  %v1567_v36 = vand.u32 2147483647, %v1557_v26 }
0x1a11   :  { %v1570_v37 = vor.u32 1.1754944e-38, %v1569_v35  ;;  %vm1568_vm8 = vcmp.eq.f32.partialorder %v1567_v36, 8.507059e+37 }
0x1a13   :  { %570 = vrot.lane.b32.xlu0 %v2724_v57, %s2421_s3 }
0x1a15   :  { %v2235_v29 = vpop.eup %2234 }
0x1a16   :  { %v1559_v30 = vmul.f32 %v2235_v29, %v1557_v26  ;;  %vm1564_vm5 = vweird.f32 %v2235_v29 }
0x1a17   :  { %vm1565_vm7 = vmor %vm1563_vm6, %vm1564_vm5 }
0x1a18   :  { %v1560_v32 = vsub.f32 1.0, %v1559_v30 }
0x1a1a   :  { %v1561_v33 = vmul.f32 %v2235_v29, %v1560_v32 }
0x1a1c   :  { %v1562_v58 = vadd.f32 %v2235_v29, %v1561_v33 }
0x1a1e   :  { %v1566_v59 = vsel %vm1565_vm7, %v2235_v29, %v1562_v58 }
0x1a1f   :  { %v1571_v57 = vsel %vm1568_vm8, %v1570_v37, %v1566_v59 }
0x1a20   :  { %v1577_v42 = vmul.f32 %v1575_v41, %v1571_v57 }
0x1a7d   :  { %v1580_v55 = vpop.permute.xlu0 %1579 }
0x1a7e   :  { %v1582_v39 = vmul.f32 %v1580_v55, %v1571_v57 }
0x1a80   :  { %1584 = vrot.lane.b32.xlu1 %v1582_v39, %s2420_s0 }
0x1a85   :  { %v571_v20 = vpop.permute.xlu0 %570 }
0x1a86   :  { %573 = vst.msk [vmem:[#allocation2 + $0x10] sm:$0xf0] %vm281_vm0, %v571_v20 }
0x1a87   :  { %998 = vst.msk [vmem:[#allocation2 + $0x10] sm:$0xf0] %vm422_vm4, %v2825_v60 }
0x1a88   :  { %713 = vrot.lane.b32.xlu1 %v2764_v31, %s2421_s3 }
0x1af2   :  { %v1585_v44 = vpop.permute.xlu1 %1584 }
0x1af3   :  { %v1587_v46 = vadd.f32 %v1585_v44, %v1577_v42  ;;  %v1242_v42 = vrot.slane %v2844_v48, 4 }
0x1af5   :  { %2236 = vtanh.f32 %v1587_v46  ;;  %v1642_v21 = vrot.slane %v1587_v46, 4 }
0x1afa   :  { %v714_v49 = vpop.permute.xlu1 %713 }
0x1afb   :  { %v2237_v51 = vpop.eup %2236  ;;  %716 = vst.msk [vmem:[#allocation2 + $0x10] sm:$0xf] %vm428_vm1, %v714_v49 }
0x1afc   :  { %855 = vst.msk [vmem:[#allocation2 + $0x10] sm:$0xf] %vm275_vm9, %v2798_v34  ;;  %1590 = vrot.lane.b32.xlu2 %v2237_v51, %s2420_s0 }
0x1b03   :  { %v1293_v54 = vld [vmem:[#allocation2 + $0x10] sm:$0xff] }
0x1b04   :  { %2052 = vmatmul.msk.f32.gmra.mxu2 %vm289_vm11, %v1293_v54 }
0x1b56   :  { %v1591_v60 = vpop.permute.xlu2 %1590 }
0x1b57   :  { %v1593_v56 = vmul.f32 %v1591_v60, %v1571_v57 }
0x1b59   :  { %v1595_v31 = vrot.slane %v1593_v56, 4 }
0x1b5b   :  { %1596 = vrot.lane.b32.xlu2 %v1595_v31, %s2422_s16 }
0x1b87   :  { %v1342_v52 = vpop.f32.mrf.mxu2 }
0x1b88   :  { %v2958_v47 = vadd.f32 %v2868_v40, %v1342_v52 }
0x1bb5   :  { %v1597_v45 = vpop.permute.xlu2 %1596 }
0x1bb6   :  { %2061 = vmatmul.msk.f32.vlgmr.msra.gmra.mxu3 %vm287_vm10, %v1597_v45 }
0x1c39   :  { %v1617_v53 = vpop.f32.mrf.mxu3 }
0x1c3a   :  { %v1620_v34 = vadd.f32 %v1617_v53, %v2958_v47 }
0x1c3c   :  { %2238 = vtanh.f32 %v1620_v34  ;;  %v2062_v43 = vmul.f32 -1.442695, %v1620_v34 }
0x1c3e   :  { %2240 = vpow2.f32 %v2062_v43 }
0x1c42   :  { %v2239_v6 = vpop.eup %2238 }
0x1c43   :  { %1646 = vrot.lane.b32.xlu0 %v2239_v6, %s2420_s0 }
0x1c44   :  { %v2241_v0 = vpop.eup %2240 }
0x1c45   :  { %v1624_v1 = vadd.f32 1.0, %v2241_v0 }
0x1c47   :  { %2242 = vrcp.f32 %v1624_v1  ;;  %v1636_v27 = vand.u32 2147483648, %v1624_v1  ;;  %vm1630_vm13 = vweird.f32 %v1624_v1  ;;  %v1634_v14 = vand.u32 2147483647, %v1624_v1 }
0x1c48   :  { %2244 = vtanh.f32 %v1199_v19  ;;  %v1871_v19 = vld [vmem:[#allocation8 + $0x58] sm:$0xff] }
0x1c49   :  { %v1637_v16 = vor.u32 1.1754944e-38, %v1636_v27  ;;  %vm1635_vm15 = vcmp.eq.f32.partialorder %v1634_v14, 8.507059e+37 }
0x1c4d   :  { %v2243_v2 = vpop.eup %2242 }
0x1c4e   :  { %v1626_v3 = vmul.f32 %v2243_v2, %v1624_v1  ;;  %vm1631_vm12 = vweird.f32 %v2243_v2  ;;  %v2245_v61 = vpop.eup %2244 }
0x1c4f   :  { %vm1632_vm14 = vmor %vm1630_vm13, %vm1631_vm12 }
0x1c50   :  { %v1627_v4 = vsub.f32 1.0, %v1626_v3 }
0x1c52   :  { %v1628_v5 = vmul.f32 %v2243_v2, %v1627_v4 }
0x1c54   :  { %v1629_v12 = vadd.f32 %v2243_v2, %v1628_v5 }
0x1c56   :  { %v1633_v28 = vsel %vm1632_vm14, %v2243_v2, %v1629_v12 }
0x1c57   :  { %v1638_v13 = vsel %vm1635_vm15, %v1637_v16, %v1633_v28  ;;  %v1873_v16 = vld [vmem:[#allocation8 + $0x78] sm:$0xff] }
0x1c58   :  { %v1644_v22 = vmul.f32 %v1642_v21, %v1638_v13  ;;  %1889 = vmatpush.msrb.mxu0 %v1873_v16  ;;  %v1866_v21 = vld [vmem:[#allocation8 + $0x8] sm:$0xff] }
0x1cb5   :  { %v1647_v11 = vpop.permute.xlu0 %1646 }
0x1cb6   :  { %v1649_v15 = vmul.f32 %v1647_v11, %v1638_v13  ;;  %v1870_v11 = vld [vmem:[#allocation8 + $0x48] sm:$0xff] }
0x1cb8   :  { %1651 = vrot.lane.b32.xlu1 %v1649_v15, %s2420_s0  ;;  %v1868_v15 = vld [vmem:[#allocation8 + $0x28] sm:$0xff] }
0x1cc0   :  { %1246 = vrot.lane.b32.xlu1 %v2245_v61, %s2420_s0  ;;  %v1867_v61 = vld [vmem:[#allocation8 + $0x18] sm:$0xff] }
0x1d2a   :  { %v1652_v23 = vpop.permute.xlu1 %1651 }
0x1d2b   :  { %v2966_v17 = vadd.f32 %v1652_v23, %v1644_v22 }
0x1d2d   :  { %2246 = vtanh.f32 %v2966_v17  ;;  %v1711_v5 = vrot.slane %v2966_v17, 4 }
0x1d2e   :  { %2248 = vpow2.f32 %v2048_v63 }
0x1d32   :  { %v1247_v59 = vpop.permute.xlu1 %1246 }
0x1d33   :  { %v2247_v50 = vpop.eup %2246 }
0x1d34   :  { %1657 = vrot.lane.b32.xlu2 %v2247_v50, %s2420_s0  ;;  %v2249_v8 = vpop.eup %2248 }
0x1d35   :  { %v1204_v9 = vadd.f32 1.0, %v2249_v8 }
0x1d37   :  { %2250 = vrcp.f32 %v1204_v9  ;;  %v1216_v33 = vand.u32 2147483648, %v1204_v9  ;;  %vm1210_vm3 = vweird.f32 %v1204_v9  ;;  %v1214_v58 = vand.u32 2147483647, %v1204_v9 }
0x1d39   :  { %v1217_v36 = vor.u32 1.1754944e-38, %v1216_v33  ;;  %vm1215_vm6 = vcmp.eq.f32.partialorder %v1214_v58, 8.507059e+37 }
0x1d3d   :  { %v2251_v10 = vpop.eup %2250 }
0x1d3e   :  { %v1206_v24 = vmul.f32 %v2251_v10, %v1204_v9  ;;  %vm1211_vm2 = vweird.f32 %v2251_v10 }
0x1d3f   :  { %vm1212_vm5 = vmor %vm1210_vm3, %vm1211_vm2 }
0x1d40   :  { %v1207_v25 = vsub.f32 1.0, %v1206_v24 }
0x1d42   :  { %v1208_v26 = vmul.f32 %v2251_v10, %v1207_v25 }
0x1d44   :  { %v1209_v30 = vadd.f32 %v2251_v10, %v1208_v26 }
0x1d46   :  { %v1213_v35 = vsel %vm1212_vm5, %v2251_v10, %v1209_v30 }
0x1d47   :  { %v1218_v37 = vsel %vm1215_vm6, %v1217_v36, %v1213_v35 }
0x1d48   :  { %v1249_v55 = vmul.f32 %v1247_v59, %v1218_v37  ;;  %v1244_v46 = vmul.f32 %v1242_v42, %v1218_v37 }
0x1d8e   :  { %v1658_v29 = vpop.permute.xlu2 %1657 }
0x1d8f   :  { %v1660_v32 = vmul.f32 %v1658_v29, %v1638_v13  ;;  %v1869_v13 = vld [vmem:[#allocation8 + $0x38] sm:$0xff] }
0x1d91   :  { %1662 = vrot.lane.b32.xlu0 %v1660_v32, %s2422_s16 }
0x1d99   :  { %1251 = vrot.lane.b32.xlu0 %v1249_v55, %s2420_s0 }
0x1e03   :  { %v1663_v57 = vpop.permute.xlu0 %1662 }
0x1e04   :  { %2063 = vmatmul.msk.f32.vlgmr.msra.gmra.mxu0 %vm287_vm10, %v1663_v57 }
0x1e0b   :  { %v1252_v44 = vpop.permute.xlu0 %1251 }
0x1e0c   :  { %v1254_v49 = vadd.f32 %v1252_v44, %v1244_v46 }
0x1e81   :  { %v1683_v39 = vpop.f32.mrf.mxu0 }
0x1e82   :  { %v1687_v20 = vrot.slane %v1683_v39, 4 }
0x1e84   :  { %v1689_v41 = vadd.f32 %v1687_v20, %v2958_v47 }
0x1e86   :  { %2252 = vtanh.f32 %v1689_v41  ;;  %v2064_v60 = vmul.f32 -1.442695, %v1689_v41 }
0x1e87   :  { %2254 = vtanh.f32 %v1254_v49 }
0x1e88   :  { %2256 = vpow2.f32 %v2064_v60 }
0x1e8c   :  { %v2253_v51 = vpop.eup %2252 }
0x1e8d   :  { %1715 = vrot.lane.b32.xlu2 %v2253_v51, %s2420_s0  ;;  %v2255_v54 = vpop.eup %2254 }
0x1e8e   :  { %v2257_v56 = vpop.eup %2256 }
0x1e8f   :  { %v1693_v31 = vadd.f32 1.0, %v2257_v56 }
0x1e91   :  { %2258 = vrcp.f32 %v1693_v31  ;;  %v1705_v34 = vand.u32 2147483648, %v1693_v31  ;;  %vm1699_vm8 = vweird.f32 %v1693_v31  ;;  %v1703_v6 = vand.u32 2147483647, %v1693_v31 }
0x1e93   :  { %v1706_v0 = vor.u32 1.1754944e-38, %v1705_v34  ;;  %vm1704_vm13 = vcmp.eq.f32.partialorder %v1703_v6, 8.507059e+37 }
0x1e95   :  { %1271 = vrot.lane.b32.xlu2 %v2255_v54, %s2420_s0  ;;  %v2084_v54 = vld [vmem:[%s3081_s6 + $0x1] ss:$0 sm:$0xff] }
0x1e97   :  { %v2259_v48 = vpop.eup %2258 }
0x1e98   :  { %v1695_v45 = vmul.f32 %v2259_v48, %v1693_v31  ;;  %vm1700_vm7 = vweird.f32 %v2259_v48 }
0x1e99   :  { %vm1701_vm12 = vmor %vm1699_vm8, %vm1700_vm7 }
0x1e9a   :  { %v1696_v52 = vsub.f32 1.0, %v1695_v45 }
0x1e9c   :  { %v1697_v47 = vmul.f32 %v2259_v48, %v1696_v52 }
0x1e9d   :  { %425 = vrot.lane.b32.xlu2 %v2680_v38, %s2421_s3 }
0x1e9e   :  { %v1698_v53 = vadd.f32 %v2259_v48, %v1697_v47 }
0x1ea0   :  { %v1702_v43 = vsel %vm1701_vm12, %v2259_v48, %v1698_v53 }
0x1ea1   :  { %v1707_v38 = vsel %vm1704_vm13, %v1706_v0, %v1702_v43 }
0x1ea2   :  { %v1713_v12 = vmul.f32 %v1711_v5, %v1707_v38 }
0x1ee7   :  { %v1716_v1 = vpop.permute.xlu2 %1715 }
0x1ee8   :  { %v1718_v2 = vmul.f32 %v1716_v1, %v1707_v38 }
0x1eea   :  { %1720 = vrot.lane.b32.xlu1 %v1718_v2, %s2420_s0 }
0x1eef   :  { %v1272_v3 = vpop.permute.xlu2 %1271 }
0x1ef2   :  { %278 = vrot.lane.b32.xlu1 %v2573_v7, %s2421_s3  ;;  %v1274_v7 = vmul.f32 %v1272_v3, %v1218_v37 }
0x1ef7   :  { %v426_v4 = vpop.permute.xlu2 %425 }
0x1ef8   :  { %429 = vst.msk [vmem:[#allocation2 + $0x18] sm:$0xf] %vm428_vm1, %v426_v4 }
0x1ef9   :  { %1142 = vst.msk [vmem:[#allocation2 + $0x18] sm:$0xf] %vm275_vm9, %v2850_v62  ;;  %v1872_v62 = vld [vmem:[#allocation8 + $0x68] sm:$0xff] }
0x1efa   :  { %1890 = vmatpush.msrb.mxu0 %v1872_v62 }
0x1efc   :  { %1891 = vmatpush.msrb.mxu0 %v1871_v19 }
0x1efe   :  { %1892 = vmatpush.msrb.mxu0 %v1870_v11 }
0x1f00   :  { %1893 = vmatpush.msrb.mxu0 %v1869_v13 }
0x1f02   :  { %1894 = vmatpush.msrb.mxu0 %v1868_v15 }
0x1f04   :  { %1895 = vmatpush.msrb.mxu0 %v1867_v61 }
0x1f06   :  { %1896 = vmatpush.msrb.mxu0 %v1866_v21 }
0x1f5c   :  { %v1721_v27 = vpop.permute.xlu1 %1720 }
0x1f5d   :  { %v2986_v14 = vadd.f32 %v1721_v27, %v1713_v12 }
0x1f5f   :  { %2260 = vtanh.f32 %v2986_v14  ;;  %v1778_v44 = vrot.slane %v2986_v14, 4 }
0x1f64   :  { %v279_v18 = vpop.permute.xlu1 %278 }
0x1f65   :  { %v2261_v28 = vpop.eup %2260  ;;  %282 = vst.msk [vmem:[#allocation2 + $0x18] sm:$0xf0] %vm281_vm0, %v279_v18 }
0x1f66   :  { %1726 = vrot.lane.b32.xlu0 %v2261_v28, %s2420_s0 }
0x1f6e   :  { %1282 = vrot.lane.b32.xlu0 %v1274_v7, %s2422_s16 }
0x1fd8   :  { %v1727_v22 = vpop.permute.xlu0 %1726 }
0x1fd9   :  { %v1729_v23 = vmul.f32 %v1727_v22, %v1707_v38 }
0x1fdb   :  { %v1731_v17 = vrot.slane %v1729_v23, 4 }
0x1fdd   :  { %1732 = vrot.lane.b32.xlu1 %v1731_v17, %s2422_s16 }
0x1fe0   :  { %v1283_v50 = vpop.permute.xlu0 %1282 }
0x1fe1   :  { %1285 = vst.msk [vmem:[#allocation2 + $0x18] sm:$0xf0] %vm422_vm4, %v1283_v50 }
0x1fe8   :  { %v1294_v63 = vld [vmem:[#allocation2 + $0x18] sm:$0xff] }
0x1fe9   :  { %2053 = vmatmul.msk.f32.gmra.mxu2 %vm289_vm11, %v1294_v63  ;;  %v1878_v8 = vrot.slane %v1294_v63, 4 }
0x1feb   :  { %2069 = vmatmul.msk.f32.vlgmr.msrb.gmra.mxu0 %vm289_vm11, %v1878_v8 }
0x204f   :  { %v1733_v9 = vpop.permute.xlu1 %1732 }
0x2050   :  { %2065 = vmatmul.msk.f32.vlgmr.msrb.gmra.mxu1 %vm287_vm10, %v1733_v9 }
0x2068   :  { %v1898_v60 = vpop.f32.mrf.mxu0 }
0x2069   :  { %v1899_v56 = vadd.f32 %v2084_v54, %v1898_v60  ;;  %v1952_v54 = vld [vmem:[%s3082_s7 + $0x20] sm:$0xff]  ;;  %v1951_v60 = vld [vmem:[%s3082_s7 + $0x18] sm:$0xff] }
0x206b   :  { %v2070_v53 = vmul.f32 -1.442695, %v1899_v56 }
0x206c   :  { %v1345_v10 = vpop.f32.mrf.mxu2 }
0x206d   :  { %v1346_v24 = vadd.f32 %v2868_v40, %v1345_v10 }
0x20cd   :  { %v1753_v25 = vpop.f32.mrf.mxu1 }
0x20ce   :  { %v1756_v26 = vadd.f32 %v1753_v25, %v1346_v24 }
0x20d0   :  { %2262 = vtanh.f32 %v1756_v26  ;;  %v2066_v30 = vmul.f32 -1.442695, %v1756_v26 }
0x20d2   :  { %2264 = vpow2.f32 %v2066_v30 }
0x20d6   :  { %v2263_v29 = vpop.eup %2262 }
0x20d7   :  { %1782 = vrot.lane.b32.xlu2 %v2263_v29, %s2420_s0 }
0x20d8   :  { %v2265_v32 = vpop.eup %2264 }
0x20d9   :  { %v1760_v33 = vadd.f32 1.0, %v2265_v32 }
0x20db   :  { %2266 = vrcp.f32 %v1760_v33  ;;  %v1772_v55 = vand.u32 2147483648, %v1760_v33  ;;  %vm1766_vm4 = vweird.f32 %v1760_v33  ;;  %v1770_v40 = vand.u32 2147483647, %v1760_v33 }
0x20dd   :  { %v1773_v39 = vor.u32 1.1754944e-38, %v1772_v55  ;;  %vm1771_vm1 = vcmp.eq.f32.partialorder %v1770_v40, 8.507059e+37  ;;  %v1963_v55 = vld [vmem:[%s3082_s7 + $0x78] sm:$0xff]  ;;  %v1962_v40 = vld [vmem:[%s3082_s7 + $0x70] sm:$0xff] }
0x20de   :  { %1971 = vmatpush.msra.mxu2 %v1963_v55 }
0x20e0   :  { %1972 = vmatpush.msra.mxu2 %v1962_v40 }
0x20e1   :  { %v2267_v58 = vpop.eup %2266 }
0x20e2   :  { %v1762_v35 = vmul.f32 %v2267_v58, %v1760_v33  ;;  %vm1767_vm9 = vweird.f32 %v2267_v58 }
0x20e3   :  { %vm1768_vm0 = vmor %vm1766_vm4, %vm1767_vm9 }
0x20e4   :  { %v1763_v36 = vsub.f32 1.0, %v1762_v35 }
0x20e6   :  { %v1764_v59 = vmul.f32 %v2267_v58, %v1763_v36 }
0x20e8   :  { %v1765_v37 = vadd.f32 %v2267_v58, %v1764_v59 }
0x20ea   :  { %v1769_v57 = vsel %vm1768_vm0, %v2267_v58, %v1765_v37 }
0x20eb   :  { %v1774_v41 = vsel %vm1771_vm1, %v1773_v39, %v1769_v57  ;;  %v1961_v57 = vld [vmem:[%s3082_s7 + $0x68] sm:$0xff]  ;;  %v1960_v39 = vld [vmem:[%s3082_s7 + $0x60] sm:$0xff] }
0x20ec   :  { %v1780_v46 = vmul.f32 %v1778_v44, %v1774_v41  ;;  %1973 = vmatpush.msra.mxu2 %v1961_v57  ;;  %v1956_v44 = vld [vmem:[%s3082_s7 + $0x40] sm:$0xff] }
0x20ee   :  { %1974 = vmatpush.msra.mxu2 %v1960_v39 }
0x2131   :  { %v1783_v20 = vpop.permute.xlu2 %1782 }
0x2132   :  { %v1785_v42 = vmul.f32 %v1783_v20, %v1774_v41  ;;  %v1959_v20 = vld [vmem:[%s3082_s7 + $0x58] sm:$0xff] }
0x2133   :  { %1975 = vmatpush.msra.mxu2 %v1959_v20 }
0x2134   :  { %1787 = vrot.lane.b32.xlu0 %v1785_v42, %s2420_s0  ;;  %v1957_v42 = vld [vmem:[%s3082_s7 + $0x48] sm:$0xff] }
0x21a6   :  { %v1788_v49 = vpop.permute.xlu0 %1787 }
0x21a7   :  { %v3001_v51 = vadd.f32 %v1788_v49, %v1780_v46  ;;  %v1955_v46 = vld [vmem:[%s3082_s7 + $0x38] sm:$0xff]  ;;  %v1954_v49 = vld [vmem:[%s3082_s7 + $0x30] sm:$0xff] }
0x21a9   :  { %2268 = vtanh.f32 %v3001_v51  ;;  %v1847_v32 = vrot.slane %v3001_v51, 4  ;;  %v1953_v51 = vld [vmem:[%s3082_s7 + $0x28] sm:$0xff] }
0x21aa   :  { %2270 = vtanh.f32 %v1899_v56  ;;  %v1950_v56 = vld [vmem:[%s3082_s7 + $0x10] sm:$0xff] }
0x21ab   :  { %2272 = vpow2.f32 %v2070_v53  ;;  %v1948_v53 = vld [vmem:[%s3082_s7] sm:$0xff] }
0x21af   :  { %v2269_v31 = vpop.eup %2268 }
0x21b0   :  { %1793 = vrot.lane.b32.xlu1 %v2269_v31, %s2420_s0  ;;  %v2271_v48 = vpop.eup %2270  ;;  %v1949_v31 = vld [vmem:[%s3082_s7 + $0x8] sm:$0xff] }
0x21b1   :  { %v2273_v34 = vpop.eup %2272 }
0x21b2   :  { %v1904_v6 = vadd.f32 1.0, %v2273_v34 }
0x21b4   :  { %2274 = vrcp.f32 %v1904_v6  ;;  %v1916_v5 = vand.u32 2147483648, %v1904_v6  ;;  %vm1910_vm15 = vweird.f32 %v1904_v6  ;;  %v1914_v12 = vand.u32 2147483647, %v1904_v6 }
0x21b6   :  { %v1917_v18 = vor.u32 1.1754944e-38, %v1916_v5  ;;  %vm1915_vm3 = vcmp.eq.f32.partialorder %v1914_v12, 8.507059e+37 }
0x21b8   :  { %1922 = vrot.lane.b32.xlu1 %v2271_v48, %s2420_s0 }
0x21ba   :  { %v2275_v43 = vpop.eup %2274 }
0x21bb   :  { %v1906_v0 = vmul.f32 %v2275_v43, %v1904_v6  ;;  %vm1911_vm14 = vweird.f32 %v2275_v43 }
0x21bc   :  { %vm1912_vm2 = vmor %vm1910_vm15, %vm1911_vm14 }
0x21bd   :  { %v1907_v1 = vsub.f32 1.0, %v1906_v0  ;;  %v2085_v0 = vld [vmem:[%s3083_s8] ss:$0 sm:$0xff] }
0x21bf   :  { %v1908_v38 = vmul.f32 %v2275_v43, %v1907_v1 }
0x21c1   :  { %v1909_v3 = vadd.f32 %v2275_v43, %v1908_v38 }
0x21c3   :  { %v1913_v14 = vsel %vm1912_vm2, %v2275_v43, %v1909_v3 }
0x21c4   :  { %v1918_v7 = vsel %vm1915_vm3, %v1917_v18, %v1913_v14 }
0x2222   :  { %v1794_v45 = vpop.permute.xlu1 %1793 }
0x2223   :  { %v1796_v52 = vmul.f32 %v1794_v45, %v1774_v41  ;;  %v1958_v41 = vld [vmem:[%s3082_s7 + $0x50] sm:$0xff] }
0x2224   :  { %1976 = vmatpush.msra.mxu2 %v1958_v41 }
0x2225   :  { %1798 = vrot.lane.b32.xlu2 %v1796_v52, %s2422_s16 }
0x2226   :  { %1977 = vmatpush.msra.mxu2 %v1957_v42 }
0x2228   :  { %1978 = vmatpush.msra.mxu2 %v1956_v44 }
0x222a   :  { %v1923_v28 = vpop.permute.xlu1 %1922  ;;  %1979 = vmatpush.msra.mxu2 %v1955_v46 }
0x222b   :  { %v1925_v16 = vmul.f32 %v1923_v28, %v1918_v7 }
0x222c   :  { %1980 = vmatpush.msra.mxu2 %v1954_v49 }
0x222e   :  { %1981 = vmatpush.msra.mxu2 %v1953_v51 }
0x2230   :  { %1982 = vmatpush.msra.mxu2 %v1952_v54 }
0x2232   :  { %1983 = vmatpush.msra.mxu2 %v1951_v60 }
0x2234   :  { %1984 = vmatpush.msra.mxu2 %v1950_v56 }
0x2236   :  { %1985 = vmatpush.msra.mxu2 %v1949_v31 }
0x2238   :  { %1986 = vmatpush.msra.mxu2 %v1948_v53 }
0x227f   :  { %v1799_v47 = vpop.permute.xlu2 %1798 }
0x2280   :  { %2067 = vmatmul.msk.f32.vlgmr.msrb.gmra.mxu3 %vm287_vm10, %v1799_v47 }
0x2303   :  { %v1819_v2 = vpop.f32.mrf.mxu3 }
0x2304   :  { %v1823_v4 = vrot.slane %v1819_v2, 4 }
0x2306   :  { %v1825_v27 = vadd.f32 %v1823_v4, %v1346_v24 }
0x2308   :  { %2276 = vtanh.f32 %v1825_v27  ;;  %v2068_v11 = vmul.f32 -1.442695, %v1825_v27 }
0x2309   :  { %2278 = vtanh.f32 %v1925_v16 }
0x230a   :  { %2280 = vpow2.f32 %v2068_v11 }
0x230e   :  { %v2277_v62 = vpop.eup %2276 }
0x230f   :  { %1851 = vrot.lane.b32.xlu0 %v2277_v62, %s2420_s0  ;;  %v2279_v19 = vpop.eup %2278 }
0x2310   :  { %v2281_v13 = vpop.eup %2280 }
0x2311   :  { %v1829_v15 = vadd.f32 1.0, %v2281_v13 }
0x2313   :  { %2282 = vrcp.f32 %v1829_v15  ;;  %v1841_v50 = vand.u32 2147483648, %v1829_v15  ;;  %vm1835_vm6 = vweird.f32 %v1829_v15  ;;  %v1839_v63 = vand.u32 2147483647, %v1829_v15 }
0x2315   :  { %v1842_v9 = vor.u32 1.1754944e-38, %v1841_v50  ;;  %vm1840_vm8 = vcmp.eq.f32.partialorder %v1839_v63, 8.507059e+37 }
0x2317   :  { %1928 = vrot.lane.b32.xlu0 %v2279_v19, %s2422_s16 }
0x2319   :  { %v2283_v61 = vpop.eup %2282 }
0x231a   :  { %v1831_v21 = vmul.f32 %v2283_v61, %v1829_v15  ;;  %vm1836_vm5 = vweird.f32 %v2283_v61 }
0x231b   :  { %vm1837_vm7 = vmor %vm1835_vm6, %vm1836_vm5 }
0x231c   :  { %v1832_v22 = vsub.f32 1.0, %v1831_v21 }
0x231e   :  { %v1833_v23 = vmul.f32 %v2283_v61, %v1832_v22 }
0x2320   :  { %v1834_v17 = vadd.f32 %v2283_v61, %v1833_v23 }
0x2322   :  { %v1838_v8 = vsel %vm1837_vm7, %v2283_v61, %v1834_v17 }
0x2323   :  { %v1843_v24 = vsel %vm1840_vm8, %v1842_v9, %v1838_v8 }
0x2324   :  { %v1849_v33 = vmul.f32 %v1847_v32, %v1843_v24 }
0x2381   :  { %v1852_v10 = vpop.permute.xlu0 %1851 }
0x2382   :  { %v1854_v25 = vmul.f32 %v1852_v10, %v1843_v24 }
0x2384   :  { %1856 = vrot.lane.b32.xlu2 %v1854_v25, %s2420_s0 }
0x2389   :  { %v1929_v26 = vpop.permute.xlu0 %1928 }
0x238a   :  { %v1931_v29 = vmul.f32 %v1929_v26, %v1918_v7 }
0x238c   :  { %v1937_v30 = vrot.slane %v1931_v29, 4 }
0x238e   :  { %1938 = vrot.lane.b32.xlu0 %v1937_v30, %s2421_s3 }
0x23de   :  { %v1857_v58 = vpop.permute.xlu2 %1856 }
0x23df   :  { %v1859_v35 = vadd.f32 %v1857_v58, %v1849_v33 }
0x23e1   :  { %2284 = vtanh.f32 %v1859_v35 }
0x23e7   :  { %v2285_v36 = vpop.eup %2284 }
0x23e8   :  { %1862 = vrot.lane.b32.xlu1 %v2285_v36, %s2420_s0 }
0x2400   :  { %v1939_v48 = vpop.permute.xlu0 %1938 }
0x245a   :  { %v1863_v59 = vpop.permute.xlu1 %1862 }
0x245b   :  { %v1865_v37 = vmul.f32 %v1863_v59, %v1843_v24 }
0x245d   :  { %1933 = vrot.lane.b32.xlu2 %v1865_v37, %s2422_s16 }
0x24b7   :  { %v1934_v45 = vpop.permute.xlu2 %1933 }
0x24b8   :  { %v1941_v52 = vsel %vm287_vm10, %v1934_v45, %v1939_v48  ;;  %vm1991_vm10 = vcmask 17408  }
0x24b9   :  { %v1943_v47 = vrot.slane %v1941_v52, 2 }
0x24bb   :  { %1944 = vrot.lane.b32.xlu1 %v1943_v47, %s2422_s16  ;;  %s2000_s16 = sshll.u32 %s3084_s9, 4  ;;  %s2001_s16 = int_to_ptr.hbm [resolvable:$true] %s2000_s16 }
0x252d   :  { %v1945_v34 = vpop.permute.xlu1 %1944 }
0x252e   :  { %v1947_v6 = vsel %vm289_vm11, %v1941_v52, %v1945_v34 }
0x252f   :  { %v1969_v43 = vrot.slane %v1947_v6, 4 }
0x2531   :  { %1987 = vmatmul.f32.vlgmr.msra.gmra.mxu2 %v1969_v43 }
0x25b4   :  { %v1988_v1 = vpop.f32.mrf.mxu2 }
0x25b5   :  { %v1989_v38 = vadd.f32 %v2085_v0, %v1988_v1 }
0x25b7   :  { %1992 = vst.msk [vmem:[#allocation11] sm:$0x3] %vm1991_vm10, %v1989_v38 }
0x25b8   :  { %2003 = dma.vmem_to_hbm [thread:$0]  %s1999_s27, 32, %s2001_s16, [#allocation5]  }
0x25b9   :  { %2412 = dma.done.wait [#allocation5], 32  }
0x25ba   :  { %2413 = vsyncadd [#allocation5], 4294967264 }
0x25bb   :  { %2008 = vsyncpa [#allocation4], 1 }
0x25bc   :  { %2009 = vsyncpa [#allocation7], 1 }
0x25bd   :  { %2010 = vsyncpa [#allocation10], 1 }
0x25be   :  { %2011 = vsyncpa [#allocation5], 1 }

</bundles_post_ra>
